<compile_context>
chip_gen: v6e
topology: v6e:2x2x1
jax: 0.10.0
libtpu: 0.0.40
codegen_flags: <defaults>
</compile_context>

<pallas_src>
import functools

import jax
import jax.numpy as jnp
from jax.experimental import pallas as pl
from jax.experimental.pallas import tpu as pltpu


# ----------------------------------------------------------------------------
# Pallas kernel: one sample per grid step.
#   x_ref: (C, HW) sample tile (any float dtype; math runs in f32)
#   p_ref: (C, 4)  packed per-channel params [rho0, rho1, gamma, beta] (f32)
#   o_ref: (C, HW) output tile (same dtype as x)
# ----------------------------------------------------------------------------
def _ada_iln_kernel(x_ref, p_ref, o_ref, *, eps, hw, chw):
    x = x_ref[...].astype(jnp.float32)
    p = p_ref[...].astype(jnp.float32)

    # ---- single-pass statistics: per-channel sum and sum-of-squares --------
    s1 = jnp.sum(x, axis=1, keepdims=True)          # (C, 1)
    s2 = jnp.sum(x * x, axis=1, keepdims=True)      # (C, 1)

    # Instance (per-channel) stats.  NOTE: hw == 1 gives inf, mirroring
    # PyTorch's unbiased var with a single element.
    in_mean = s1 * (1.0 / hw)
    in_ssq = s2 - s1 * in_mean                      # sum (x - in_mean)^2
    inv_in = jax.lax.rsqrt(in_ssq * (1.0 / (hw - 1.0)) + eps)       # EUP rsqrt

    # Layer stats derived from the per-channel partial sums (no extra pass).
    s1_tot = jnp.sum(s1)
    s2_tot = jnp.sum(s2)
    ln_mean = s1_tot * (1.0 / chw)
    ln_ssq = s2_tot - s1_tot * ln_mean
    inv_ln = jax.lax.rsqrt(ln_ssq * (1.0 / (chw - 1.0)) + eps)

    # ---- fold rho mix + gamma/beta affine into ONE per-channel scale/shift -
    r0 = p[:, 0:1]
    r1 = p[:, 1:2]
    g = p[:, 2:3]
    b = p[:, 3:4]
    scale = g * (r0 * inv_in + r1 * inv_ln)
    shift = b - g * (r0 * in_mean * inv_in + r1 * ln_mean * inv_ln)

    # single FMA pass over the tile
    o_ref[...] = (x * scale + shift).astype(o_ref.dtype)


def _round_up(v, m):
    return (v + m - 1) // m * m


# ----------------------------------------------------------------------------
# Wrapper
# ----------------------------------------------------------------------------
def ada_iln(x, rho, gamma, beta, eps=1e-5):
    """adaILN forward (using_bn=False path).

    x:     (B, C, H, W)  float32 or bfloat16 (NCHW, matches PyTorch)
    rho:   (C, 2) or (1, C, 2) pre-softmax mixing parameter
    gamma: (B, C)
    beta:  (B, C)
    """
    B, C, H, W = x.shape
    HW = H * W

    # Free reshape (trailing contiguous dims merge) — NO transpose, NO extra
    # HBM pass; HW sits on the lane axis for every spatial size.
    xr = x.reshape(B, C, HW)

    # softmax over the 2-way mix == sigmoid of the difference; pack all
    # per-channel params into a single (B, C, 4) array -> one DMA per step.
    rho = jnp.asarray(rho, jnp.float32).reshape(-1, 2)
    r0 = jax.nn.sigmoid(rho[:, 0] - rho[:, 1])          # == softmax(rho)[:, 0]
    r1 = 1.0 - r0
    params = jnp.stack(
        [jnp.broadcast_to(r0, (B, C)),
         jnp.broadcast_to(r1, (B, C)),
         jnp.asarray(gamma, jnp.float32),
         jnp.asarray(beta, jnp.float32)], axis=-1)       # (B, C, 4)

    kernel = functools.partial(_ada_iln_kernel, eps=float(eps),
                               hw=float(HW), chw=float(C * HW))

    # ---- generation-aware VMEM budgeting -----------------------------------
    c_pad = _round_up(C, 8)
    hw_pad = _round_up(HW, 128)
    x_bytes = c_pad * hw_pad * x.dtype.itemsize          # one x/out block
    p_bytes = c_pad * 128 * 4                             # padded param block
    scratch_bytes = 3 * c_pad * hw_pad * 4                # f32 temporaries
    try:
        vmem_cap = int(pltpu.get_tpu_info().vmem_capacity_bytes)
    except Exception:  # API unavailable -> assume smallest generation (v7x)
        vmem_cap = 64 * 1024 * 1024

    # With grid=(B,) and B<=2, each TensorCore runs <=1 step on v7x, so double
    # buffering buys little; drop to single buffering instead of OOM-ing.
    single_buffer = (4 * x_bytes + 2 * p_bytes + scratch_bytes) > int(0.7 * vmem_cap)
    n_buf = 1 if single_buffer else 2
    vmem_limit = int(min(0.9 * vmem_cap,
                         max(32 << 20,
                             2 * n_buf * x_bytes + 2 * p_bytes
                             + scratch_bytes + (4 << 20))))

    def _xo_spec():
        if single_buffer:
            return pl.BlockSpec((None, C, HW), lambda b: (b, 0, 0),
                                pipeline_mode=pl.Buffered(1))
        return pl.BlockSpec((None, C, HW), lambda b: (b, 0, 0))

    x_spec = _xo_spec()
    o_spec = _xo_spec()
    p_spec = pl.BlockSpec((None, C, 4), lambda b: (b, 0, 0))

    out = pl.pallas_call(
        kernel,
        out_shape=jax.ShapeDtypeStruct((B, C, HW), x.dtype),
        grid=(B,),
        in_specs=[x_spec, p_spec],
        out_specs=o_spec,
        compiler_params=pltpu.CompilerParams(
            dimension_semantics=("parallel",),
            vmem_limit_bytes=vmem_limit),
    )(xr, params)

    return out.reshape(B, C, H, W)


# ----------------------------------------------------------------------------
# Pure-JAX reference (mirrors the PyTorch forward exactly) for validation.
# ----------------------------------------------------------------------------
def ada_iln_reference(x, rho, gamma, beta, eps=1e-5):
    x = x.astype(jnp.float32)
    in_mean = jnp.mean(x, axis=(2, 3), keepdims=True)
    in_var = jnp.var(x, axis=(2, 3), keepdims=True, ddof=1)        # unbiased
    out_in = (x - in_mean) / jnp.sqrt(in_var + eps)
    ln_mean = jnp.mean(x, axis=(1, 2, 3), keepdims=True)
    ln_var = jnp.var(x, axis=(1, 2, 3), keepdims=True, ddof=1)     # unbiased
    out_ln = (x - ln_mean) / jnp.sqrt(ln_var + eps)
    r = jax.nn.softmax(jnp.asarray(rho, jnp.float32).reshape(-1, 2), axis=-1)
    r0 = r[:, 0].reshape(1, -1, 1, 1)
    r1 = r[:, 1].reshape(1, -1, 1, 1)
    out = r0 * out_in + r1 * out_ln
    return out * gamma[:, :, None, None] + beta[:, :, None, None]


# ----------------------------------------------------------------------------
if __name__ == "__main__":
    key = jax.random.PRNGKey(0)
    kx, kg, kb, ks = jax.random.split(key, 4)

    # adaILN in IEGAN runs at num_features = ngf*4 = 256; small spatial size.
    B, C, H, W = 2, 256, 16, 16
    x = jax.random.normal(kx, (B, C, H, W), jnp.float32)
    gamma = 1.0 + 0.1 * jax.random.normal(kg, (B, C), jnp.float32)
    beta = 0.1 * jax.random.normal(kb, (B, C), jnp.float32)

    # Module parameter init: rho[:, :, 0] = 3.2, rho[:, :, 1] = 1.0
    rho = jnp.concatenate([jnp.full((C, 1), 3.2, jnp.float32),
                           jnp.full((C, 1), 1.0, jnp.float32)], axis=1)

    fwd = jax.jit(ada_iln)
    out = jax.block_until_ready(fwd(x, rho, gamma, beta))
    assert out.shape == (B, C, H, W), out.shape
    assert bool(jnp.all(jnp.isfinite(out)))

    ref = ada_iln_reference(x, rho, gamma, beta)
    err = float(jnp.max(jnp.abs(out - ref)))
    assert err < 1e-3, f"max abs err {err}"

    # Small-HW (masked-lane) path — no wrapper transposes are emitted anymore.
    xs = jax.random.normal(ks, (B, C, 4, 4), jnp.float32)
    outs = jax.block_until_ready(jax.jit(ada_iln)(xs, rho, gamma, beta))
    errs = float(jnp.max(jnp.abs(outs - ada_iln_reference(xs, rho, gamma, beta))))
    assert errs < 1e-3, f"max abs err (small-HW path) {errs}"

    # bf16 I/O path (stats stay f32 in-kernel); loose tolerance for bf16 storage.
    xb = x.astype(jnp.bfloat16)
    outb = jax.block_until_ready(jax.jit(ada_iln)(xb, rho, gamma, beta))
    assert outb.dtype == jnp.bfloat16
    assert bool(jnp.all(jnp.isfinite(outb.astype(jnp.float32))))
    errb = float(jnp.max(jnp.abs(outb.astype(jnp.float32) - ref)))
    assert errb < 2e-1, f"max abs err (bf16 path) {errb}"

    print("KERNEL_OK")
</pallas_src>

<mosaic_0001>
module attributes {stable_mosaic.version = 11 : i64} {
  func.func @_ada_iln_kernel(%arg0: i32, %arg1: memref<1x256x256xf32, #tpu.memory_space<vmem>>, %arg2: memref<1x256x4xf32, #tpu.memory_space<vmem>>, %arg3: memref<1x256x256xf32, #tpu.memory_space<vmem>>) attributes {dimension_semantics = [#tpu.dimension_semantics<parallel>], iteration_bounds = array<i64: 2>, scalar_prefetch = 0 : i64, scratch_operands = 0 : i64, tpu.core_type = #tpu.core_type<tc>, window_params = [{transform_indices = @transform_0, window_bounds = array<i64: 1, 256, 256>}, {transform_indices = @transform_1, window_bounds = array<i64: 1, 256, 4>}, {transform_indices = @transform_2, window_bounds = array<i64: 1, 256, 256>}]} {
    %c0 = arith.constant 0 : index
    %c0_0 = arith.constant 0 : index
    %c0_1 = arith.constant 0 : index
    %0 = vector.load %arg1[%c0, %c0_0, %c0_1] : memref<1x256x256xf32, #tpu.memory_space<vmem>>, vector<1x256x256xf32>
    %1 = vector.shape_cast %0 : vector<1x256x256xf32> to vector<256x256xf32>
    %c0_2 = arith.constant 0 : index
    %c0_3 = arith.constant 0 : index
    %c0_4 = arith.constant 0 : index
    %2 = vector.load %arg2[%c0_2, %c0_3, %c0_4] : memref<1x256x4xf32, #tpu.memory_space<vmem>>, vector<1x256x4xf32>
    %3 = vector.shape_cast %2 : vector<1x256x4xf32> to vector<256x4xf32>
    %cst = arith.constant dense<0.000000e+00> : vector<256xf32>
    %4 = vector.multi_reduction <add>, %1, %cst [1] : vector<256x256xf32> to vector<256xf32>
    %5 = vector.shape_cast %4 : vector<256xf32> to vector<256x1xf32>
    %6 = arith.mulf %1, %1 : vector<256x256xf32>
    %cst_5 = arith.constant dense<0.000000e+00> : vector<256xf32>
    %7 = vector.multi_reduction <add>, %6, %cst_5 [1] : vector<256x256xf32> to vector<256xf32>
    %8 = vector.shape_cast %7 : vector<256xf32> to vector<256x1xf32>
    %cst_6 = arith.constant 3.906250e-03 : f32
    %9 = vector.broadcast %cst_6 : f32 to vector<256x1xf32>
    %10 = arith.mulf %5, %9 : vector<256x1xf32>
    %11 = arith.mulf %5, %10 : vector<256x1xf32>
    %12 = arith.subf %8, %11 : vector<256x1xf32>
    %cst_7 = arith.constant 0.00392156886 : f32
    %13 = vector.broadcast %cst_7 : f32 to vector<256x1xf32>
    %14 = arith.mulf %12, %13 : vector<256x1xf32>
    %cst_8 = arith.constant 9.99999974E-6 : f32
    %15 = vector.broadcast %cst_8 : f32 to vector<256x1xf32>
    %16 = arith.addf %14, %15 : vector<256x1xf32>
    %17 = math.rsqrt %16 : vector<256x1xf32>
    %18 = vector.shape_cast %5 : vector<256x1xf32> to vector<1x256x1xf32>
    %cst_9 = arith.constant dense<0.000000e+00> : vector<1xf32>
    %19 = vector.multi_reduction <add>, %18, %cst_9 [1, 2] : vector<1x256x1xf32> to vector<1xf32>
    %20 = vector.shape_cast %19 : vector<1xf32> to vector<1x1x1xf32>
    %21 = vector.extract %20[0, 0, 0] : f32 from vector<1x1x1xf32>
    %22 = vector.shape_cast %8 : vector<256x1xf32> to vector<1x256x1xf32>
    %cst_10 = arith.constant dense<0.000000e+00> : vector<1xf32>
    %23 = vector.multi_reduction <add>, %22, %cst_10 [1, 2] : vector<1x256x1xf32> to vector<1xf32>
    %24 = vector.shape_cast %23 : vector<1xf32> to vector<1x1x1xf32>
    %25 = vector.extract %24[0, 0, 0] : f32 from vector<1x1x1xf32>
    %cst_11 = arith.constant 1.52587891E-5 : f32
    %26 = arith.mulf %21, %cst_11 : f32
    %27 = arith.mulf %21, %26 : f32
    %28 = arith.subf %25, %27 : f32
    %cst_12 = arith.constant 1.52590219E-5 : f32
    %29 = arith.mulf %28, %cst_12 : f32
    %cst_13 = arith.constant 9.99999974E-6 : f32
    %30 = arith.addf %29, %cst_13 : f32
    %31 = math.rsqrt %30 : f32
    %32 = vector.extract_strided_slice %3 {offsets = [0, 0], sizes = [256, 1], strides = [1, 1]} : vector<256x4xf32> to vector<256x1xf32>
    %33 = vector.extract_strided_slice %3 {offsets = [0, 1], sizes = [256, 1], strides = [1, 1]} : vector<256x4xf32> to vector<256x1xf32>
    %34 = vector.extract_strided_slice %3 {offsets = [0, 2], sizes = [256, 1], strides = [1, 1]} : vector<256x4xf32> to vector<256x1xf32>
    %35 = vector.extract_strided_slice %3 {offsets = [0, 3], sizes = [256, 1], strides = [1, 1]} : vector<256x4xf32> to vector<256x1xf32>
    %36 = arith.mulf %32, %17 : vector<256x1xf32>
    %37 = vector.broadcast %31 : f32 to vector<256x1xf32>
    %38 = arith.mulf %33, %37 : vector<256x1xf32>
    %39 = arith.addf %36, %38 : vector<256x1xf32>
    %40 = arith.mulf %34, %39 : vector<256x1xf32>
    %41 = arith.mulf %32, %10 : vector<256x1xf32>
    %42 = arith.mulf %41, %17 : vector<256x1xf32>
    %43 = vector.broadcast %26 : f32 to vector<256x1xf32>
    %44 = arith.mulf %33, %43 : vector<256x1xf32>
    %45 = vector.broadcast %31 : f32 to vector<256x1xf32>
    %46 = arith.mulf %44, %45 : vector<256x1xf32>
    %47 = arith.addf %42, %46 : vector<256x1xf32>
    %48 = arith.mulf %34, %47 : vector<256x1xf32>
    %49 = arith.subf %35, %48 : vector<256x1xf32>
    %50 = vector.broadcast %40 : vector<256x1xf32> to vector<256x256xf32>
    %51 = arith.mulf %1, %50 : vector<256x256xf32>
    %52 = vector.broadcast %49 : vector<256x1xf32> to vector<256x256xf32>
    %53 = arith.addf %51, %52 : vector<256x256xf32>
    %c0_14 = arith.constant 0 : index
    %c0_15 = arith.constant 0 : index
    %c0_16 = arith.constant 0 : index
    %54 = vector.load %arg3[%c0_14, %c0_15, %c0_16] : memref<1x256x256xf32, #tpu.memory_space<vmem>>, vector<1x256x256xf32>
    %55 = vector.shape_cast %54 : vector<1x256x256xf32> to vector<256x256xf32>
    %56 = vector.shape_cast %53 : vector<256x256xf32> to vector<1x256x256xf32>
    tpu.vector_store %arg3[%c0_14, %c0_15, %c0_16], %56 {strides = array<i32>} : memref<1x256x256xf32, #tpu.memory_space<vmem>>, vector<1x256x256xf32>,
    return
  }
  func.func @transform_0(%arg0: i32) -> (i32, i32, i32) {
    %c0_i32 = arith.constant 0 : i32
    %c0_i32_0 = arith.constant 0 : i32
    %c0_i32_1 = arith.constant 0 : i32
    return %arg0, %c0_i32, %c0_i32_0 : i32, i32, i32
  }
  func.func @transform_1(%arg0: i32) -> (i32, i32, i32) {
    %c0_i32 = arith.constant 0 : i32
    %c0_i32_0 = arith.constant 0 : i32
    %c0_i32_1 = arith.constant 0 : i32
    return %arg0, %c0_i32, %c0_i32_0 : i32, i32, i32
  }
  func.func @transform_2(%arg0: i32) -> (i32, i32, i32) {
    %c0_i32 = arith.constant 0 : i32
    %c0_i32_0 = arith.constant 0 : i32
    %c0_i32_1 = arith.constant 0 : i32
    return %arg0, %c0_i32, %c0_i32_0 : i32, i32, i32
  }
}

</mosaic_0001>

<bundles_post_ra>
// kernel: ada_iln.1
= control target key start
LH: loop header
LB: loop body
LE: loop exit
PB: predicated region body
PF: predicated region fallthrough
CT: control target
= control target key end

     0   :  { %s2663_s9 = smov 0   ;;  %s4817_s0 = inlined_call_operand.vmem [shape: f32[2,256,256], index: 0, kind: input, shape index: {}]   ;;  %s4818_s1 = inlined_call_operand.vmem [shape: f32[2,256,4], index: 1, kind: input, shape index: {}]   ;;  %s4819_s2 = inlined_call_operand.vmem [shape: f32[2,256,256], index: 2, kind: output, shape index: {}]  }
   0x1 LB: > { %s2434_s10 = sadd.s32 4294967295, %s2641_s9   ;;  %p2438_p0 = scmp.ge.s32.totalorder %s2641_s9, 1  ;;  %s2641_s9 = sphi %s2663_s9, %s12_s9  }
   0x2   : > { %p122_p1 = scmp.lt.s32.totalorder %s2641_s9, 3 }
   0x4   : > { %p123_p2 = pnand %p2438_p0, %p122_p1 }
   0x6   : > { %126 = sbr.rel (%p123_p2) target bundleno = 1194 (0x4aa), region = 28 }
   0xb   : > { %p149_p3 = scmp.lt.s32.totalorder %s2434_s10, 1  ;;  %vm708_vm0 = vcmask 7168   ;;  %s2643_s27 = smov 127  }
   0xc   : > { %s2644_s28 = smov 2   ;;  %s2646_s29 = smov 1  }
   0xd   : > { %s5130_s10 = smov (!%p149_p3, %s2434_s10), 1 }
   0xe   : > { %s2447_s11 = sshll.u32 %s5130_s10, 9  ;;  %s2448_s15 = sshll.u32 %s5130_s10, 8 }
   0xf   : > { %s2679_s14 = scalar_lea.vmem %s4817_s0, %s2447_s11  ;;  %s3161_s18 = scalar_lea.vmem %s4818_s1, %s2448_s15 }
  0x10   : > { %v2682_v0 = vld [vmem:[%s2679_s14 + $0x20] sm:$0xff]  ;;  %v2685_v1 = vld [vmem:[%s2679_s14 + $0x28] sm:$0xff]  ;;  %v2696_v5 = vld [vmem:[%s2679_s14 + $0x30] sm:$0xff]  ;;  %s4630_s4 = scalar_lea.vmem %s4819_s2, %s2447_s11 }
  0x11   : > { %v2688_v2 = vld [vmem:[%s2679_s14] sm:$0xff]  ;;  %v266_v3 = vadd.f32 %v2685_v1, %v2682_v0  ;;  %v2693_v4 = vld [vmem:[%s2679_s14 + $0x8] sm:$0xff]  ;;  %v2699_v6 = vld [vmem:[%s2679_s14 + $0x38] sm:$0xff] }
  0x12   : > { %v260_v7 = vadd.f32 %v2693_v4, %v2688_v2  ;;  %v2704_v8 = vld [vmem:[%s2679_s14 + $0x10] sm:$0xff]  ;;  %v2707_v9 = vld [vmem:[%s2679_s14 + $0x18] sm:$0xff]  ;;  %v269_v10 = vadd.f32 %v2699_v6, %v2696_v5  ;;  %v2720_v14 = vld [vmem:[%s2679_s14 + $0x40] sm:$0xff] }
  0x13   : > { %267 = vadd.xlane.f32.xlu1 %v266_v3  ;;  %v263_v11 = vadd.f32 %v2707_v9, %v2704_v8  ;;  %v2714_v12 = vld [vmem:[%s2679_s14 + $0x50] sm:$0xff]  ;;  %v2717_v13 = vld [vmem:[%s2679_s14 + $0x58] sm:$0xff]  ;;  %v2723_v15 = vld [vmem:[%s2679_s14 + $0x48] sm:$0xff] }
  0x14   : > { %261 = vadd.xlane.f32.xlu0 %v260_v7  ;;  %v275_v16 = vadd.f32 %v2717_v13, %v2714_v12  ;;  %v272_v17 = vadd.f32 %v2723_v15, %v2720_v14  ;;  %v2730_v18 = vld [vmem:[%s2679_s14 + $0x70] sm:$0xff]  ;;  %v2733_v19 = vld [vmem:[%s2679_s14 + $0x78] sm:$0xff]  ;;  %v2736_v20 = vld [vmem:[%s2679_s14 + $0x60] sm:$0xff] }
  0x15   : > { %v2739_v21 = vld [vmem:[%s2679_s14 + $0x68] sm:$0xff]  ;;  %v281_v22 = vadd.f32 %v2733_v19, %v2730_v18  ;;  %v2746_v24 = vld [vmem:[%s2679_s14 + $0x90] sm:$0xff]  ;;  %v2749_v25 = vld [vmem:[%s2679_s14 + $0x98] sm:$0xff] }
  0x16   : > { %v278_v23 = vadd.f32 %v2739_v21, %v2736_v20  ;;  %v2752_v26 = vld [vmem:[%s2679_s14 + $0x80] sm:$0xff]  ;;  %v2755_v27 = vld [vmem:[%s2679_s14 + $0x88] sm:$0xff]  ;;  %v287_v28 = vadd.f32 %v2749_v25, %v2746_v24  ;;  %v2762_v30 = vld [vmem:[%s2679_s14 + $0xb0] sm:$0xff] }
  0x17   : > { %270 = vadd.xlane.f32.xlu1 %v269_v10  ;;  %v284_v29 = vadd.f32 %v2755_v27, %v2752_v26  ;;  %v2765_v31 = vld [vmem:[%s2679_s14 + $0xb8] sm:$0xff]  ;;  %v2768_v32 = vld [vmem:[%s2679_s14 + $0xa0] sm:$0xff]  ;;  %v2771_v33 = vld [vmem:[%s2679_s14 + $0xa8] sm:$0xff] }
  0x18   : > { %264 = vadd.xlane.f32.xlu0 %v263_v11  ;;  %v293_v34 = vadd.f32 %v2765_v31, %v2762_v30  ;;  %v290_v35 = vadd.f32 %v2771_v33, %v2768_v32  ;;  %v2778_v36 = vld [vmem:[%s2679_s14 + $0xd0] sm:$0xff]  ;;  %v2781_v37 = vld [vmem:[%s2679_s14 + $0xd8] sm:$0xff]  ;;  %v2784_v38 = vld [vmem:[%s2679_s14 + $0xc0] sm:$0xff] }
  0x19   : > { %v2787_v39 = vld [vmem:[%s2679_s14 + $0xc8] sm:$0xff]  ;;  %v299_v40 = vadd.f32 %v2781_v37, %v2778_v36  ;;  %v2794_v42 = vld [vmem:[%s2679_s14 + $0xf0] sm:$0xff]  ;;  %v2797_v43 = vld [vmem:[%s2679_s14 + $0xf8] sm:$0xff] }
  0x1a   : > { %v296_v41 = vadd.f32 %v2787_v39, %v2784_v38  ;;  %v2800_v44 = vld [vmem:[%s2679_s14 + $0xe0] sm:$0xff]  ;;  %v2803_v45 = vld [vmem:[%s2679_s14 + $0xe8] sm:$0xff]  ;;  %v305_v46 = vadd.f32 %v2797_v43, %v2794_v42  ;;  %v2810_v48 = vld [vmem:[%s2679_s14 + $0x110] sm:$0xff] }
  0x1b   : > { %276 = vadd.xlane.f32.xlu1 %v275_v16  ;;  %v302_v47 = vadd.f32 %v2803_v45, %v2800_v44  ;;  %v2813_v49 = vld [vmem:[%s2679_s14 + $0x118] sm:$0xff]  ;;  %v2816_v50 = vld [vmem:[%s2679_s14 + $0x100] sm:$0xff]  ;;  %v2819_v51 = vld [vmem:[%s2679_s14 + $0x108] sm:$0xff] }
  0x1c   : > { %273 = vadd.xlane.f32.xlu0 %v272_v17  ;;  %v311_v52 = vadd.f32 %v2813_v49, %v2810_v48  ;;  %v308_v53 = vadd.f32 %v2819_v51, %v2816_v50  ;;  %v2826_v54 = vld [vmem:[%s2679_s14 + $0x130] sm:$0xff]  ;;  %v2829_v55 = vld [vmem:[%s2679_s14 + $0x138] sm:$0xff]  ;;  %v2832_v56 = vld [vmem:[%s2679_s14 + $0x120] sm:$0xff] }
  0x1d   : > { %v2835_v57 = vld [vmem:[%s2679_s14 + $0x128] sm:$0xff]  ;;  %v317_v58 = vadd.f32 %v2829_v55, %v2826_v54  ;;  %v2842_v60 = vld [vmem:[%s2679_s14 + $0x150] sm:$0xff]  ;;  %v2845_v61 = vld [vmem:[%s2679_s14 + $0x158] sm:$0xff] }
  0x1e   : > { %v314_v59 = vadd.f32 %v2835_v57, %v2832_v56  ;;  %v2848_v62 = vld [vmem:[%s2679_s14 + $0x140] sm:$0xff]  ;;  %v2851_v63 = vld [vmem:[%s2679_s14 + $0x148] sm:$0xff]  ;;  %v323_v3 = vadd.f32 %v2845_v61, %v2842_v60  ;;  %v2858_v10 = vld [vmem:[%s2679_s14 + $0x170] sm:$0xff] }
  0x1f   : > { %282 = vadd.xlane.f32.xlu1 %v281_v22  ;;  %v320_v7 = vadd.f32 %v2851_v63, %v2848_v62  ;;  %v2861_v11 = vld [vmem:[%s2679_s14 + $0x178] sm:$0xff]  ;;  %v2864_v16 = vld [vmem:[%s2679_s14 + $0x160] sm:$0xff]  ;;  %v2867_v17 = vld [vmem:[%s2679_s14 + $0x168] sm:$0xff] }
  0x20   : > { %279 = vadd.xlane.f32.xlu0 %v278_v23  ;;  %v329_v22 = vadd.f32 %v2861_v11, %v2858_v10  ;;  %v326_v23 = vadd.f32 %v2867_v17, %v2864_v16 }
  0x23   : > { %288 = vadd.xlane.f32.xlu1 %v287_v28  ;;  %v2874_v28 = vld [vmem:[%s2679_s14 + $0x190] sm:$0xff] }
  0x24   : > { %285 = vadd.xlane.f32.xlu0 %v284_v29  ;;  %v2877_v29 = vld [vmem:[%s2679_s14 + $0x198] sm:$0xff] }
  0x27   : > { %294 = vadd.xlane.f32.xlu1 %v293_v34  ;;  %v2880_v34 = vld [vmem:[%s2679_s14 + $0x180] sm:$0xff] }
  0x28   : > { %291 = vadd.xlane.f32.xlu0 %v290_v35  ;;  %v2883_v35 = vld [vmem:[%s2679_s14 + $0x188] sm:$0xff] }
  0x29   : > { %4915 = vst [vmem:[#allocation2_spill] sm:$0xff] %v2883_v35 }
  0x2b   : > { %300 = vadd.xlane.f32.xlu1 %v299_v40  ;;  %v335_v40 = vadd.f32 %v2877_v29, %v2874_v28 }
  0x2c   : > { %297 = vadd.xlane.f32.xlu0 %v296_v41  ;;  %v332_v41 = vadd.f32 %v2883_v35, %v2880_v34 }
  0x2f   : > { %306 = vadd.xlane.f32.xlu1 %v305_v46  ;;  %v2890_v46 = vld [vmem:[%s2679_s14 + $0x1b0] sm:$0xff] }
  0x30   : > { %303 = vadd.xlane.f32.xlu0 %v302_v47  ;;  %4916 = vst [vmem:[#allocation3_spill] sm:$0xff] %v2890_v46  ;;  %v2893_v47 = vld [vmem:[%s2679_s14 + $0x1b8] sm:$0xff] }
  0x31   : > { %4917 = vst [vmem:[#allocation4_spill] sm:$0xff] %v2893_v47 }
  0x33   : > { %312 = vadd.xlane.f32.xlu1 %v311_v52  ;;  %v2896_v52 = vld [vmem:[%s2679_s14 + $0x1a0] sm:$0xff] }
  0x34   : > { %309 = vadd.xlane.f32.xlu0 %v308_v53  ;;  %4918 = vst [vmem:[#allocation5_spill] sm:$0xff] %v2896_v52  ;;  %v2899_v53 = vld [vmem:[%s2679_s14 + $0x1a8] sm:$0xff] }
  0x35   : > { %4919 = vst [vmem:[#allocation6_spill] sm:$0xff] %v2899_v53 }
  0x37   : > { %318 = vadd.xlane.f32.xlu1 %v317_v58  ;;  %v341_v58 = vadd.f32 %v2893_v47, %v2890_v46  ;;  %v2925_v47 = vld [vmem:[%s2679_s14 + $0x1f8] sm:$0xff] }
  0x38   : > { %315 = vadd.xlane.f32.xlu0 %v314_v59  ;;  %v338_v59 = vadd.f32 %v2899_v53, %v2896_v52  ;;  %4923 = vst [vmem:[#allocation10_spill] sm:$0xff] %v2925_v47  ;;  %v2928_v53 = vld [vmem:[%s2679_s14 + $0x1e0] sm:$0xff]  ;;  %v2931_v52 = vld [vmem:[%s2679_s14 + $0x1e8] sm:$0xff] }
  0x39   : > { %4924 = vst [vmem:[#allocation11_spill] sm:$0xff] %v2931_v52 }
  0x3b   : > { %324 = vadd.xlane.f32.xlu1 %v323_v3  ;;  %v2906_v3 = vld [vmem:[%s2679_s14 + $0x1d0] sm:$0xff] }
  0x3c   : > { %321 = vadd.xlane.f32.xlu0 %v320_v7  ;;  %v2909_v7 = vld [vmem:[%s2679_s14 + $0x1d8] sm:$0xff] }
  0x3d   : > { %4920 = vst [vmem:[#allocation7_spill] sm:$0xff] %v2909_v7  ;;  %v347_v35 = vadd.f32 %v2909_v7, %v2906_v3  ;;  %v357_v7 = vmul.f32 %v2693_v4, %v2693_v4  ;;  %v366_v4 = vmul.f32 %v2714_v12, %v2714_v12 }
  0x3f   : > { %330 = vadd.xlane.f32.xlu1 %v329_v22  ;;  %v2912_v22 = vld [vmem:[%s2679_s14 + $0x1c0] sm:$0xff] }
  0x40   : > { %327 = vadd.xlane.f32.xlu0 %v326_v23  ;;  %4921 = vst [vmem:[#allocation8_spill] sm:$0xff] %v2912_v22  ;;  %v2915_v23 = vld [vmem:[%s2679_s14 + $0x1c8] sm:$0xff] }
  0x41   : > { %4922 = vst [vmem:[#allocation9_spill] sm:$0xff] %v2915_v23 }
  0x43   : > { %336 = vadd.xlane.f32.xlu1 %v335_v40  ;;  %v344_v40 = vadd.f32 %v2915_v23, %v2912_v22  ;;  %v350_v23 = vadd.f32 %v2931_v52, %v2928_v53  ;;  %v356_v22 = vmul.f32 %v2688_v2, %v2688_v2  ;;  %v361_v52 = vmul.f32 %v2685_v1, %v2685_v1 }
  0x44   : > { %333 = vadd.xlane.f32.xlu0 %v332_v41  ;;  %v2922_v41 = vld [vmem:[%s2679_s14 + $0x1f0] sm:$0xff]  ;;  %v370_v1 = vmul.f32 %v2730_v18, %v2730_v18 }
  0x45   : > { %v353_v46 = vadd.f32 %v2925_v47, %v2922_v41  ;;  %v362_v47 = vmul.f32 %v2696_v5, %v2696_v5 }
  0x47   : > { %342 = vadd.xlane.f32.xlu1 %v341_v58  ;;  %v358_v58 = vmul.f32 %v2704_v8, %v2704_v8  ;;  %v363_v8 = vmul.f32 %v2699_v6, %v2699_v6  ;;  %v364_v6 = vmul.f32 %v2720_v14, %v2720_v14 }
  0x48   : > { %339 = vadd.xlane.f32.xlu0 %v338_v59  ;;  %v359_v59 = vmul.f32 %v2707_v9, %v2707_v9  ;;  %v420_v9 = vadd.f32 %v357_v7, %v356_v22  ;;  %v365_v7 = vmul.f32 %v2723_v15, %v2723_v15  ;;  %v374_v15 = vmul.f32 %v2746_v24, %v2746_v24 }
  0x49   : > { %v429_v2 = vadd.f32 %v363_v8, %v362_v47  ;;  %v371_v47 = vmul.f32 %v2733_v19, %v2733_v19  ;;  %v375_v22 = vmul.f32 %v2749_v25, %v2749_v25  ;;  %v372_v19 = vmul.f32 %v2752_v26, %v2752_v26 }
  0x4a   : > { %v432_v12 = vadd.f32 %v365_v7, %v364_v6  ;;  %v376_v25 = vmul.f32 %v2768_v32, %v2768_v32  ;;  %v381_v8 = vmul.f32 %v2787_v39, %v2787_v39  ;;  %v390_v39 = vmul.f32 %v2810_v48, %v2810_v48 }
  0x4b   : > { %348 = vadd.xlane.f32.xlu1 %v347_v35  ;;  %v423_v35 = vadd.f32 %v359_v59, %v358_v58  ;;  %v441_v14 = vadd.f32 %v371_v47, %v370_v1  ;;  %v379_v58 = vmul.f32 %v2765_v31, %v2765_v31  ;;  %v377_v59 = vmul.f32 %v2771_v33, %v2771_v33 }
  0x4c   : > { %345 = vadd.xlane.f32.xlu0 %v344_v40  ;;  %v360_v40 = vmul.f32 %v2682_v0, %v2682_v0  ;;  %v380_v31 = vmul.f32 %v2784_v38, %v2784_v38  ;;  %v386_v33 = vmul.f32 %v2794_v42, %v2794_v42  ;;  %v399_v6 = vmul.f32 %v2845_v61, %v2845_v61 }
  0x4d   : > { %v397_v7 = vmul.f32 %v2851_v63, %v2851_v63  ;;  %v400_v61 = vmul.f32 %v2864_v16, %v2864_v16  ;;  %v401_v1 = vmul.f32 %v2867_v17, %v2867_v17  ;;  %v406_v63 = vmul.f32 %v2874_v28, %v2874_v28 }
  0x4e   : > { %v426_v5 = vadd.f32 %v361_v52, %v360_v40  ;;  %v369_v52 = vmul.f32 %v2739_v21, %v2739_v21  ;;  %v378_v21 = vmul.f32 %v2762_v30, %v2762_v30  ;;  %v450_v30 = vadd.f32 %v377_v59, %v376_v25  ;;  %v4932_v59 = vld [vmem:[#allocation9_spill] sm:$0xff] }
  0x4f   : > { %354 = vadd.xlane.f32.xlu1 %v353_v46  ;;  %v367_v46 = vmul.f32 %v2717_v13, %v2717_v13  ;;  %v368_v13 = vmul.f32 %v2736_v20, %v2736_v20  ;;  %v447_v20 = vadd.f32 %v375_v22, %v374_v15  ;;  %v385_v40 = vmul.f32 %v2803_v45, %v2803_v45  ;;  %v4928_v22 = vld [vmem:[#allocation5_spill] sm:$0xff] }
  0x50   : > { %351 = vadd.xlane.f32.xlu0 %v350_v23  ;;  %v373_v23 = vmul.f32 %v2755_v27, %v2755_v27  ;;  %v453_v26 = vadd.f32 %v379_v58, %v378_v21  ;;  %v382_v27 = vmul.f32 %v2778_v36, %v2778_v36  ;;  %v456_v36 = vadd.f32 %v381_v8, %v380_v31 }
  0x51   : > { %v435_v0 = vadd.f32 %v367_v46, %v366_v4  ;;  %v438_v18 = vadd.f32 %v369_v52, %v368_v13  ;;  %v389_v4 = vmul.f32 %v2819_v51, %v2819_v51  ;;  %v394_v45 = vmul.f32 %v2826_v54, %v2826_v54  ;;  %v4926_v52 = vld [vmem:[#allocation3_spill] sm:$0xff] }
  0x52   : > { %v444_v24 = vadd.f32 %v373_v23, %v372_v19  ;;  %v395_v46 = vmul.f32 %v2829_v55, %v2829_v55  ;;  %v398_v51 = vmul.f32 %v2842_v60, %v2842_v60  ;;  %v396_v55 = vmul.f32 %v2848_v62, %v2848_v62 }
  0x53   : > { %424 = vadd.xlane.f32.xlu1 %v423_v35  ;;  %v383_v35 = vmul.f32 %v2781_v37, %v2781_v37  ;;  %v384_v37 = vmul.f32 %v2800_v44, %v2800_v44  ;;  %v407_v47 = vmul.f32 %v2877_v29, %v2877_v29  ;;  %v410_v17 = vmul.f32 %v4926_v52, %v4926_v52 }
  0x54   : > { %421 = vadd.xlane.f32.xlu0 %v420_v9  ;;  %v387_v9 = vmul.f32 %v2797_v43, %v2797_v43  ;;  %v388_v43 = vmul.f32 %v2816_v50, %v2816_v50  ;;  %v477_v50 = vadd.f32 %v395_v46, %v394_v45  ;;  %v480_v60 = vadd.f32 %v397_v7, %v396_v55 }
  0x55   : > { %v459_v32 = vadd.f32 %v383_v35, %v382_v27  ;;  %v462_v42 = vadd.f32 %v385_v40, %v384_v37  ;;  %v495_v16 = vadd.f32 %v407_v47, %v406_v63  ;;  %v408_v29 = vmul.f32 %v4928_v22, %v4928_v22 }
  0x56   : > { %v465_v38 = vadd.f32 %v387_v9, %v386_v33  ;;  %v468_v48 = vadd.f32 %v389_v4, %v388_v43  ;;  %v414_v23 = vmul.f32 %v2906_v3, %v2906_v3  ;;  %v418_v35 = vmul.f32 %v2922_v41, %v2922_v41 }
  0x57   : > { %430 = vadd.xlane.f32.xlu1 %v429_v2  ;;  %v391_v2 = vmul.f32 %v2813_v49, %v2813_v49  ;;  %v392_v49 = vmul.f32 %v2832_v56, %v2832_v56  ;;  %v483_v56 = vadd.f32 %v399_v6, %v398_v51  ;;  %v416_v8 = vmul.f32 %v2928_v53, %v2928_v53 }
  0x58   : > { %427 = vadd.xlane.f32.xlu0 %v426_v5  ;;  %v393_v5 = vmul.f32 %v2835_v57, %v2835_v57  ;;  %v402_v57 = vmul.f32 %v2858_v10, %v2858_v10  ;;  %v486_v10 = vadd.f32 %v401_v1, %v400_v61 }
  0x59   : > { %v471_v44 = vadd.f32 %v391_v2, %v390_v39 }
  0x5a   : > { %v474_v54 = vadd.f32 %v393_v5, %v392_v49 }
  0x5b   : > { %436 = vadd.xlane.f32.xlu1 %v435_v0  ;;  %v403_v0 = vmul.f32 %v2861_v11, %v2861_v11  ;;  %v404_v11 = vmul.f32 %v2880_v34, %v2880_v34 }
  0x5c   : > { %433 = vadd.xlane.f32.xlu0 %v432_v12  ;;  %v4925_v12 = vld [vmem:[#allocation2_spill] sm:$0xff] }
  0x5d   : > { %v489_v62 = vadd.f32 %v403_v0, %v402_v57  ;;  %v405_v13 = vmul.f32 %v4925_v12, %v4925_v12 }
  0x5f   : > { %442 = vadd.xlane.f32.xlu1 %v441_v14  ;;  %v4927_v14 = vld [vmem:[#allocation4_spill] sm:$0xff]  ;;  %v492_v28 = vadd.f32 %v405_v13, %v404_v11 }
  0x60   : > { %439 = vadd.xlane.f32.xlu0 %v438_v18  ;;  %v411_v15 = vmul.f32 %v4927_v14, %v4927_v14  ;;  %v4929_v18 = vld [vmem:[#allocation6_spill] sm:$0xff] }
  0x61   : > { %v409_v19 = vmul.f32 %v4929_v18, %v4929_v18 }
  0x62   : > { %v501_v34 = vadd.f32 %v411_v15, %v410_v17 }
  0x63   : > { %448 = vadd.xlane.f32.xlu1 %v447_v20  ;;  %v4930_v20 = vld [vmem:[#allocation7_spill] sm:$0xff]  ;;  %v498_v58 = vadd.f32 %v409_v19, %v408_v29 }
  0x64   : > { %445 = vadd.xlane.f32.xlu0 %v444_v24  ;;  %v415_v21 = vmul.f32 %v4930_v20, %v4930_v20  ;;  %v4931_v24 = vld [vmem:[#allocation8_spill] sm:$0xff] }
  0x65   : > { %v412_v25 = vmul.f32 %v4931_v24, %v4931_v24 }
  0x66   : > { %v507_v27 = vadd.f32 %v415_v21, %v414_v23 }
  0x67   : > { %454 = vadd.xlane.f32.xlu1 %v453_v26  ;;  %v413_v26 = vmul.f32 %v4932_v59, %v4932_v59 }
  0x68   : > { %451 = vadd.xlane.f32.xlu0 %v450_v30  ;;  %v4933_v30 = vld [vmem:[#allocation10_spill] sm:$0xff] }
  0x69   : > { %v419_v31 = vmul.f32 %v4933_v30, %v4933_v30  ;;  %v504_v3 = vadd.f32 %v413_v26, %v412_v25 }
  0x6b   : > { %460 = vadd.xlane.f32.xlu1 %v459_v32  ;;  %v4934_v32 = vld [vmem:[#allocation11_spill] sm:$0xff]  ;;  %v513_v9 = vadd.f32 %v419_v31, %v418_v35 }
  0x6c   : > { %457 = vadd.xlane.f32.xlu0 %v456_v36  ;;  %v417_v33 = vmul.f32 %v4934_v32, %v4934_v32 }
  0x6e   : > { %v510_v36 = vadd.f32 %v417_v33, %v416_v8 }
  0x6f   : > { %466 = vadd.xlane.f32.xlu1 %v465_v38 }
  0x70   : > { %463 = vadd.xlane.f32.xlu0 %v462_v42 }
  0x73   : > { %472 = vadd.xlane.f32.xlu1 %v471_v44 }
  0x74   : > { %469 = vadd.xlane.f32.xlu0 %v468_v48 }
  0x77   : > { %478 = vadd.xlane.f32.xlu1 %v477_v50 }
  0x78   : > { %475 = vadd.xlane.f32.xlu0 %v474_v54 }
  0x7b   : > { %484 = vadd.xlane.f32.xlu1 %v483_v56 }
  0x7c   : > { %481 = vadd.xlane.f32.xlu0 %v480_v60 }
  0x7f   : > { %490 = vadd.xlane.f32.xlu1 %v489_v62 }
  0x80   : > { %487 = vadd.xlane.f32.xlu0 %v486_v10 }
  0x83   : > { %496 = vadd.xlane.f32.xlu1 %v495_v16 }
  0x84   : > { %493 = vadd.xlane.f32.xlu0 %v492_v28 }
  0x87   : > { %502 = vadd.xlane.f32.xlu1 %v501_v34 }
  0x88   : > { %499 = vadd.xlane.f32.xlu0 %v498_v58 }
  0x8b   : > { %508 = vadd.xlane.f32.xlu1 %v507_v27 }
  0x8c   : > { %505 = vadd.xlane.f32.xlu0 %v504_v3 }
  0x8f   : > { %514 = vadd.xlane.f32.xlu1 %v513_v9 }
  0x90   : > { %511 = vadd.xlane.f32.xlu0 %v510_v36 }
  0x9c   : > { %v3065_v37 = vpop.xlane.xlu1 %267 }
  0x9d   : > { %v3067_v41 = vpop.xlane.xlu0 %261  ;;  %v712_v42 = vsel %vm708_vm0, %v3065_v37, 0.0 }
  0x9e   : > { %v709_v53 = vsel %vm708_vm0, %v3067_v41, 0.0 }
  0xa0   : > { %v3069_v40 = vpop.xlane.xlu1 %270 }
  0xa1   : > { %v3071_v38 = vpop.xlane.xlu0 %264  ;;  %v714_v45 = vsel %vm708_vm0, %v3069_v40, 0.0 }
  0xa2   : > { %v710_v39 = vsel %vm708_vm0, %v3071_v38, 0.0 }
  0xa3   : > { %v711_v2 = vadd.f32 %v710_v39, %v709_v53 }
  0xa4   : > { %v3079_v43 = vpop.xlane.xlu1 %276 }
  0xa5   : > { %v713_v4 = vadd.f32 %v712_v42, %v711_v2  ;;  %v3081_v44 = vpop.xlane.xlu0 %273  ;;  %v718_v51 = vsel %vm708_vm0, %v3079_v43, 0.0  ;;  %v518_v42 = vmul.f32 0.00390625, %v3065_v37 }
  0xa6   : > { %v716_v48 = vsel %vm708_vm0, %v3081_v44, 0.0 }
  0xa7   : > { %v715_v46 = vadd.f32 %v714_v45, %v713_v4 }
  0xa8   : > { %v3087_v49 = vpop.xlane.xlu1 %282 }
  0xa9   : > { %v717_v5 = vadd.f32 %v716_v48, %v715_v46  ;;  %v3089_v50 = vpop.xlane.xlu0 %279  ;;  %v722_v57 = vsel %vm708_vm0, %v3087_v49, 0.0  ;;  %v516_v46 = vmul.f32 0.00390625, %v3067_v41 }
  0xaa   : > { %v720_v54 = vsel %vm708_vm0, %v3089_v50, 0.0 }
  0xab   : > { %v719_v6 = vadd.f32 %v718_v51, %v717_v5  ;;  %v3172_v51 = vld [vmem:[%s3161_s18 + $0x10] sm:$0xff] }
  0xac   : > { %v3095_v55 = vpop.xlane.xlu1 %288  ;;  %4935 = vst [vmem:[#allocation2_spill] sm:$0xff] %v3172_v51 }
  0xad   : > { %v721_v7 = vadd.f32 %v720_v54, %v719_v6  ;;  %v3097_v56 = vpop.xlane.xlu0 %285  ;;  %v726_v63 = vsel %vm708_vm0, %v3095_v55, 0.0  ;;  %v519_v6 = vmul.f32 0.00390625, %v3069_v40 }
  0xae   : > { %v724_v60 = vsel %vm708_vm0, %v3097_v56, 0.0 }
  0xaf   : > { %v723_v0 = vadd.f32 %v722_v57, %v721_v7  ;;  %v3178_v7 = vld [vmem:[%s3161_s18] sm:$0xff]  ;;  %v517_v57 = vmul.f32 0.00390625, %v3071_v38 }
  0xb0   : > { %v3103_v61 = vpop.xlane.xlu1 %294  ;;  %4936 = vst [vmem:[#allocation3_spill] sm:$0xff] %v3178_v7 }
  0xb1   : > { %v725_v1 = vadd.f32 %v724_v60, %v723_v0  ;;  %v3105_v62 = vpop.xlane.xlu0 %291  ;;  %v730_v16 = vsel %vm708_vm0, %v3103_v61, 0.0  ;;  %v3182_v60 = vld [vmem:[%s3161_s18 + $0x18] sm:$0xff] }
  0xb2   : > { %v728_v10 = vsel %vm708_vm0, %v3105_v62, 0.0  ;;  %4937 = vst [vmem:[#allocation4_spill] sm:$0xff] %v3182_v60 }
  0xb3   : > { %v727_v47 = vadd.f32 %v726_v63, %v725_v1  ;;  %v521_v1 = vmul.f32 0.00390625, %v3079_v43 }
  0xb4   : > { %v3111_v11 = vpop.xlane.xlu1 %300 }
  0xb5   : > { %v729_v12 = vadd.f32 %v728_v10, %v727_v47  ;;  %v3113_v13 = vpop.xlane.xlu0 %297  ;;  %v734_v22 = vsel %vm708_vm0, %v3111_v11, 0.0  ;;  %v3190_v10 = vmul.f32 %v518_v42, %v3065_v37  ;;  %v523_v37 = vmul.f32 0.00390625, %v3087_v49 }
  0xb6   : > { %v732_v17 = vsel %vm708_vm0, %v3113_v13, 0.0 }
  0xb7   : > { %v731_v52 = vadd.f32 %v730_v16, %v729_v12  ;;  %v3193_v12 = vld [vmem:[%s3161_s18 + $0x8] sm:$0xff]  ;;  %v3196_v16 = vmul.f32 %v518_v42, %v3172_v51  ;;  %v3248_v42 = vld [vmem:[%s3161_s18 + $0x30] sm:$0xff] }
  0xb8   : > { %v3119_v14 = vpop.xlane.xlu1 %306  ;;  %4938 = vst [vmem:[#allocation5_spill] sm:$0xff] %v3193_v12  ;;  %4942 = vst [vmem:[#allocation9_spill] sm:$0xff] %v3248_v42 }
  0xb9   : > { %v733_v15 = vadd.f32 %v732_v17, %v731_v52  ;;  %v3121_v28 = vpop.xlane.xlu0 %303  ;;  %v738_v20 = vsel %vm708_vm0, %v3119_v14, 0.0  ;;  %v520_v52 = vmul.f32 0.00390625, %v3081_v44 }
  0xba   : > { %v736_v18 = vsel %vm708_vm0, %v3121_v28, 0.0 }
  0xbb   : > { %v735_v29 = vadd.f32 %v734_v22, %v733_v15  ;;  %v3202_v22 = vmul.f32 %v516_v46, %v3067_v41  ;;  %v3220_v41 = vmul.f32 %v519_v6, %v3182_v60 }
  0xbc   : > { %v3127_v19 = vpop.xlane.xlu1 %312 }
  0xbd   : > { %v737_v34 = vadd.f32 %v736_v18, %v735_v29  ;;  %v3129_v23 = vpop.xlane.xlu0 %309  ;;  %v742_v26 = vsel %vm708_vm0, %v3127_v19, 0.0  ;;  %v3205_v29 = vld [vmem:[%s3161_s18 + $0x28] sm:$0xff]  ;;  %v3208_v18 = vmul.f32 %v516_v46, %v3178_v7  ;;  %v526_v46 = vmul.f32 0.00390625, %v3105_v62 }
  0xbe   : > { %v740_v58 = vsel %vm708_vm0, %v3129_v23, 0.0  ;;  %4939 = vst [vmem:[#allocation6_spill] sm:$0xff] %v3205_v29  ;;  %v3296_v7 = vld [vmem:[%s3161_s18 + $0x68] sm:$0xff] }
  0xbf   : > { %v739_v21 = vadd.f32 %v738_v20, %v737_v34  ;;  %v3214_v20 = vmul.f32 %v519_v6, %v3069_v40  ;;  %v3258_v6 = vmul.f32 %v523_v37, %v3087_v49  ;;  %v528_v49 = vmul.f32 0.00390625, %v3113_v13  ;;  %4949 = vst [vmem:[#allocation16_spill] sm:$0xff] %v3296_v7 }
  0xc0   : > { %v3135_v24 = vpop.xlane.xlu1 %318 }
  0xc1   : > { %v741_v25 = vadd.f32 %v740_v58, %v739_v21  ;;  %v3137_v59 = vpop.xlane.xlu0 %315  ;;  %v746_v8 = vsel %vm708_vm0, %v3135_v24, 0.0  ;;  %v3217_v21 = vld [vmem:[%s3161_s18 + $0x20] sm:$0xff]  ;;  %v522_v58 = vmul.f32 0.00390625, %v3089_v50  ;;  %v3329_v60 = vmul.f32 %v528_v49, %v3113_v13 }
  0xc2   : > { %v744_v35 = vsel %vm708_vm0, %v3137_v59, 0.0  ;;  %4940 = vst [vmem:[#allocation7_spill] sm:$0xff] %v3217_v21 }
  0xc3   : > { %v743_v27 = vadd.f32 %v742_v26, %v741_v25  ;;  %v549_v26 = vmul.f32 %v517_v57, %v3071_v38  ;;  %v524_v38 = vmul.f32 0.00390625, %v3097_v56 }
  0xc4   : > { %v3143_v30 = vpop.xlane.xlu1 %324 }
  0xc5   : > { %v745_v31 = vadd.f32 %v744_v35, %v743_v27  ;;  %v3145_v3 = vpop.xlane.xlu0 %321  ;;  %v750_v39 = vsel %vm708_vm0, %v3143_v30, 0.0  ;;  %v3225_v27 = vmul.f32 %v517_v57, %v3193_v12  ;;  %v525_v35 = vmul.f32 0.00390625, %v3095_v55 }
  0xc6   : > { %v748_v33 = vsel %vm708_vm0, %v3145_v3, 0.0  ;;  %v529_v57 = vmul.f32 0.00390625, %v3111_v11 }
  0xc7   : > { %v747_v32 = vadd.f32 %v746_v8, %v745_v31  ;;  %v3233_v8 = vmul.f32 %v521_v1, %v3079_v43  ;;  %v527_v43 = vmul.f32 0.00390625, %v3103_v61 }
  0xc8   : > { %v3151_v9 = vpop.xlane.xlu1 %330 }
  0xc9   : > { %v749_v36 = vadd.f32 %v748_v33, %v747_v32  ;;  %v3154_v53 = vpop.xlane.xlu0 %327  ;;  %v754_v54 = vsel %vm708_vm0, %v3151_v9, 0.0  ;;  %v3236_v32 = vld [vmem:[%s3161_s18 + $0x38] sm:$0xff]  ;;  %v3239_v33 = vmul.f32 %v521_v1, %v3205_v29  ;;  %v3268_v1 = vmul.f32 %v522_v58, %v3089_v50 }
  0xca   : > { %v752_v4 = vsel %vm708_vm0, %v3154_v53, 0.0  ;;  %4941 = vst [vmem:[#allocation8_spill] sm:$0xff] %v3236_v32  ;;  %v3288_v50 = vmul.f32 %v522_v58, %v3248_v42  ;;  %v3307_v58 = vmul.f32 %v527_v43, %v3103_v61  ;;  %v530_v61 = vmul.f32 0.00390625, %v3121_v28 }
  0xcb   : > { %v751_v2 = vadd.f32 %v750_v39, %v749_v36 }
  0xcc   : > { %v3166_v45 = vpop.xlane.xlu1 %336 }
  0xcd   : > { %v753_v48 = vadd.f32 %v752_v4, %v751_v2  ;;  %v3169_v5 = vpop.xlane.xlu0 %333  ;;  %v758_v34 = vsel %vm708_vm0, %v3166_v45, 0.0  ;;  %v3245_v2 = vmul.f32 %v520_v52, %v3081_v44  ;;  %v3251_v4 = vmul.f32 %v520_v52, %v3217_v21  ;;  %v3264_v44 = vld [vmem:[%s3161_s18 + $0x48] sm:$0xff] }
  0xce   : > { %v756_v63 = vsel %vm708_vm0, %v3169_v5, 0.0  ;;  %4944 = vst [vmem:[#allocation11_spill] sm:$0xff] %v3264_v44  ;;  %v3274_v52 = vmul.f32 %v523_v37, %v3236_v32  ;;  %v3293_v37 = vmul.f32 %v524_v38, %v3097_v56  ;;  %v3313_v56 = vld [vmem:[%s3161_s18 + $0x60] sm:$0xff] }
  0xcf   : > { %v755_v0 = vadd.f32 %v754_v54, %v753_v48  ;;  %v3261_v54 = vld [vmem:[%s3161_s18 + $0x40] sm:$0xff]  ;;  %4950 = vst [vmem:[#allocation17_spill] sm:$0xff] %v3313_v56  ;;  %v3342_v21 = vmul.f32 %v528_v49, %v3313_v56  ;;  %v532_v49 = vmul.f32 0.00390625, %v3129_v23 }
  0xd0   : > { %v3187_v47 = vpop.xlane.xlu1 %342  ;;  %4943 = vst [vmem:[#allocation10_spill] sm:$0xff] %v3261_v54  ;;  %v3299_v32 = vmul.f32 %v524_v38, %v3261_v54  ;;  %v531_v38 = vmul.f32 0.00390625, %v3119_v14 }
  0xd1   : > { %v757_v17 = vadd.f32 %v756_v63, %v755_v0  ;;  %v3199_v15 = vpop.xlane.xlu0 %339  ;;  %v762_v48 = vsel %vm708_vm0, %v3187_v47, 0.0  ;;  %v3271_v63 = vld [vmem:[%s3161_s18 + $0x58] sm:$0xff] }
  0xd2   : > { %v760_v40 = vsel %vm708_vm0, %v3199_v15, 0.0  ;;  %4945 = vst [vmem:[#allocation12_spill] sm:$0xff] %v3271_v63 }
  0xd3   : > { %v759_v25 = vadd.f32 %v758_v34, %v757_v17 }
  0xd4   : > { %v3230_v31 = vpop.xlane.xlu1 %348 }
  0xd5   : > { %v761_v36 = vadd.f32 %v760_v40, %v759_v25  ;;  %v3242_v39 = vpop.xlane.xlu0 %345  ;;  %v3282_v25 = vmul.f32 %v525_v35, %v3095_v55  ;;  %v3285_v40 = vld [vmem:[%s3161_s18 + $0x50] sm:$0xff]  ;;  %v3302_v55 = vmul.f32 %v525_v35, %v3264_v44  ;;  %v766_v29 = vsel %vm708_vm0, %v3230_v31, 0.0 }
  0xd6   : > { %v764_v17 = vsel %vm708_vm0, %v3242_v39, 0.0  ;;  %4947 = vst [vmem:[#allocation14_spill] sm:$0xff] %v3285_v40  ;;  %v3320_v35 = vmul.f32 %v529_v57, %v3111_v11  ;;  %v3323_v44 = vmul.f32 %v526_v46, %v3285_v40  ;;  %v533_v11 = vmul.f32 0.00390625, %v3127_v19  ;;  %v3339_v40 = vld [vmem:[%s3161_s18 + $0x70] sm:$0xff] }
  0xd7   : > { %v763_v0 = vadd.f32 %v762_v48, %v761_v36  ;;  %4952 = vst [vmem:[#allocation19_spill] sm:$0xff] %v3339_v40  ;;  %v3363_v56 = vmul.f32 %v530_v61, %v3339_v40  ;;  %v3384_v40 = vld [vmem:[%s3161_s18 + $0x98] sm:$0xff] }
  0xd8   : > { %v3279_v34 = vpop.xlane.xlu1 %354  ;;  %4954 = vst [vmem:[#allocation21_spill] sm:$0xff] %v3384_v40 }
  0xd9   : > { %4946 = vst [vmem:[#allocation13_spill] sm:$0xff] %v3279_v34  ;;  %v765_v36 = vadd.f32 %v764_v17, %v763_v0  ;;  %v3290_v48 = vpop.xlane.xlu0 %351  ;;  %v3310_v0 = vmul.f32 %v526_v46, %v3105_v62  ;;  %v3316_v17 = vmul.f32 %v527_v43, %v3271_v63  ;;  %v3332_v43 = vld [vmem:[%s3161_s18 + $0x78] sm:$0xff]  ;;  %v3335_v63 = vmul.f32 %v529_v57, %v3296_v7 }
  0xda   : > { %4948 = vst [vmem:[#allocation15_spill] sm:$0xff] %v3290_v48  ;;  %v768_v62 = vsel %vm708_vm0, %v3290_v48, 0.0  ;;  %4951 = vst [vmem:[#allocation18_spill] sm:$0xff] %v3332_v43  ;;  %v770_v57 = vsel %vm708_vm0, %v3279_v34, 0.0 }
  0xdb   : > { %v767_v54 = vadd.f32 %v766_v29, %v765_v36 }
  0xdc   : > { %v425_v42 = vpop.xlane.xlu1 %424 }
  0xdd   : > { %v581_v29 = vsub.f32 %v425_v42, %v549_v26  ;;  %v422_v36 = vpop.xlane.xlu0 %421  ;;  %v769_v46 = vadd.f32 %v768_v62, %v767_v54  ;;  %v782_v12 = vsel %vm708_vm0, %v425_v42, 0.0  ;;  %v3350_v26 = vmul.f32 %v531_v38, %v3119_v14 }
  0xde   : > { %v580_v13 = vsub.f32 %v422_v36, %v3202_v22  ;;  %v781_v51 = vsel %vm708_vm0, %v422_v36, 0.0  ;;  %v3353_v54 = vmul.f32 %v531_v38, %v3332_v43  ;;  %v3357_v22 = vmul.f32 %v530_v61, %v3121_v28  ;;  %v3360_v36 = vld [vmem:[%s3161_s18 + $0x88] sm:$0xff] }
  0xdf   : > { %v613_v7 = vmul.f32 0.003921569, %v581_v29  ;;  %v771_v48 = vadd.f32 %v770_v57, %v769_v46  ;;  %v783_v46 = vadd.f32 %v782_v12, %v781_v51  ;;  %v3367_v57 = vmul.f32 %v533_v11, %v3127_v19 }
  0xe0   : > { %4953 = vst [vmem:[#allocation20_spill] sm:$0xff] %v3353_v54  ;;  %v612_v62 = vmul.f32 0.003921569, %v580_v13  ;;  %v431_v42 = vpop.xlane.xlu1 %430  ;;  %v3373_v54 = vld [vmem:[%s3161_s18 + $0x80] sm:$0xff]  ;;  %v3376_v12 = vmul.f32 %v533_v11, %v3360_v36  ;;  %v3380_v61 = vmul.f32 %v532_v49, %v3129_v23  ;;  %v534_v23 = vmul.f32 0.00390625, %v3137_v59 }
  0xe1   : > { %v645_v29 = vadd.f32 1e-05, %v613_v7  ;;  %v583_v14 = vsub.f32 %v431_v42, %v3214_v20  ;;  %772 = vadd.xlane.f32.xlu0 %v771_v48  ;;  %v428_v38 = vpop.xlane.xlu0 %427  ;;  %v786_v13 = vsel %vm708_vm0, %v431_v42, 0.0  ;;  %v535_v20 = vmul.f32 0.00390625, %v3135_v24 }
  0xe2   : > { %v644_v43 = vadd.f32 1e-05, %v612_v62  ;;  %v582_v28 = vsub.f32 %v428_v38, %v3190_v10  ;;  %v784_v34 = vsel %vm708_vm0, %v428_v38, 0.0 }
  0xe3   : > { %2473 = vrsqrt.f32 %v645_v29  ;;  %v615_v7 = vmul.f32 0.003921569, %v583_v14  ;;  %v785_v51 = vadd.f32 %v784_v34, %v783_v46  ;;  %v3387_v34 = vmul.f32 %v532_v49, %v3373_v54 }
  0xe4   : > { %2475 = vrsqrt.f32 %v644_v43  ;;  %v614_v19 = vmul.f32 0.003921569, %v582_v28  ;;  %v437_v48 = vpop.xlane.xlu1 %436  ;;  %v3397_v49 = vmul.f32 %v535_v20, %v3384_v40 }
  0xe5   : > { %v647_v10 = vadd.f32 1e-05, %v615_v7  ;;  %v585_v62 = vsub.f32 %v437_v48, %v3233_v8  ;;  %v787_v42 = vadd.f32 %v786_v13, %v785_v51  ;;  %v434_v38 = vpop.xlane.xlu0 %433  ;;  %v790_v29 = vsel %vm708_vm0, %v437_v48, 0.0 }
  0xe6   : > { %v646_v11 = vadd.f32 1e-05, %v614_v19  ;;  %v584_v43 = vsub.f32 %v434_v38, %v3245_v2  ;;  %v788_v46 = vsel %vm708_vm0, %v434_v38, 0.0  ;;  %v3394_v7 = vmul.f32 %v535_v20, %v3135_v24 }
  0xe7   : > { %2477 = vrsqrt.f32 %v647_v10  ;;  %v617_v14 = vmul.f32 0.003921569, %v585_v62  ;;  %v789_v8 = vadd.f32 %v788_v46, %v787_v42  ;;  %v537_v51 = vmul.f32 0.00390625, %v3143_v30  ;;  %v3402_v10 = vld [vmem:[%s3161_s18 + $0x90] sm:$0xff] }
  0xe8   : > { %2479 = vrsqrt.f32 %v646_v11  ;;  %v616_v13 = vmul.f32 0.003921569, %v584_v43  ;;  %v443_v28 = vpop.xlane.xlu1 %442  ;;  %v3408_v46 = vmul.f32 %v534_v23, %v3137_v59  ;;  %v3422_v59 = vld [vmem:[%s3161_s18 + $0xa0] sm:$0xff] }
  0xe9   : > { %v649_v2 = vadd.f32 1e-05, %v617_v14  ;;  %v587_v19 = vsub.f32 %v443_v28, %v3258_v6  ;;  %v791_v48 = vadd.f32 %v790_v29, %v789_v8  ;;  %v440_v38 = vpop.xlane.xlu0 %439  ;;  %v794_v42 = vsel %vm708_vm0, %v443_v28, 0.0  ;;  %v3412_v8 = vld [vmem:[%s3161_s18 + $0xa8] sm:$0xff]  ;;  %4956 = vst [vmem:[#allocation23_spill] sm:$0xff] %v3422_v59 }
  0xea   : > { %v648_v62 = vadd.f32 1e-05, %v616_v13  ;;  %v586_v11 = vsub.f32 %v440_v38, %v3268_v1  ;;  %v792_v24 = vsel %vm708_vm0, %v440_v38, 0.0  ;;  %v536_v6 = vmul.f32 0.00390625, %v3145_v3  ;;  %4955 = vst [vmem:[#allocation22_spill] sm:$0xff] %v3412_v8 }
  0xeb   : > { %2481 = vrsqrt.f32 %v649_v2  ;;  %v619_v20 = vmul.f32 0.003921569, %v587_v19  ;;  %v793_v43 = vadd.f32 %v792_v24, %v791_v48  ;;  %v3415_v13 = vmul.f32 %v534_v23, %v3402_v10 }
  0xec   : > { %2483 = vrsqrt.f32 %v648_v62  ;;  %v618_v29 = vmul.f32 0.003921569, %v586_v11  ;;  %v449_v14 = vpop.xlane.xlu1 %448  ;;  %v3419_v19 = vmul.f32 %v537_v51, %v3143_v30 }
  0xed   : > { %v651_v1 = vadd.f32 1e-05, %v619_v20  ;;  %v589_v28 = vsub.f32 %v449_v14, %v3282_v25  ;;  %v795_v38 = vadd.f32 %v794_v42, %v793_v43  ;;  %v446_v2 = vpop.xlane.xlu0 %445  ;;  %v798_v62 = vsel %vm708_vm0, %v449_v14, 0.0 }
  0xee   : > { %v650_v48 = vadd.f32 1e-05, %v618_v29  ;;  %v588_v11 = vsub.f32 %v446_v2, %v3293_v37  ;;  %v796_v24 = vsel %vm708_vm0, %v446_v2, 0.0  ;;  %v3428_v20 = vmul.f32 %v537_v51, %v3412_v8 }
  0xef   : > { %2485 = vrsqrt.f32 %v651_v1  ;;  %v621_v23 = vmul.f32 0.003921569, %v589_v28  ;;  %v797_v40 = vadd.f32 %v796_v24, %v795_v38  ;;  %v3433_v43 = vmul.f32 %v536_v6, %v3145_v3 }
  0xf0   : > { %v3430_v25 = vpop.eup %2473  ;;  %2487 = vrsqrt.f32 %v650_v48  ;;  %v620_v30 = vmul.f32 0.003921569, %v588_v11  ;;  %v455_v42 = vpop.xlane.xlu1 %454  ;;  %v3436_v29 = vmul.f32 %v536_v6, %v3422_v59  ;;  %v3441_v14 = vmul.f32 0.00390625, %v3151_v9 }
  0xf1   : > { %4957 = vst [vmem:[#allocation24_spill] sm:$0xff] %v3430_v25  ;;  %v3438_v37 = vpop.eup %2475  ;;  %v653_v1 = vadd.f32 1e-05, %v621_v23  ;;  %v591_v51 = vsub.f32 %v455_v42, %v3307_v58  ;;  %v799_v28 = vadd.f32 %v798_v62, %v797_v40  ;;  %v452_v38 = vpop.xlane.xlu0 %451  ;;  %v802_v48 = vsel %vm708_vm0, %v455_v42, 0.0 }
  0xf2   : > { %4958 = vst [vmem:[#allocation25_spill] sm:$0xff] %v3438_v37  ;;  %v652_v2 = vadd.f32 1e-05, %v620_v30  ;;  %v590_v11 = vsub.f32 %v452_v38, %v3310_v0  ;;  %v800_v3 = vsel %vm708_vm0, %v452_v38, 0.0  ;;  %v3448_v6 = vmul.f32 0.00390625, %v3154_v53 }
  0xf3   : > { %2489 = vrsqrt.f32 %v653_v1  ;;  %v623_v24 = vmul.f32 0.003921569, %v591_v51  ;;  %v801_v8 = vadd.f32 %v800_v3, %v799_v28  ;;  %v3454_v40 = vmul.f32 %v3438_v37, %v3208_v18 }
  0xf4   : > { %v3450_v59 = vpop.eup %2477  ;;  %2491 = vrsqrt.f32 %v652_v2  ;;  %v622_v23 = vmul.f32 0.003921569, %v590_v11  ;;  %v461_v58 = vpop.xlane.xlu1 %460  ;;  %v3458_v0 = vmul.f32 %v3430_v25, %v3225_v27  ;;  %v3465_v28 = vmul.f32 %v3441_v14, %v3151_v9 }
  0xf5   : > { %4959 = vst [vmem:[#allocation26_spill] sm:$0xff] %v3450_v59  ;;  %4960 = vst [vmem:[#allocation27_spill] sm:$0xff] %v3454_v40  ;;  %v3460_v62 = vpop.eup %2479  ;;  %v655_v30 = vadd.f32 1e-05, %v623_v24  ;;  %v593_v42 = vsub.f32 %v461_v58, %v3320_v35  ;;  %v803_v1 = vadd.f32 %v802_v48, %v801_v8  ;;  %v458_v51 = vpop.xlane.xlu0 %457  ;;  %v806_v2 = vsel %vm708_vm0, %v461_v58, 0.0  ;;  %v5036_v40 = vld [vmem:[#allocation3_spill] sm:$0xff] }
  0xf6   : > { %4961 = vst [vmem:[#allocation28_spill] sm:$0xff] %v3458_v0  ;;  %4962 = vst [vmem:[#allocation29_spill] sm:$0xff] %v3460_v62  ;;  %v654_v38 = vadd.f32 1e-05, %v622_v23  ;;  %v592_v18 = vsub.f32 %v458_v51, %v3329_v60  ;;  %v804_v11 = vsel %vm708_vm0, %v458_v51, 0.0  ;;  %v3472_v24 = vmul.f32 %v3448_v6, %v3154_v53 }
  0xf7   : > { %2493 = vrsqrt.f32 %v655_v30  ;;  %v625_v27 = vmul.f32 0.003921569, %v593_v42  ;;  %v805_v3 = vadd.f32 %v804_v11, %v803_v1  ;;  %v3478_v48 = vmul.f32 %v3460_v62, %v3196_v16 }
  0xf8   : > { %v3474_v35 = vpop.eup %2481  ;;  %2495 = vrsqrt.f32 %v654_v38  ;;  %v624_v8 = vmul.f32 0.003921569, %v592_v18  ;;  %v467_v9 = vpop.xlane.xlu1 %466  ;;  %v3482_v60 = vmul.f32 %v3450_v59, %v3220_v41  ;;  %v3487_v58 = vmul.f32 0.00390625, %v3166_v45 }
  0xf9   : > { %4963 = vst [vmem:[#allocation30_spill] sm:$0xff] %v3474_v35  ;;  %4964 = vst [vmem:[#allocation31_spill] sm:$0xff] %v3478_v48  ;;  %v3484_v23 = vpop.eup %2483  ;;  %v657_v53 = vadd.f32 1e-05, %v625_v27  ;;  %v595_v30 = vsub.f32 %v467_v9, %v3350_v26  ;;  %v807_v42 = vadd.f32 %v806_v2, %v805_v3  ;;  %v464_v1 = vpop.xlane.xlu0 %463  ;;  %v810_v38 = vsel %vm708_vm0, %v467_v9, 0.0 }
  0xfa   : > { %4965 = vst [vmem:[#allocation32_spill] sm:$0xff] %v3482_v60  ;;  %4966 = vst [vmem:[#allocation33_spill] sm:$0xff] %v3484_v23  ;;  %v656_v51 = vadd.f32 1e-05, %v624_v8  ;;  %v594_v16 = vsub.f32 %v464_v1, %v3357_v22  ;;  %v808_v18 = vsel %vm708_vm0, %v464_v1, 0.0  ;;  %v3494_v41 = vmul.f32 0.00390625, %v3169_v5 }
  0xfb   : > { %2497 = vrsqrt.f32 %v657_v53  ;;  %v627_v11 = vmul.f32 0.003921569, %v595_v30  ;;  %v809_v60 = vadd.f32 %v808_v18, %v807_v42  ;;  %v3500_v2 = vmul.f32 %v3484_v23, %v3251_v4 }
  0xfc   : > { %v3496_v0 = vpop.eup %2485  ;;  %2499 = vrsqrt.f32 %v656_v51  ;;  %v626_v27 = vmul.f32 0.003921569, %v594_v16  ;;  %v473_v26 = vpop.xlane.xlu1 %472  ;;  %v3504_v22 = vmul.f32 %v3474_v35, %v3239_v33  ;;  %v3511_v42 = vmul.f32 %v3487_v58, %v3166_v45 }
  0xfd   : > { %4967 = vst [vmem:[#allocation34_spill] sm:$0xff] %v3496_v0  ;;  %4968 = vst [vmem:[#allocation35_spill] sm:$0xff] %v3500_v2  ;;  %v3506_v3 = vpop.eup %2487  ;;  %v659_v8 = vadd.f32 1e-05, %v627_v11  ;;  %v597_v9 = vsub.f32 %v473_v26, %v3367_v57  ;;  %v811_v53 = vadd.f32 %v810_v38, %v809_v60  ;;  %v470_v30 = vpop.xlane.xlu0 %469  ;;  %v814_v51 = vsel %vm708_vm0, %v473_v26, 0.0 }
  0xfe   : > { %4969 = vst [vmem:[#allocation36_spill] sm:$0xff] %v3504_v22  ;;  %4970 = vst [vmem:[#allocation37_spill] sm:$0xff] %v3506_v3  ;;  %v658_v1 = vadd.f32 1e-05, %v626_v27  ;;  %v596_v4 = vsub.f32 %v470_v30, %v3380_v61  ;;  %v812_v16 = vsel %vm708_vm0, %v470_v30, 0.0  ;;  %v3518_v11 = vmul.f32 %v3494_v41, %v3169_v5 }
  0xff   : > { %2501 = vrsqrt.f32 %v659_v8  ;;  %v629_v33 = vmul.f32 0.003921569, %v597_v9  ;;  %v813_v18 = vadd.f32 %v812_v16, %v811_v53  ;;  %v3524_v38 = vmul.f32 %v3506_v3, %v3288_v50 }
 0x100   : > { %v3520_v57 = vpop.eup %2489  ;;  %2503 = vrsqrt.f32 %v658_v1  ;;  %v628_v60 = vmul.f32 0.003921569, %v596_v4  ;;  %v479_v45 = vpop.xlane.xlu1 %478  ;;  %v3528_v61 = vmul.f32 %v3496_v0, %v3274_v52  ;;  %v3533_v26 = vmul.f32 0.00390625, %v3187_v47 }
 0x101   : > { %4971 = vst [vmem:[#allocation38_spill] sm:$0xff] %v3520_v57  ;;  %4972 = vst [vmem:[#allocation39_spill] sm:$0xff] %v3524_v38  ;;  %v3530_v27 = vpop.eup %2491  ;;  %v661_v5 = vadd.f32 1e-05, %v629_v33  ;;  %v599_v8 = vsub.f32 %v479_v45, %v3394_v7  ;;  %v815_v9 = vadd.f32 %v814_v51, %v813_v18  ;;  %v476_v53 = vpop.xlane.xlu0 %475  ;;  %v818_v1 = vsel %vm708_vm0, %v479_v45, 0.0 }
 0x102   : > { %4973 = vst [vmem:[#allocation40_spill] sm:$0xff] %v3528_v61  ;;  %4974 = vst [vmem:[#allocation41_spill] sm:$0xff] %v3530_v27  ;;  %v660_v30 = vadd.f32 1e-05, %v628_v60  ;;  %v598_v50 = vsub.f32 %v476_v53, %v3408_v46  ;;  %v816_v4 = vsel %vm708_vm0, %v476_v53, 0.0  ;;  %v3540_v52 = vmul.f32 0.00390625, %v3199_v15 }
 0x103   : > { %2505 = vrsqrt.f32 %v661_v5  ;;  %v631_v16 = vmul.f32 0.003921569, %v599_v8  ;;  %v817_v61 = vadd.f32 %v816_v4, %v815_v9  ;;  %v3546_v51 = vmul.f32 %v3530_v27, %v3299_v32 }
 0x104   : > { %v3542_v22 = vpop.eup %2493  ;;  %2507 = vrsqrt.f32 %v660_v30  ;;  %v630_v33 = vmul.f32 0.003921569, %v598_v50  ;;  %v485_v7 = vpop.xlane.xlu1 %484  ;;  %v3550_v46 = vmul.f32 %v3520_v57, %v3302_v55  ;;  %v3557_v9 = vmul.f32 %v3533_v26, %v3187_v47 }
 0x105   : > { %4975 = vst [vmem:[#allocation42_spill] sm:$0xff] %v3542_v22  ;;  %4976 = vst [vmem:[#allocation43_spill] sm:$0xff] %v3546_v51  ;;  %v3552_v18 = vpop.eup %2495  ;;  %v663_v60 = vadd.f32 1e-05, %v631_v16  ;;  %v601_v45 = vsub.f32 %v485_v7, %v3419_v19  ;;  %v819_v5 = vadd.f32 %v818_v1, %v817_v61  ;;  %v482_v8 = vpop.xlane.xlu0 %481  ;;  %v822_v30 = vsel %vm708_vm0, %v485_v7, 0.0 }
 0x106   : > { %4977 = vst [vmem:[#allocation44_spill] sm:$0xff] %v3550_v46  ;;  %4978 = vst [vmem:[#allocation45_spill] sm:$0xff] %v3552_v18  ;;  %v662_v53 = vadd.f32 1e-05, %v630_v33  ;;  %v600_v32 = vsub.f32 %v482_v8, %v3433_v43  ;;  %v820_v50 = vsel %vm708_vm0, %v482_v8, 0.0  ;;  %v3564_v16 = vmul.f32 %v3540_v52, %v3199_v15 }
 0x107   : > { %2509 = vrsqrt.f32 %v663_v60  ;;  %v633_v55 = vmul.f32 0.003921569, %v601_v45  ;;  %v821_v4 = vadd.f32 %v820_v50, %v819_v5  ;;  %v3570_v1 = vmul.f32 %v3552_v18, %v3323_v44  ;;  %v5046_v18 = vld [vmem:[#allocation22_spill] sm:$0xff] }
 0x108   : > { %v3566_v19 = vpop.eup %2497  ;;  %2511 = vrsqrt.f32 %v662_v53  ;;  %v632_v61 = vmul.f32 0.003921569, %v600_v32  ;;  %v491_v47 = vpop.xlane.xlu1 %490  ;;  %v3574_v43 = vmul.f32 %v3542_v22, %v3316_v17  ;;  %v3579_v7 = vmul.f32 0.00390625, %v3230_v31  ;;  %v5045_v22 = vld [vmem:[#allocation21_spill] sm:$0xff] }
 0x109   : > { %4979 = vst [vmem:[#allocation46_spill] sm:$0xff] %v3566_v19  ;;  %4980 = vst [vmem:[#allocation47_spill] sm:$0xff] %v3570_v1  ;;  %v3576_v33 = vpop.eup %2499  ;;  %v665_v15 = vadd.f32 1e-05, %v633_v55  ;;  %v603_v60 = vsub.f32 %v491_v47, %v3465_v28  ;;  %v823_v45 = vadd.f32 %v822_v30, %v821_v4  ;;  %v488_v5 = vpop.xlane.xlu0 %487  ;;  %v826_v53 = vsel %vm708_vm0, %v491_v47, 0.0 }
 0x10a   : > { %4981 = vst [vmem:[#allocation48_spill] sm:$0xff] %v3574_v43  ;;  %4982 = vst [vmem:[#allocation49_spill] sm:$0xff] %v3576_v33  ;;  %v664_v8 = vadd.f32 1e-05, %v632_v61  ;;  %v602_v44 = vsub.f32 %v488_v5, %v3472_v24  ;;  %v824_v32 = vsel %vm708_vm0, %v488_v5, 0.0  ;;  %v3586_v17 = vmul.f32 0.00390625, %v3242_v39 }
 0x10b   : > { %2513 = vrsqrt.f32 %v665_v15  ;;  %v635_v50 = vmul.f32 0.003921569, %v603_v60  ;;  %v825_v43 = vadd.f32 %v824_v32, %v823_v45  ;;  %v3592_v30 = vmul.f32 %v3576_v33, %v3342_v21 }
 0x10c   : > { %v3588_v46 = vpop.eup %2501  ;;  %2515 = vrsqrt.f32 %v664_v8  ;;  %v634_v55 = vmul.f32 0.003921569, %v602_v44  ;;  %v497_v28 = vpop.xlane.xlu1 %496  ;;  %v3596_v24 = vmul.f32 %v3566_v19, %v3335_v63  ;;  %v577_v45 = vmul.f32 %v3579_v7, %v3230_v31  ;;  %v5044_v19 = vld [vmem:[#allocation23_spill] sm:$0xff] }
 0x10d   : > { %4983 = vst [vmem:[#allocation50_spill] sm:$0xff] %v3588_v46  ;;  %4984 = vst [vmem:[#allocation51_spill] sm:$0xff] %v3592_v30  ;;  %v3598_v4 = vpop.eup %2503  ;;  %v667_v61 = vadd.f32 1e-05, %v635_v50  ;;  %v605_v47 = vsub.f32 %v497_v28, %v3511_v42  ;;  %v827_v15 = vadd.f32 %v826_v53, %v825_v43  ;;  %v494_v60 = vpop.xlane.xlu0 %493  ;;  %v830_v8 = vsel %vm708_vm0, %v497_v28, 0.0  ;;  %v4989_v53 = vld [vmem:[#allocation20_spill] sm:$0xff] }
 0x10e   : > { %4985 = vst [vmem:[#allocation52_spill] sm:$0xff] %v3596_v24  ;;  %4986 = vst [vmem:[#allocation53_spill] sm:$0xff] %v3598_v4  ;;  %v666_v5 = vadd.f32 1e-05, %v634_v55  ;;  %v604_v21 = vsub.f32 %v494_v60, %v3518_v11  ;;  %v828_v44 = vsel %vm708_vm0, %v494_v60, 0.0  ;;  %v576_v50 = vmul.f32 %v3586_v17, %v3242_v39  ;;  %v4992_v28 = vld [vmem:[#allocation13_spill] sm:$0xff] }
 0x10f   : > { %2517 = vrsqrt.f32 %v667_v61  ;;  %v637_v63 = vmul.f32 0.003921569, %v605_v47  ;;  %v829_v32 = vadd.f32 %v828_v44, %v827_v15  ;;  %v3612_v31 = vmul.f32 %v3598_v4, %v3363_v56 }
 0x110   : > { %v3608_v24 = vpop.eup %2505  ;;  %2519 = vrsqrt.f32 %v666_v5  ;;  %v636_v42 = vmul.f32 0.003921569, %v604_v21  ;;  %v503_v43 = vpop.xlane.xlu1 %502  ;;  %v3616_v11 = vmul.f32 %v3588_v46, %v4989_v53  ;;  %v3621_v61 = vmul.f32 0.00390625, %v4992_v28 }
 0x111   : > { %4987 = vst [vmem:[#allocation54_spill] sm:$0xff] %v3608_v24  ;;  %4988 = vst [vmem:[#allocation55_spill] sm:$0xff] %v3612_v31  ;;  %v3618_v55 = vpop.eup %2507  ;;  %v669_v47 = vadd.f32 1e-05, %v637_v63  ;;  %v607_v39 = vsub.f32 %v503_v43, %v3557_v9  ;;  %v831_v15 = vadd.f32 %v830_v8, %v829_v32  ;;  %v500_v60 = vpop.xlane.xlu0 %499  ;;  %v834_v21 = vsel %vm708_vm0, %v503_v43, 0.0  ;;  %v4993_v31 = vld [vmem:[#allocation15_spill] sm:$0xff] }
 0x112   : > { %4990 = vst [vmem:[#allocation20_spill] sm:$0xff] %v3616_v11  ;;  %4991 = vst [vmem:[#allocation56_spill] sm:$0xff] %v3618_v55  ;;  %v668_v5 = vadd.f32 1e-05, %v636_v42  ;;  %v606_v56 = vsub.f32 %v500_v60, %v3564_v16  ;;  %v832_v44 = vsel %vm708_vm0, %v500_v60, 0.0  ;;  %v3628_v53 = vmul.f32 0.00390625, %v4993_v31 }
 0x113   : > { %2521 = vrsqrt.f32 %v669_v47  ;;  %v639_v11 = vmul.f32 0.003921569, %v607_v39  ;;  %v833_v30 = vadd.f32 %v832_v44, %v831_v15  ;;  %v3634_v63 = vmul.f32 %v3618_v55, %v3387_v34  ;;  %v3647_v44 = vld [vmem:[%s3161_s18 + $0xb8] sm:$0xff] }
 0x114   : > { %v3630_v1 = vpop.eup %2509  ;;  %2523 = vrsqrt.f32 %v668_v5  ;;  %v638_v9 = vmul.f32 0.003921569, %v606_v56  ;;  %v509_v8 = vpop.xlane.xlu1 %508  ;;  %v3638_v16 = vmul.f32 %v3608_v24, %v3376_v12  ;;  %v579_v15 = vmul.f32 %v3621_v61, %v4992_v28  ;;  %v3654_v28 = vld [vmem:[%s3161_s18 + $0xb0] sm:$0xff]  ;;  %v5043_v24 = vld [vmem:[#allocation18_spill] sm:$0xff] }
 0x115   : > { %4994 = vst [vmem:[#allocation13_spill] sm:$0xff] %v3630_v1  ;;  %4995 = vst [vmem:[#allocation15_spill] sm:$0xff] %v3634_v63  ;;  %v3640_v32 = vpop.eup %2511  ;;  %v671_v42 = vadd.f32 1e-05, %v639_v11  ;;  %v609_v43 = vsub.f32 %v509_v8, %v577_v45  ;;  %v835_v47 = vadd.f32 %v834_v21, %v833_v30  ;;  %v506_v39 = vpop.xlane.xlu0 %505  ;;  %v838_v5 = vsel %vm708_vm0, %v509_v8, 0.0 }
 0x116   : > { %4996 = vst [vmem:[#allocation57_spill] sm:$0xff] %v3638_v16  ;;  %4997 = vst [vmem:[#allocation58_spill] sm:$0xff] %v3640_v32  ;;  %v670_v60 = vadd.f32 1e-05, %v638_v9  ;;  %v608_v56 = vsub.f32 %v506_v39, %v576_v50  ;;  %v836_v34 = vsel %vm708_vm0, %v506_v39, 0.0  ;;  %v578_v45 = vmul.f32 %v3628_v53, %v4993_v31 }
 0x117   : > { %2525 = vrsqrt.f32 %v671_v42  ;;  %v641_v12 = vmul.f32 0.003921569, %v609_v43  ;;  %v837_v16 = vadd.f32 %v836_v34, %v835_v47  ;;  %v3658_v50 = vmul.f32 %v3640_v32, %v3415_v13 }
 0x118   : > { %v3651_v30 = vpop.eup %2513  ;;  %2527 = vrsqrt.f32 %v670_v60  ;;  %v640_v11 = vmul.f32 0.003921569, %v608_v56  ;;  %v515_v21 = vpop.xlane.xlu1 %514  ;;  %v3662_v9 = vmul.f32 %v3630_v1, %v3397_v49  ;;  %v1269_v39 = vmul.f32 %v3441_v14, %v3647_v44 }
 0x119   : > { %4998 = vst [vmem:[#allocation59_spill] sm:$0xff] %v3651_v30  ;;  %4999 = vst [vmem:[#allocation60_spill] sm:$0xff] %v3658_v50  ;;  %v3664_v8 = vpop.eup %2515  ;;  %v673_v42 = vadd.f32 1e-05, %v641_v12  ;;  %v611_v31 = vsub.f32 %v515_v21, %v579_v15  ;;  %v512_v43 = vpop.xlane.xlu0 %511  ;;  %v839_v47 = vadd.f32 %v838_v5, %v837_v16  ;;  %v842_v34 = vsel %vm708_vm0, %v515_v21, 0.0  ;;  %v3675_v15 = vld [vmem:[%s3161_s18 + $0xc8] sm:$0xff] }
 0x11a   : > { %5000 = vst [vmem:[#allocation61_spill] sm:$0xff] %v3662_v9  ;;  %5001 = vst [vmem:[#allocation62_spill] sm:$0xff] %v3664_v8  ;;  %v672_v60 = vadd.f32 1e-05, %v640_v11  ;;  %v610_v56 = vsub.f32 %v512_v43, %v578_v45  ;;  %v840_v13 = vsel %vm708_vm0, %v512_v43, 0.0  ;;  %v1268_v12 = vmul.f32 %v3448_v6, %v3654_v28  ;;  %v3688_v21 = vld [vmem:[%s3161_s18 + $0xc0] sm:$0xff] }
 0x11b   : > { %2529 = vrsqrt.f32 %v673_v42  ;;  %v643_v49 = vmul.f32 0.003921569, %v611_v31  ;;  %v841_v9 = vadd.f32 %v840_v13, %v839_v47  ;;  %v3679_v14 = vmul.f32 %v3664_v8, %v3436_v29  ;;  %v5042_v8 = vld [vmem:[#allocation16_spill] sm:$0xff] }
 0x11c   : > { %v3672_v50 = vpop.eup %2517  ;;  %2531 = vrsqrt.f32 %v672_v60  ;;  %v642_v16 = vmul.f32 0.003921569, %v610_v56  ;;  %v3683_v5 = vmul.f32 %v3651_v30, %v3428_v20  ;;  %v1271_v20 = vmul.f32 %v3487_v58, %v3675_v15  ;;  %v3708_v60 = vld [vmem:[%s3161_s18 + $0xd0] sm:$0xff] }
 0x11d   : > { %5002 = vst [vmem:[#allocation63_spill] sm:$0xff] %v3672_v50  ;;  %5003 = vst [vmem:[#allocation64_spill] sm:$0xff] %v3679_v14  ;;  %v3685_v45 = vpop.eup %2519  ;;  %v675_v11 = vadd.f32 1e-05, %v643_v49  ;;  %v843_v6 = vadd.f32 %v842_v34, %v841_v9  ;;  %v3691_v42 = vmul.f32 %v3672_v50, %v1269_v39  ;;  %v3701_v9 = vld [vmem:[%s3161_s18 + $0xd8] sm:$0xff]  ;;  %v1270_v47 = vmul.f32 %v3494_v41, %v3688_v21  ;;  %v3721_v49 = vld [vmem:[%s3161_s18 + $0xe8] sm:$0xff] }
 0x11e   : > { %5004 = vst [vmem:[#allocation65_spill] sm:$0xff] %v3683_v5  ;;  %5005 = vst [vmem:[#allocation66_spill] sm:$0xff] %v3685_v45  ;;  %v674_v31 = vadd.f32 1e-05, %v642_v16  ;;  %v3694_v43 = vmul.f32 %v3685_v45, %v1268_v12  ;;  %v1273_v58 = vmul.f32 %v3533_v26, %v3701_v9  ;;  %v1272_v41 = vmul.f32 %v3540_v52, %v3708_v60  ;;  %v3728_v16 = vld [vmem:[%s3161_s18 + $0xe0] sm:$0xff]  ;;  %v5041_v45 = vld [vmem:[#allocation19_spill] sm:$0xff] }
 0x11f   : > { %5006 = vst [vmem:[#allocation67_spill] sm:$0xff] %v3691_v42  ;;  %2533 = vrsqrt.f32 %v675_v11  ;;  %844 = vadd.xlane.f32.xlu1 %v843_v6  ;;  %5009 = vst [vmem:[#allocation70_spill] sm:$0xff] %v3701_v9  ;;  %v1275_v26 = vmul.f32 %v3579_v7, %v3721_v49  ;;  %v1274_v52 = vmul.f32 %v3586_v17, %v3728_v16 }
 0x120   : > { %5007 = vst [vmem:[#allocation68_spill] sm:$0xff] %v3694_v43  ;;  %v3698_v29 = vpop.eup %2521  ;;  %2535 = vrsqrt.f32 %v674_v31  ;;  %5014 = vst [vmem:[#allocation75_spill] sm:$0xff] %v3721_v49 }
 0x121   : > { %5008 = vst [vmem:[#allocation69_spill] sm:$0xff] %v3698_v29  ;;  %v3705_v39 = vpop.eup %2523  ;;  %v3711_v56 = vmul.f32 %v3698_v29, %v1271_v20  ;;  %v3741_v20 = vld [vmem:[%s3161_s18 + $0xf8] sm:$0xff] }
 0x122   : > { %5010 = vst [vmem:[#allocation71_spill] sm:$0xff] %v3705_v39  ;;  %v3714_v13 = vmul.f32 %v3705_v39, %v1270_v47  ;;  %5019 = vst [vmem:[#allocation80_spill] sm:$0xff] %v3741_v20  ;;  %v1277_v7 = vmul.f32 %v3621_v61, %v3741_v20  ;;  %v5040_v39 = vld [vmem:[#allocation12_spill] sm:$0xff] }
 0x123   : > { %5011 = vst [vmem:[#allocation72_spill] sm:$0xff] %v3711_v56  ;;  %v3748_v56 = vld [vmem:[%s3161_s18 + $0xf0] sm:$0xff] }
 0x124   : > { %5012 = vst [vmem:[#allocation73_spill] sm:$0xff] %v3714_v13  ;;  %v3718_v34 = vpop.eup %2525  ;;  %5021 = vst [vmem:[#allocation82_spill] sm:$0xff] %v3748_v56 }
 0x125   : > { %5013 = vst [vmem:[#allocation74_spill] sm:$0xff] %v3718_v34  ;;  %v3725_v12 = vpop.eup %2527  ;;  %v3731_v11 = vmul.f32 %v3718_v34, %v1273_v58 }
 0x126   : > { %5015 = vst [vmem:[#allocation76_spill] sm:$0xff] %v3725_v12  ;;  %v3734_v6 = vmul.f32 %v3725_v12, %v1272_v41  ;;  %v5039_v12 = vld [vmem:[#allocation17_spill] sm:$0xff] }
 0x127   : > { %5016 = vst [vmem:[#allocation77_spill] sm:$0xff] %v3731_v11 }
 0x128   : > { %5017 = vst [vmem:[#allocation78_spill] sm:$0xff] %v3734_v6  ;;  %v3738_v31 = vpop.eup %2529  ;;  %v1276_v6 = vmul.f32 %v3628_v53, %v3748_v56 }
 0x129   : > { %5018 = vst [vmem:[#allocation79_spill] sm:$0xff] %v3738_v31  ;;  %v3745_v47 = vpop.eup %2531  ;;  %v3751_v58 = vmul.f32 %v3738_v31, %v1275_v26 }
 0x12a   : > { %5020 = vst [vmem:[#allocation81_spill] sm:$0xff] %v3745_v47  ;;  %v3754_v41 = vmul.f32 %v3745_v47, %v1274_v52  ;;  %v5038_v47 = vld [vmem:[#allocation11_spill] sm:$0xff] }
 0x12b   : > { %5022 = vst [vmem:[#allocation83_spill] sm:$0xff] %v3751_v58 }
 0x12c   : > { %5023 = vst [vmem:[#allocation84_spill] sm:$0xff] %v3754_v41  ;;  %v3758_v11 = vpop.eup %2533 }
 0x12d   : > { %5024 = vst [vmem:[#allocation85_spill] sm:$0xff] %v3758_v11  ;;  %v3762_v42 = vpop.eup %2535  ;;  %v3765_v17 = vmul.f32 %v3758_v11, %v1277_v7  ;;  %v5032_v7 = vld [vmem:[#allocation9_spill] sm:$0xff] }
 0x12e   : > { %5025 = vst [vmem:[#allocation86_spill] sm:$0xff] %v3762_v42  ;;  %v3768_v13 = vmul.f32 %v3762_v42, %v1276_v6  ;;  %v5037_v42 = vld [vmem:[#allocation14_spill] sm:$0xff] }
 0x12f   : > { %5026 = vst [vmem:[#allocation87_spill] sm:$0xff] %v3765_v17  ;;  %v5035_v17 = vld [vmem:[#allocation8_spill] sm:$0xff] }
 0x130   : > { %5027 = vst [vmem:[#allocation88_spill] sm:$0xff] %v3768_v13 }
 0x16a   : > { %v773_v26 = vpop.xlane.xlu0 %772 }
 0x16b   : > { %v774_v58 = vrot.slane %v773_v26, 4 }
 0x16d   : > { %v775_v52 = vadd.f32 %v774_v58, %v773_v26 }
 0x16f   : > { %v776_v41 = vrot.slane %v775_v52, 2 }
 0x171   : > { %v777_v5 = vadd.f32 %v776_v41, %v775_v52 }
 0x173   : > { %v778_v43 = vrot.slane %v777_v5, 1 }
 0x175   : > { %v779_v61 = vadd.f32 %v778_v43, %v777_v5  ;;  %v5028_v43 = vld [vmem:[#allocation2_spill] sm:$0xff] }
 0x177   : > { %2450 = vpush %v779_v61  ;;  %v5033_v61 = vld [vmem:[#allocation6_spill] sm:$0xff] }
 0x1a8   : > { %v845_v14 = vpop.xlane.xlu1 %844  ;;  %s2451_s19 = spop %2450 }
 0x1a9   : > { %v846_v63 = vrot.slane %v845_v14, 4  ;;  %s853_s20 = smul.f32 1.5258789e-05, %s2451_s19 }
 0x1ab   : > { %v847_v51 = vadd.f32 %v846_v63, %v845_v14  ;;  %s854_s21 = smul.f32 %s2451_s19, %s853_s20  ;;  %v3770_v5 = vstv %s853_s20  ;;  %v5031_v14 = vld [vmem:[#allocation4_spill] sm:$0xff] }
 0x1ac   : > { %v1313_v63 = vmul.f32 %v3770_v5, %v5028_v43  ;;  %v1314_v41 = vmul.f32 %v3770_v5, %v5031_v14  ;;  %v1317_v26 = vmul.f32 %v3770_v5, %v5032_v7  ;;  %v1318_v13 = vmul.f32 %v3770_v5, %v5035_v17 }
 0x1ad   : > { %v848_v53 = vrot.slane %v847_v51, 2  ;;  %v1321_v34 = vmul.f32 %v3770_v5, %v5037_v42  ;;  %v1320_v29 = vmul.f32 %v3770_v5, %v5038_v47  ;;  %v1323_v50 = vmul.f32 %v3770_v5, %v5039_v12 }
 0x1ae   : > { %v1322_v30 = vmul.f32 %v3770_v5, %v5040_v39  ;;  %v1325_v1 = vmul.f32 %v3770_v5, %v5041_v45  ;;  %v1326_v32 = vmul.f32 %v3770_v5, %v5043_v24  ;;  %v1329_v46 = vmul.f32 %v3770_v5, %v3402_v10 }
 0x1af   : > { %v849_v38 = vadd.f32 %v848_v53, %v847_v51  ;;  %v5029_v51 = vld [vmem:[#allocation5_spill] sm:$0xff]  ;;  %v1316_v53 = vmul.f32 %v3770_v5, %v5033_v61  ;;  %v1328_v55 = vmul.f32 %v3770_v5, %v3360_v36  ;;  %v1331_v4 = vmul.f32 %v3770_v5, %v5044_v19 }
 0x1b0   : > { %v1332_v0 = vmul.f32 %v3770_v5, %v5046_v18  ;;  %v1335_v27 = vmul.f32 %v3770_v5, %v3688_v21  ;;  %v1334_v35 = vmul.f32 %v3770_v5, %v3647_v44  ;;  %v1337_v3 = vmul.f32 %v3770_v5, %v3708_v60 }
 0x1b1   : > { %v850_v2 = vrot.slane %v849_v38, 1  ;;  %v1336_v59 = vmul.f32 %v3770_v5, %v3675_v15  ;;  %v1341_v23 = vmul.f32 %v3770_v5, %v3748_v56  ;;  %v1340_v25 = vmul.f32 %v3770_v5, %v3721_v49 }
 0x1b3   : > { %v851_v48 = vadd.f32 %v850_v2, %v849_v38  ;;  %v5030_v2 = vld [vmem:[#allocation7_spill] sm:$0xff] }
 0x1b4   : > { %v1315_v38 = vmul.f32 %v3770_v5, %v5030_v2 }
 0x1b5   : > { %2452 = vpush %v851_v48  ;;  %v1312_v48 = vmul.f32 %v3770_v5, %v5029_v51 }
 0x1e6   : > { %s2453_s22 = spop %2452 }
 0x1e7   : > { %s855_s23 = ssub.f32 %s2453_s22, %s854_s21 }
 0x1e9   : > { %s856_s24 = smul.f32 1.5259022e-05, %s855_s23 }
 0x1eb   : > { %s857_s25 = sadd.f32 1e-05, %s856_s24 }
 0x1ed   : > { %v858_v6 = vstv %s857_s25 }
 0x1ee   : > { %2537 = vrsqrt.f32 %v858_v6  ;;  %v5034_v6 = vld [vmem:[#allocation10_spill] sm:$0xff] }
 0x1fb   : > { %v2538_v58 = vpop.eup %2537 }
 0x1fc   : > { %2454 = vpush %v2538_v58  ;;  %v1319_v58 = vmul.f32 %v3770_v5, %v5034_v6 }
 0x22d   : > { %s2455_s26 = spop %2454 }
 0x22e   : > { %v3782_v52 = vstv %s2455_s26 }
 0x22f   : > { %v895_v11 = vmul.f32 %v3782_v52, %v5029_v51  ;;  %v894_v31 = vmul.f32 %v3782_v52, %v5036_v40  ;;  %v1324_v51 = vmul.f32 %v3770_v5, %v5042_v8  ;;  %v1327_v40 = vmul.f32 %v3770_v5, %v3373_v54 }
 0x230   : > { %v896_v33 = vmul.f32 %v3782_v52, %v5028_v43  ;;  %v898_v57 = vmul.f32 %v3782_v52, %v5030_v2  ;;  %v1339_v43 = vmul.f32 %v3770_v5, %v3728_v16  ;;  %v1338_v2 = vmul.f32 %v3770_v5, %v3701_v9 }
 0x231   : > { %960 = vrot.lane.b32.xlu1 %v895_v11, %s2643_s27  ;;  %958 = vrot.lane.b32.xlu0 %v894_v31, %s2643_s27  ;;  %v1330_v11 = vmul.f32 %v3770_v5, %v5045_v22  ;;  %v1333_v31 = vmul.f32 %v3770_v5, %v3654_v28  ;;  %v897_v62 = vmul.f32 %v3782_v52, %v5031_v14 }
 0x232   : > { %v900_v37 = vmul.f32 %v3782_v52, %v5032_v7  ;;  %v902_v9 = vmul.f32 %v3782_v52, %v5034_v6  ;;  %v901_v56 = vmul.f32 %v3782_v52, %v5035_v17  ;;  %v904_v49 = vmul.f32 %v3782_v52, %v5037_v42 }
 0x233   : > { %v3861_v14 = vmul.f32 %v1313_v63, %v3782_v52  ;;  %v3864_v7 = vmul.f32 %v1312_v48, %v3782_v52  ;;  %v3873_v6 = vmul.f32 %v1317_v26, %v3782_v52  ;;  %v3878_v42 = vmul.f32 %v1316_v53, %v3782_v52 }
 0x234   : > { %v3881_v17 = vmul.f32 %v1319_v58, %v3782_v52  ;;  %v3884_v63 = vmul.f32 %v1318_v13, %v3782_v52  ;;  %v3887_v48 = vmul.f32 %v1321_v34, %v3782_v52  ;;  %v3902_v26 = vmul.f32 %v1324_v51, %v3782_v52 }
 0x235   : > { %962 = vrot.lane.b32.xlu1 %v896_v33, %s2643_s27  ;;  %966 = vrot.lane.b32.xlu0 %v898_v57, %s2643_s27  ;;  %v899_v33 = vmul.f32 %v3782_v52, %v5033_v61  ;;  %v1342_v57 = vmul.f32 %v3770_v5, %v3741_v20  ;;  %v3867_v61 = vmul.f32 %v1315_v38, %v3782_v52 }
 0x236   : > { %v3870_v20 = vmul.f32 %v1314_v41, %v3782_v52  ;;  %v3890_v38 = vmul.f32 %v1320_v29, %v3782_v52  ;;  %v3893_v41 = vmul.f32 %v1323_v50, %v3782_v52  ;;  %v3905_v13 = vmul.f32 %v1327_v40, %v3782_v52  ;;  %v5047_v40 = vld [vmem:[#allocation70_spill] sm:$0xff] }
 0x237   : > { %v3908_v34 = vmul.f32 %v1326_v32, %v3782_v52  ;;  %v3911_v29 = vmul.f32 %v1329_v46, %v3782_v52  ;;  %v3914_v50 = vmul.f32 %v1328_v55, %v3782_v52  ;;  %v3925_v53 = vmul.f32 %v1333_v31, %v3782_v52  ;;  %v5048_v31 = vld [vmem:[#allocation82_spill] sm:$0xff] }
 0x238   : > { %v3928_v32 = vmul.f32 %v1332_v0, %v3782_v52  ;;  %v3931_v46 = vmul.f32 %v1335_v27, %v3782_v52  ;;  %v3934_v55 = vmul.f32 %v1334_v35, %v3782_v52  ;;  %v3940_v58 = vmul.f32 %v1336_v59, %v3782_v52 }
 0x239   : > { %964 = vrot.lane.b32.xlu1 %v897_v62, %s2643_s27  ;;  %970 = vrot.lane.b32.xlu0 %v900_v37, %s2643_s27  ;;  %v3896_v37 = vmul.f32 %v1322_v30, %v3782_v52  ;;  %v3899_v62 = vmul.f32 %v1325_v1, %v3782_v52  ;;  %v3917_v30 = vmul.f32 %v1331_v4, %v3782_v52 }
 0x23a   : > { %v3920_v1 = vmul.f32 %v1330_v11, %v3782_v52  ;;  %v3937_v4 = vmul.f32 %v1337_v3, %v3782_v52  ;;  %v3946_v51 = vmul.f32 %v1338_v2, %v3782_v52  ;;  %v3949_v0 = vmul.f32 %v1341_v23, %v3782_v52  ;;  %v4020_v2 = vld [vmem:[%s3161_s18] sm:$0xff] }
 0x23b   : > { %v3952_v27 = vmul.f32 %v1340_v25, %v3782_v52  ;;  %v3955_v35 = vmul.f32 %v1342_v57, %v3782_v52  ;;  %v903_v59 = vmul.f32 %v3782_v52, %v5038_v47  ;;  %v906_v3 = vmul.f32 %v3782_v52, %v5039_v12  ;;  %v5049_v57 = vld [vmem:[#allocation75_spill] sm:$0xff] }
 0x23c   : > { %v905_v25 = vmul.f32 %v3782_v52, %v5040_v39  ;;  %v908_v23 = vmul.f32 %v3782_v52, %v5041_v45  ;;  %v909_v39 = vmul.f32 %v3782_v52, %v5043_v24  ;;  %v912_v45 = vmul.f32 %v3782_v52, %v3402_v10 }
 0x23d   : > { %968 = vrot.lane.b32.xlu1 %v899_v33, %s2643_s27  ;;  %974 = vrot.lane.b32.xlu0 %v902_v9, %s2643_s27  ;;  %v3943_v9 = vmul.f32 %v1339_v43, %v3782_v52  ;;  %v913_v24 = vmul.f32 %v3782_v52, %v5045_v22  ;;  %v916_v10 = vmul.f32 %v3782_v52, %v3654_v28 }
 0x23e   : > { %v917_v22 = vmul.f32 %v3782_v52, %v3647_v44  ;;  %v920_v12 = vmul.f32 %v3782_v52, %v3708_v60  ;;  %v922_v47 = vmul.f32 %v3782_v52, %v3728_v16  ;;  %v921_v11 = vmul.f32 %v3782_v52, %v5047_v40 }
 0x23f   : > { %v924_v43 = vmul.f32 %v3782_v52, %v5048_v31  ;;  %v1311_v33 = vmul.f32 %v4020_v2, %v3770_v5 }
 0x241   : > { %972 = vrot.lane.b32.xlu1 %v901_v56, %s2643_s27  ;;  %978 = vrot.lane.b32.xlu0 %v904_v49, %s2643_s27  ;;  %v907_v56 = vmul.f32 %v3782_v52, %v5042_v8  ;;  %v910_v49 = vmul.f32 %v3782_v52, %v3373_v54  ;;  %v911_v8 = vmul.f32 %v3782_v52, %v3360_v36 }
 0x242   : > { %v914_v54 = vmul.f32 %v3782_v52, %v5044_v19  ;;  %v915_v36 = vmul.f32 %v3782_v52, %v5046_v18  ;;  %v918_v19 = vmul.f32 %v3782_v52, %v3688_v21  ;;  %v919_v18 = vmul.f32 %v3782_v52, %v3675_v15 }
 0x245   : > { %976 = vrot.lane.b32.xlu1 %v903_v59, %s2643_s27  ;;  %982 = vrot.lane.b32.xlu0 %v906_v3, %s2643_s27  ;;  %v923_v59 = vmul.f32 %v3782_v52, %v5049_v57  ;;  %v1343_v3 = vmul.f32 %v1311_v33, %v3782_v52  ;;  %v5060_v33 = vld [vmem:[#allocation45_spill] sm:$0xff] }
 0x249   : > { %980 = vrot.lane.b32.xlu1 %v905_v25, %s2643_s27  ;;  %986 = vrot.lane.b32.xlu0 %v908_v23, %s2643_s27  ;;  %v5050_v25 = vld [vmem:[#allocation80_spill] sm:$0xff] }
 0x24a   : > { %v925_v23 = vmul.f32 %v3782_v52, %v5050_v25 }
 0x24d   : > { %984 = vrot.lane.b32.xlu1 %v907_v56, %s2643_s27  ;;  %990 = vrot.lane.b32.xlu0 %v910_v49, %s2643_s27 }
 0x251   : > { %988 = vrot.lane.b32.xlu1 %v909_v39, %s2643_s27  ;;  %994 = vrot.lane.b32.xlu0 %v912_v45, %s2643_s27  ;;  %v4126_v39 = vld [vmem:[%s3161_s18 + $0x28] sm:$0xff]  ;;  %v5057_v45 = vld [vmem:[#allocation30_spill] sm:$0xff] }
 0x255   : > { %992 = vrot.lane.b32.xlu1 %v911_v8, %s2643_s27  ;;  %998 = vrot.lane.b32.xlu0 %v914_v54, %s2643_s27  ;;  %v866_v8 = vmul.f32 %v4126_v39, %v5057_v45  ;;  %v4131_v54 = vld [vmem:[%s3161_s18 + $0x40] sm:$0xff] }
 0x259   : > { %996 = vrot.lane.b32.xlu1 %v913_v24, %s2643_s27  ;;  %1002 = vrot.lane.b32.xlu0 %v916_v10, %s2643_s27  ;;  %v5058_v24 = vld [vmem:[#allocation41_spill] sm:$0xff] }
 0x25a   : > { %v869_v10 = vmul.f32 %v4131_v54, %v5058_v24  ;;  %v4186_v24 = vld [vmem:[%s3161_s18 + $0x78] sm:$0xff] }
 0x25d   : > { %1000 = vrot.lane.b32.xlu1 %v915_v36, %s2643_s27  ;;  %1006 = vrot.lane.b32.xlu0 %v918_v19, %s2643_s27 }
 0x261   : > { %1004 = vrot.lane.b32.xlu1 %v917_v22, %s2643_s27  ;;  %1010 = vrot.lane.b32.xlu0 %v920_v12, %s2643_s27 }
 0x265   : > { %1008 = vrot.lane.b32.xlu1 %v919_v18, %s2643_s27  ;;  %1014 = vrot.lane.b32.xlu0 %v922_v47, %s2643_s27  ;;  %v4138_v18 = vld [vmem:[%s3161_s18 + $0x38] sm:$0xff]  ;;  %v5059_v47 = vld [vmem:[#allocation34_spill] sm:$0xff] }
 0x269   : > { %1012 = vrot.lane.b32.xlu1 %v921_v11, %s2643_s27  ;;  %1018 = vrot.lane.b32.xlu0 %v924_v43, %s2643_s27  ;;  %v868_v11 = vmul.f32 %v4138_v18, %v5059_v47  ;;  %v4143_v43 = vld [vmem:[%s3161_s18 + $0x50] sm:$0xff] }
 0x26d   : > { %1016 = vrot.lane.b32.xlu1 %v923_v59, %s2643_s27  ;;  %1407 = vrot.lane.b32.xlu0 %v1343_v3, %s2643_s27  ;;  %v871_v59 = vmul.f32 %v4143_v43, %v5060_v33 }
 0x271   : > { %1020 = vrot.lane.b32.xlu1 %v925_v23, %s2643_s27  ;;  %1411 = vrot.lane.b32.xlu0 %v3861_v14, %s2643_s27 }
 0x275   : > { %1409 = vrot.lane.b32.xlu1 %v3864_v7, %s2643_s27  ;;  %1415 = vrot.lane.b32.xlu0 %v3867_v61, %s2643_s27  ;;  %v5051_v7 = vld [vmem:[#allocation25_spill] sm:$0xff] }
 0x276   : > { %v861_v61 = vmul.f32 %v4020_v2, %v5051_v7 }
 0x279   : > { %1413 = vrot.lane.b32.xlu1 %v3870_v20, %s2643_s27  ;;  %1419 = vrot.lane.b32.xlu0 %v3873_v6, %s2643_s27 }
 0x27d   : > { %1417 = vrot.lane.b32.xlu1 %v3878_v42, %s2643_s27  ;;  %1423 = vrot.lane.b32.xlu0 %v3881_v17, %s2643_s27 }
 0x281   : > { %1421 = vrot.lane.b32.xlu1 %v3884_v63, %s2643_s27  ;;  %1427 = vrot.lane.b32.xlu0 %v3887_v48, %s2643_s27  ;;  %v4093_v63 = vld [vmem:[%s3161_s18 + $0x10] sm:$0xff]  ;;  %v5052_v48 = vld [vmem:[#allocation29_spill] sm:$0xff] }
 0x285   : > { %1425 = vrot.lane.b32.xlu1 %v3890_v38, %s2643_s27  ;;  %1431 = vrot.lane.b32.xlu0 %v3893_v41, %s2643_s27  ;;  %v863_v38 = vmul.f32 %v4093_v63, %v5052_v48 }
 0x289   : > { %1429 = vrot.lane.b32.xlu1 %v3896_v37, %s2643_s27  ;;  %1435 = vrot.lane.b32.xlu0 %v3899_v62, %s2643_s27 }
 0x28d   : > { %1433 = vrot.lane.b32.xlu1 %v3902_v26, %s2643_s27  ;;  %1439 = vrot.lane.b32.xlu0 %v3905_v13, %s2643_s27  ;;  %v4101_v26 = vld [vmem:[%s3161_s18 + $0x8] sm:$0xff]  ;;  %v5053_v13 = vld [vmem:[#allocation24_spill] sm:$0xff] }
 0x291   : > { %1437 = vrot.lane.b32.xlu1 %v3908_v34, %s2643_s27  ;;  %1443 = vrot.lane.b32.xlu0 %v3911_v29, %s2643_s27  ;;  %v862_v34 = vmul.f32 %v4101_v26, %v5053_v13  ;;  %v4106_v29 = vld [vmem:[%s3161_s18 + $0x20] sm:$0xff] }
 0x295   : > { %1441 = vrot.lane.b32.xlu1 %v3914_v50, %s2643_s27  ;;  %1447 = vrot.lane.b32.xlu0 %v3917_v30, %s2643_s27  ;;  %v5054_v50 = vld [vmem:[#allocation33_spill] sm:$0xff] }
 0x296   : > { %v865_v30 = vmul.f32 %v4106_v29, %v5054_v50  ;;  %v5064_v50 = vld [vmem:[#allocation53_spill] sm:$0xff] }
 0x299   : > { %1445 = vrot.lane.b32.xlu1 %v3920_v1, %s2643_s27  ;;  %1451 = vrot.lane.b32.xlu0 %v3925_v53, %s2643_s27 }
 0x29d   : > { %1449 = vrot.lane.b32.xlu1 %v3928_v32, %s2643_s27  ;;  %1455 = vrot.lane.b32.xlu0 %v3931_v46, %s2643_s27 }
 0x2a1   : > { %1453 = vrot.lane.b32.xlu1 %v3934_v55, %s2643_s27  ;;  %1459 = vrot.lane.b32.xlu0 %v3937_v4, %s2643_s27  ;;  %v4114_v55 = vld [vmem:[%s3161_s18 + $0x18] sm:$0xff]  ;;  %v5055_v4 = vld [vmem:[#allocation26_spill] sm:$0xff] }
 0x2a3   : > { %v961_v20 = vpop.permute.xlu1 %960  ;;  %v959_v5 = vpop.permute.xlu0 %958 }
 0x2a4   : > { %v1054_v6 = vadd.f32 %v959_v5, %v861_v61  ;;  %v1055_v1 = vadd.f32 %v961_v20, %v862_v34  ;;  %v4155_v61 = vld [vmem:[%s3161_s18 + $0x60] sm:$0xff]  ;;  %v4167_v34 = vld [vmem:[%s3161_s18 + $0x70] sm:$0xff] }
 0x2a5   : > { %1457 = vrot.lane.b32.xlu1 %v3940_v58, %s2643_s27  ;;  %1463 = vrot.lane.b32.xlu0 %v3943_v9, %s2643_s27  ;;  %v864_v58 = vmul.f32 %v4114_v55, %v5055_v4  ;;  %v4119_v9 = vld [vmem:[%s3161_s18 + $0x30] sm:$0xff]  ;;  %v4174_v4 = vld [vmem:[%s3161_s18 + $0x68] sm:$0xff] }
 0x2a7   : > { %v963_v52 = vpop.permute.xlu1 %962  ;;  %v967_v14 = vpop.permute.xlu0 %966 }
 0x2a8   : > { %v1056_v41 = vadd.f32 %v963_v52, %v863_v38  ;;  %v1058_v53 = vadd.f32 %v967_v14, %v865_v30  ;;  %v4150_v52 = vld [vmem:[%s3161_s18 + $0x48] sm:$0xff]  ;;  %v5061_v14 = vld [vmem:[#allocation38_spill] sm:$0xff]  ;;  %v875_v30 = vmul.f32 %v4167_v34, %v5064_v50 }
 0x2a9   : > { %1461 = vrot.lane.b32.xlu1 %v3946_v51, %s2643_s27  ;;  %1467 = vrot.lane.b32.xlu0 %v3949_v0, %s2643_s27  ;;  %v5056_v51 = vld [vmem:[#allocation37_spill] sm:$0xff]  ;;  %v870_v7 = vmul.f32 %v4150_v52, %v5061_v14  ;;  %v5070_v14 = vld [vmem:[#allocation62_spill] sm:$0xff] }
 0x2aa   : > { %v867_v0 = vmul.f32 %v4119_v9, %v5056_v51 }
 0x2ab   : > { %v965_v42 = vpop.permute.xlu1 %964  ;;  %v971_v17 = vpop.permute.xlu0 %970 }
 0x2ad   : > { %1465 = vrot.lane.b32.xlu1 %v3952_v27, %s2643_s27  ;;  %1118 = vrot.lane.b32.xlu0 %v1054_v6, %s2644_s28  ;;  %v1057_v27 = vadd.f32 %v965_v42, %v864_v58  ;;  %v5062_v6 = vld [vmem:[#allocation49_spill] sm:$0xff]  ;;  %v5065_v58 = vld [vmem:[#allocation46_spill] sm:$0xff] }
 0x2ae   : > { %v873_v42 = vmul.f32 %v4155_v61, %v5062_v6  ;;  %v874_v51 = vmul.f32 %v4174_v4, %v5065_v58 }
 0x2af   : > { %v969_v37 = vpop.permute.xlu1 %968  ;;  %v975_v62 = vpop.permute.xlu0 %974 }
 0x2b0   : > { %v1059_v36 = vadd.f32 %v969_v37, %v866_v8  ;;  %v1062_v19 = vadd.f32 %v975_v62, %v869_v10  ;;  %v4162_v37 = vld [vmem:[%s3161_s18 + $0x58] sm:$0xff]  ;;  %v5063_v62 = vld [vmem:[#allocation42_spill] sm:$0xff] }
 0x2b1   : > { %1469 = vrot.lane.b32.xlu1 %v3955_v35, %s2643_s27  ;;  %1122 = vrot.lane.b32.xlu0 %v1056_v41, %s2644_s28  ;;  %v1060_v35 = vadd.f32 %v971_v17, %v867_v0  ;;  %v872_v13 = vmul.f32 %v4162_v37, %v5063_v62  ;;  %v4179_v0 = vld [vmem:[%s3161_s18 + $0x80] sm:$0xff] }
 0x2b2   : > { %v5067_v10 = vld [vmem:[#allocation50_spill] sm:$0xff] }
 0x2b3   : > { %v973_v32 = vpop.permute.xlu1 %972  ;;  %v979_v46 = vpop.permute.xlu0 %978 }
 0x2b4   : > { %v1061_v3 = vadd.f32 %v973_v32, %v868_v11  ;;  %v1064_v23 = vadd.f32 %v979_v46, %v871_v59 }
 0x2b5   : > { %1120 = vrot.lane.b32.xlu1 %v1055_v1, %s2644_s28  ;;  %1126 = vrot.lane.b32.xlu0 %v1058_v53, %s2644_s28 }
 0x2b7   : > { %v977_v56 = vpop.permute.xlu1 %976  ;;  %v983_v49 = vpop.permute.xlu0 %982 }
 0x2b8   : > { %v1063_v17 = vadd.f32 %v977_v56, %v870_v7  ;;  %v1066_v48 = vadd.f32 %v983_v49, %v873_v42 }
 0x2b9   : > { %1124 = vrot.lane.b32.xlu1 %v1057_v27, %s2644_s28  ;;  %1130 = vrot.lane.b32.xlu0 %v1060_v35, %s2644_s28  ;;  %v5066_v27 = vld [vmem:[#allocation56_spill] sm:$0xff] }
 0x2ba   : > { %v877_v35 = vmul.f32 %v4179_v0, %v5066_v27  ;;  %v5074_v27 = vld [vmem:[#allocation71_spill] sm:$0xff] }
 0x2bb   : > { %v981_v22 = vpop.permute.xlu1 %980  ;;  %v987_v12 = vpop.permute.xlu0 %986 }
 0x2bc   : > { %v1065_v1 = vadd.f32 %v981_v22, %v872_v13  ;;  %v1068_v53 = vadd.f32 %v987_v12, %v875_v30  ;;  %v5068_v22 = vld [vmem:[#allocation58_spill] sm:$0xff] }
 0x2bd   : > { %1128 = vrot.lane.b32.xlu1 %v1059_v36, %s2644_s28  ;;  %1134 = vrot.lane.b32.xlu0 %v1062_v19, %s2644_s28  ;;  %v876_v36 = vmul.f32 %v4186_v24, %v5067_v10  ;;  %v4191_v19 = vld [vmem:[%s3161_s18 + $0x90] sm:$0xff]  ;;  %v5072_v13 = vld [vmem:[#allocation66_spill] sm:$0xff] }
 0x2be   : > { %v879_v12 = vmul.f32 %v4191_v19, %v5068_v22  ;;  %v883_v50 = vmul.f32 %v5072_v13, %v3654_v28  ;;  %v5081_v13 = vld [vmem:[#allocation79_spill] sm:$0xff] }
 0x2bf   : > { %v985_v20 = vpop.permute.xlu1 %984  ;;  %v991_v5 = vpop.permute.xlu0 %990 }
 0x2c0   : > { %v1067_v56 = vadd.f32 %v985_v20, %v874_v51  ;;  %v1070_v49 = vadd.f32 %v991_v5, %v877_v35  ;;  %v4203_v5 = vld [vmem:[%s3161_s18 + $0xa0] sm:$0xff]  ;;  %v885_v35 = vmul.f32 %v5074_v27, %v3688_v21  ;;  %v5084_v27 = vld [vmem:[#allocation31_spill] sm:$0xff] }
 0x2c1   : > { %1132 = vrot.lane.b32.xlu1 %v1061_v3, %s2644_s28  ;;  %1138 = vrot.lane.b32.xlu0 %v1064_v23, %s2644_s28  ;;  %v4198_v3 = vld [vmem:[%s3161_s18 + $0x88] sm:$0xff]  ;;  %v5069_v23 = vld [vmem:[#allocation54_spill] sm:$0xff]  ;;  %v881_v7 = vmul.f32 %v4203_v5, %v5070_v14 }
 0x2c2   : > { %v878_v20 = vmul.f32 %v4198_v3, %v5069_v23  ;;  %v5077_v23 = vld [vmem:[#allocation69_spill] sm:$0xff] }
 0x2c3   : > { %v989_v38 = vpop.permute.xlu1 %988  ;;  %v995_v41 = vpop.permute.xlu0 %994 }
 0x2c4   : > { %v1069_v47 = vadd.f32 %v989_v38, %v876_v36  ;;  %v1072_v11 = vadd.f32 %v995_v41, %v879_v12  ;;  %v4210_v38 = vld [vmem:[%s3161_s18 + $0x98] sm:$0xff]  ;;  %v5076_v36 = vld [vmem:[#allocation76_spill] sm:$0xff] }
 0x2c5   : > { %1136 = vrot.lane.b32.xlu1 %v1063_v17, %s2644_s28  ;;  %1142 = vrot.lane.b32.xlu0 %v1066_v48, %s2644_s28  ;;  %v5071_v41 = vld [vmem:[#allocation13_spill] sm:$0xff]  ;;  %v887_v22 = vmul.f32 %v5076_v36, %v3708_v60 }
 0x2c6   : > { %v880_v62 = vmul.f32 %v4210_v38, %v5071_v41 }
 0x2c7   : > { %v993_v32 = vpop.permute.xlu1 %992  ;;  %v999_v46 = vpop.permute.xlu0 %998 }
 0x2c8   : > { %v1071_v6 = vadd.f32 %v993_v32, %v878_v20  ;;  %v1074_v42 = vadd.f32 %v999_v46, %v881_v7  ;;  %v4219_v32 = vld [vmem:[%s3161_s18 + $0xa8] sm:$0xff] }
 0x2c9   : > { %1140 = vrot.lane.b32.xlu1 %v1065_v1, %s2644_s28  ;;  %1146 = vrot.lane.b32.xlu0 %v1068_v53, %s2644_s28  ;;  %v5073_v46 = vld [vmem:[#allocation59_spill] sm:$0xff] }
 0x2ca   : > { %v882_v51 = vmul.f32 %v4219_v32, %v5073_v46 }
 0x2cb   : > { %v997_v45 = vpop.permute.xlu1 %996  ;;  %v1003_v8 = vpop.permute.xlu0 %1002 }
 0x2cc   : > { %v1073_v30 = vadd.f32 %v997_v45, %v880_v62  ;;  %v1076_v1 = vadd.f32 %v1003_v8, %v883_v50  ;;  %v5075_v45 = vld [vmem:[#allocation63_spill] sm:$0xff]  ;;  %v890_v50 = vmul.f32 %v5081_v13, %v5049_v57 }
 0x2cd   : > { %1144 = vrot.lane.b32.xlu1 %v1067_v56, %s2644_s28  ;;  %1150 = vrot.lane.b32.xlu0 %v1070_v49, %s2644_s28  ;;  %v884_v8 = vmul.f32 %v5075_v45, %v3647_v44 }
 0x2cf   : > { %v1001_v33 = vpop.permute.xlu1 %1000  ;;  %v1007_v59 = vpop.permute.xlu0 %1006 }
 0x2d0   : > { %v1075_v28 = vadd.f32 %v1001_v33, %v882_v51  ;;  %v1078_v56 = vadd.f32 %v1007_v59, %v885_v35  ;;  %v886_v33 = vmul.f32 %v5077_v23, %v3675_v15  ;;  %v5078_v59 = vld [vmem:[#allocation81_spill] sm:$0xff]  ;;  %v5089_v23 = vld [vmem:[#allocation36_spill] sm:$0xff] }
 0x2d1   : > { %1148 = vrot.lane.b32.xlu1 %v1069_v47, %s2644_s28  ;;  %1154 = vrot.lane.b32.xlu0 %v1072_v11, %s2644_s28  ;;  %v889_v20 = vmul.f32 %v5078_v59, %v3728_v16  ;;  %v5090_v59 = vld [vmem:[#allocation43_spill] sm:$0xff] }
 0x2d3   : > { %v1005_v17 = vpop.permute.xlu1 %1004  ;;  %v1011_v48 = vpop.permute.xlu0 %1010 }
 0x2d4   : > { %v1077_v12 = vadd.f32 %v1005_v17, %v884_v8  ;;  %v1080_v21 = vadd.f32 %v1011_v48, %v887_v22  ;;  %v5080_v17 = vld [vmem:[#allocation86_spill] sm:$0xff] }
 0x2d5   : > { %1152 = vrot.lane.b32.xlu1 %v1071_v6, %s2644_s28  ;;  %1158 = vrot.lane.b32.xlu0 %v1074_v42, %s2644_s28  ;;  %v5079_v6 = vld [vmem:[#allocation74_spill] sm:$0xff]  ;;  %v891_v48 = vmul.f32 %v5080_v17, %v5048_v31 }
 0x2d6   : > { %v888_v42 = vmul.f32 %v5079_v6, %v5047_v40  ;;  %v5082_v40 = vld [vmem:[#allocation27_spill] sm:$0xff] }
 0x2d7   : > { %v1009_v53 = vpop.permute.xlu1 %1008  ;;  %v1015_v58 = vpop.permute.xlu0 %1014  ;;  %v5092_v6 = vld [vmem:[#allocation47_spill] sm:$0xff] }
 0x2d8   : > { %v1079_v44 = vadd.f32 %v1009_v53, %v886_v33  ;;  %v1082_v60 = vadd.f32 %v1015_v58, %v889_v20  ;;  %v5083_v58 = vld [vmem:[#allocation85_spill] sm:$0xff] }
 0x2d9   : > { %1156 = vrot.lane.b32.xlu1 %v1073_v30, %s2644_s28  ;;  %1162 = vrot.lane.b32.xlu0 %v1076_v1, %s2644_s28  ;;  %v892_v46 = vmul.f32 %v5083_v58, %v5050_v25  ;;  %v5087_v25 = vld [vmem:[#allocation32_spill] sm:$0xff] }
 0x2db   : > { %v1013_v49 = vpop.permute.xlu1 %1012  ;;  %v1019_v10 = vpop.permute.xlu0 %1018 }
 0x2dc   : > { %v1081_v15 = vadd.f32 %v1013_v49, %v888_v42  ;;  %v1084_v16 = vadd.f32 %v1019_v10, %v891_v48  ;;  %v5086_v10 = vld [vmem:[#allocation35_spill] sm:$0xff] }
 0x2dd   : > { %1160 = vrot.lane.b32.xlu1 %v1075_v28, %s2644_s28  ;;  %1166 = vrot.lane.b32.xlu0 %v1078_v56, %s2644_s28  ;;  %v5085_v56 = vld [vmem:[#allocation28_spill] sm:$0xff] }
 0x2df   : > { %v1017_v47 = vpop.permute.xlu1 %1016  ;;  %v1408_v11 = vpop.permute.xlu0 %1407 }
 0x2e0   : > { %v1083_v30 = vadd.f32 %v1017_v47, %v890_v50  ;;  %v1503_v1 = vadd.f32 %v1408_v11, %v5082_v40 }
 0x2e1   : > { %1164 = vrot.lane.b32.xlu1 %v1077_v12, %s2644_s28  ;;  %1170 = vrot.lane.b32.xlu0 %v1080_v21, %s2644_s28  ;;  %v5088_v12 = vld [vmem:[#allocation39_spill] sm:$0xff] }
 0x2e3   : > { %v1021_v14 = vpop.permute.xlu1 %1020  ;;  %v1412_v7 = vpop.permute.xlu0 %1411 }
 0x2e4   : > { %v1085_v51 = vadd.f32 %v1021_v14, %v892_v46  ;;  %v1505_v35 = vadd.f32 %v1412_v7, %v5084_v27  ;;  %v5091_v14 = vld [vmem:[#allocation40_spill] sm:$0xff]  ;;  %v5098_v27 = vld [vmem:[#allocation15_spill] sm:$0xff] }
 0x2e5   : > { %1168 = vrot.lane.b32.xlu1 %v1079_v44, %s2644_s28  ;;  %1174 = vrot.lane.b32.xlu0 %v1082_v60, %s2644_s28  ;;  %v5097_v46 = vld [vmem:[#allocation52_spill] sm:$0xff] }
 0x2e7   : > { %v1410_v41 = vpop.permute.xlu1 %1409  ;;  %v1416_v62 = vpop.permute.xlu0 %1415 }
 0x2e8   : > { %v1504_v49 = vadd.f32 %v1410_v41, %v5085_v56  ;;  %v1507_v45 = vadd.f32 %v1416_v62, %v5086_v10  ;;  %v5094_v41 = vld [vmem:[#allocation51_spill] sm:$0xff]  ;;  %v5099_v56 = vld [vmem:[#allocation20_spill] sm:$0xff] }
 0x2e9   : > { %1172 = vrot.lane.b32.xlu1 %v1081_v15, %s2644_s28  ;;  %1178 = vrot.lane.b32.xlu0 %v1084_v16, %s2644_s28  ;;  %v5093_v15 = vld [vmem:[#allocation44_spill] sm:$0xff] }
 0x2ea   : > { %v5100_v10 = vld [vmem:[#allocation60_spill] sm:$0xff] }
 0x2eb   : > { %v1414_v53 = vpop.permute.xlu1 %1413  ;;  %v1420_v31 = vpop.permute.xlu0 %1419 }
 0x2ec   : > { %v1506_v22 = vadd.f32 %v1414_v53, %v5087_v25  ;;  %v1509_v21 = vadd.f32 %v1420_v31, %v5088_v12  ;;  %v5101_v25 = vld [vmem:[#allocation57_spill] sm:$0xff]  ;;  %v5102_v12 = vld [vmem:[#allocation64_spill] sm:$0xff] }
 0x2ed   : > { %1176 = vrot.lane.b32.xlu1 %v1083_v30, %s2644_s28  ;;  %1567 = vrot.lane.b32.xlu0 %v1503_v1, %s2644_s28  ;;  %v5095_v30 = vld [vmem:[#allocation48_spill] sm:$0xff]  ;;  %v5096_v1 = vld [vmem:[#allocation55_spill] sm:$0xff] }
 0x2ef   : > { %v1418_v57 = vpop.permute.xlu1 %1417  ;;  %v1424_v28 = vpop.permute.xlu0 %1423 }
 0x2f0   : > { %v1508_v33 = vadd.f32 %v1418_v57, %v5089_v23  ;;  %v1511_v20 = vadd.f32 %v1424_v28, %v5090_v59  ;;  %v5103_v23 = vld [vmem:[#allocation61_spill] sm:$0xff]  ;;  %v5104_v59 = vld [vmem:[#allocation68_spill] sm:$0xff] }
 0x2f1   : > { %1180 = vrot.lane.b32.xlu1 %v1085_v51, %s2644_s28  ;;  %1571 = vrot.lane.b32.xlu0 %v1505_v35, %s2644_s28 }
 0x2f3   : > { %v1422_v8 = vpop.permute.xlu1 %1421  ;;  %v1428_v36 = vpop.permute.xlu0 %1427 }
 0x2f4   : > { %v1510_v7 = vadd.f32 %v1422_v8, %v5091_v14  ;;  %v1513_v42 = vadd.f32 %v1428_v36, %v5092_v6  ;;  %v5105_v14 = vld [vmem:[#allocation65_spill] sm:$0xff] }
 0x2f5   : > { %1569 = vrot.lane.b32.xlu1 %v1504_v49, %s2644_s28  ;;  %1575 = vrot.lane.b32.xlu0 %v1507_v45, %s2644_s28  ;;  %v5106_v6 = vld [vmem:[#allocation73_spill] sm:$0xff] }
 0x2f7   : > { %v1426_v47 = vpop.permute.xlu1 %1425  ;;  %v1432_v11 = vpop.permute.xlu0 %1431 }
 0x2f8   : > { %v1512_v16 = vadd.f32 %v1426_v47, %v5093_v15  ;;  %v1515_v62 = vadd.f32 %v1432_v11, %v5094_v41  ;;  %v5107_v15 = vld [vmem:[#allocation67_spill] sm:$0xff]  ;;  %v5108_v41 = vld [vmem:[#allocation78_spill] sm:$0xff] }
 0x2f9   : > { %1573 = vrot.lane.b32.xlu1 %v1506_v22, %s2644_s28  ;;  %1579 = vrot.lane.b32.xlu0 %v1509_v21, %s2644_s28 }
 0x2fb   : > { %v1430_v44 = vpop.permute.xlu1 %1429  ;;  %v1436_v60 = vpop.permute.xlu0 %1435 }
 0x2fc   : > { %v1514_v40 = vadd.f32 %v1430_v44, %v5095_v30  ;;  %v1517_v53 = vadd.f32 %v1436_v60, %v5096_v1  ;;  %v2645_v30 = vmov 2  }
 0x2fd   : > { %1577 = vrot.lane.b32.xlu1 %v1508_v33, %s2644_s28  ;;  %1583 = vrot.lane.b32.xlu0 %v1511_v20, %s2644_s28 }
 0x2fe   : > { %2469 = vset.pattern.permute.xlu0 %v2645_v30  ;;  %2470 = vset.pattern.permute.xlu1 %v2645_v30 }
 0x2ff   : > { %v1434_v17 = vpop.permute.xlu1 %1433  ;;  %v1440_v48 = vpop.permute.xlu0 %1439 }
 0x300   : > { %v1516_v51 = vadd.f32 %v1434_v17, %v5097_v46  ;;  %v1519_v35 = vadd.f32 %v1440_v48, %v5098_v27 }
 0x301   : > { %1581 = vrot.lane.b32.xlu1 %v1510_v7, %s2644_s28  ;;  %1587 = vrot.lane.b32.xlu0 %v1513_v42, %s2644_s28 }
 0x303   : > { %v1438_v13 = vpop.permute.xlu1 %1437  ;;  %v1444_v50 = vpop.permute.xlu0 %1443 }
 0x304   : > { %v1518_v49 = vadd.f32 %v1438_v13, %v5099_v56  ;;  %v1521_v45 = vadd.f32 %v1444_v50, %v5100_v10 }
 0x305   : > { %1585 = vrot.lane.b32.xlu1 %v1512_v16, %s2644_s28  ;;  %1591 = vrot.lane.b32.xlu0 %v1515_v62, %s2644_s28 }
 0x307   : > { %v1442_v31 = vpop.permute.xlu1 %1441  ;;  %v1448_v58 = vpop.permute.xlu0 %1447 }
 0x308   : > { %v1520_v22 = vadd.f32 %v1442_v31, %v5101_v25  ;;  %v1523_v21 = vadd.f32 %v1448_v58, %v5102_v12 }
 0x309   : > { %1589 = vrot.lane.b32.xlu1 %v1514_v40, %s2644_s28  ;;  %1595 = vrot.lane.b32.xlu0 %v1517_v53, %s2644_s28  ;;  %v5109_v40 = vld [vmem:[#allocation72_spill] sm:$0xff] }
 0x30a   : > { %v5110_v53 = vld [vmem:[#allocation84_spill] sm:$0xff] }
 0x30b   : > { %v1446_v57 = vpop.permute.xlu1 %1445  ;;  %v1452_v28 = vpop.permute.xlu0 %1451 }
 0x30c   : > { %v1522_v33 = vadd.f32 %v1446_v57, %v5103_v23  ;;  %v1525_v20 = vadd.f32 %v1452_v28, %v5104_v59 }
 0x30d   : > { %1593 = vrot.lane.b32.xlu1 %v1516_v51, %s2644_s28  ;;  %1599 = vrot.lane.b32.xlu0 %v1519_v35, %s2644_s28  ;;  %v5111_v51 = vld [vmem:[#allocation77_spill] sm:$0xff]  ;;  %v5112_v35 = vld [vmem:[#allocation88_spill] sm:$0xff] }
 0x30f   : > { %v1450_v8 = vpop.permute.xlu1 %1449  ;;  %v1456_v36 = vpop.permute.xlu0 %1455 }
 0x310   : > { %v1524_v7 = vadd.f32 %v1450_v8, %v5105_v14  ;;  %v1527_v42 = vadd.f32 %v1456_v36, %v5106_v6  ;;  %v5114_v36 = vld [vmem:[#allocation87_spill] sm:$0xff] }
 0x311   : > { %1597 = vrot.lane.b32.xlu1 %v1518_v49, %s2644_s28  ;;  %1603 = vrot.lane.b32.xlu0 %v1521_v45, %s2644_s28  ;;  %v5113_v49 = vld [vmem:[#allocation83_spill] sm:$0xff] }
 0x313   : > { %v1454_v47 = vpop.permute.xlu1 %1453  ;;  %v1460_v11 = vpop.permute.xlu0 %1459 }
 0x314   : > { %v1526_v16 = vadd.f32 %v1454_v47, %v5107_v15  ;;  %v1529_v62 = vadd.f32 %v1460_v11, %v5108_v41 }
 0x315   : > { %1601 = vrot.lane.b32.xlu1 %v1520_v22, %s2644_s28  ;;  %1607 = vrot.lane.b32.xlu0 %v1523_v21, %s2644_s28 }
 0x317   : > { %v1458_v44 = vpop.permute.xlu1 %1457  ;;  %v1464_v60 = vpop.permute.xlu0 %1463 }
 0x318   : > { %v1528_v1 = vadd.f32 %v1458_v44, %v5109_v40  ;;  %v1531_v31 = vadd.f32 %v1464_v60, %v5110_v53 }
 0x319   : > { %1605 = vrot.lane.b32.xlu1 %v1522_v33, %s2644_s28  ;;  %1611 = vrot.lane.b32.xlu0 %v1525_v20, %s2644_s28 }
 0x31b   : > { %v1462_v17 = vpop.permute.xlu1 %1461  ;;  %v1468_v48 = vpop.permute.xlu0 %1467 }
 0x31c   : > { %v1530_v27 = vadd.f32 %v1462_v17, %v5111_v51  ;;  %v1533_v57 = vadd.f32 %v1468_v48, %v5112_v35 }
 0x31d   : > { %1609 = vrot.lane.b32.xlu1 %v1524_v7, %s2644_s28  ;;  %1615 = vrot.lane.b32.xlu0 %v1527_v42, %s2644_s28 }
 0x31f   : > { %v1466_v13 = vpop.permute.xlu1 %1465  ;;  %v4303_v50 = vpop.permute.xlu0 %1118 }
 0x320   : > { %v1532_v10 = vadd.f32 %v1466_v13, %v5113_v49 }
 0x321   : > { %1613 = vrot.lane.b32.xlu1 %v1526_v16, %s2644_s28  ;;  %1619 = vrot.lane.b32.xlu0 %v1529_v62, %s2644_s28 }
 0x323   : > { %v1470_v58 = vpop.permute.xlu1 %1469  ;;  %v4309_v46 = vpop.permute.xlu0 %1122 }
 0x324   : > { %v1534_v25 = vadd.f32 %v1470_v58, %v5114_v36 }
 0x325   : > { %1617 = vrot.lane.b32.xlu1 %v1528_v1, %s2644_s28  ;;  %1623 = vrot.lane.b32.xlu0 %v1531_v31, %s2644_s28 }
 0x327   : > { %v4315_v28 = vpop.permute.xlu1 %1120  ;;  %v4317_v56 = vpop.permute.xlu0 %1126 }
 0x329   : > { %1621 = vrot.lane.b32.xlu1 %v1530_v27, %s2644_s28  ;;  %1627 = vrot.lane.b32.xlu0 %v1533_v57, %s2644_s28 }
 0x32b   : > { %v4322_v45 = vpop.permute.xlu1 %1124  ;;  %v4324_v8 = vpop.permute.xlu0 %1130 }
 0x32d   : > { %1625 = vrot.lane.b32.xlu1 %v1532_v10, %s2644_s28 }
 0x32f   : > { %v4328_v22 = vpop.permute.xlu1 %1128  ;;  %v4330_v12 = vpop.permute.xlu0 %1134 }
 0x331   : > { %1629 = vrot.lane.b32.xlu1 %v1534_v25, %s2644_s28 }
 0x333   : > { %v4333_v21 = vpop.permute.xlu1 %1132  ;;  %v4335_v47 = vpop.permute.xlu0 %1138 }
 0x337   : > { %v4337_v11 = vpop.permute.xlu1 %1136  ;;  %v4339_v23 = vpop.permute.xlu0 %1142 }
 0x33b   : > { %v4341_v33 = vpop.permute.xlu1 %1140  ;;  %v4343_v59 = vpop.permute.xlu0 %1146 }
 0x33f   : > { %v4345_v20 = vpop.permute.xlu1 %1144  ;;  %v4347_v44 = vpop.permute.xlu0 %1150 }
 0x343   : > { %v4349_v60 = vpop.permute.xlu1 %1148  ;;  %v4351_v14 = vpop.permute.xlu0 %1154 }
 0x347   : > { %v4353_v7 = vpop.permute.xlu1 %1152  ;;  %v4355_v6 = vpop.permute.xlu0 %1158 }
 0x34b   : > { %v4357_v42 = vpop.permute.xlu1 %1156  ;;  %v4359_v17 = vpop.permute.xlu0 %1162 }
 0x34f   : > { %v4361_v48 = vpop.permute.xlu1 %1160  ;;  %v4363_v15 = vpop.permute.xlu0 %1166 }
 0x353   : > { %v4365_v16 = vpop.permute.xlu1 %1164  ;;  %v4367_v41 = vpop.permute.xlu0 %1170 }
 0x354   : > { %5115 = vst [vmem:[#allocation2_spill] sm:$0xff] %v4367_v41  ;;  %v4460_v41 = vld [vmem:[%s3161_s18 + $0xf0] sm:$0xff] }
 0x357   : > { %v4369_v62 = vpop.permute.xlu1 %1168  ;;  %v4371_v13 = vpop.permute.xlu0 %1174 }
 0x358   : > { %5116 = vst [vmem:[#allocation5_spill] sm:$0xff] %v4371_v13  ;;  %v4446_v13 = vld [vmem:[%s3161_s18 + $0xc8] sm:$0xff] }
 0x35b   : > { %v4373_v30 = vpop.permute.xlu1 %1172  ;;  %v4375_v40 = vpop.permute.xlu0 %1178 }
 0x35c   : > { %5117 = vst [vmem:[#allocation7_spill] sm:$0xff] %v4375_v40  ;;  %v4436_v40 = vld [vmem:[%s3161_s18 + $0xb8] sm:$0xff] }
 0x35f   : > { %v4377_v1 = vpop.permute.xlu1 %1176  ;;  %v1568_v53 = vpop.permute.xlu0 %1567 }
 0x360   : > { %5118 = vst [vmem:[#allocation4_spill] sm:$0xff] %v4377_v1  ;;  %v1663_v31 = vmul.f32 %v4020_v2, %v1568_v53 }
 0x362   : > { %1727 = vrot.lane.b32.xlu0 %v1663_v31, %s2646_s29 }
 0x363   : > { %v4381_v58 = vpop.permute.xlu1 %1180  ;;  %v1572_v51 = vpop.permute.xlu0 %1571 }
 0x364   : > { %5119 = vst [vmem:[#allocation9_spill] sm:$0xff] %v4381_v58  ;;  %v1665_v27 = vmul.f32 %v4093_v63, %v1572_v51  ;;  %v4450_v58 = vld [vmem:[%s3161_s18 + $0xe0] sm:$0xff] }
 0x365   : > { %5121 = vst [vmem:[#allocation10_spill] sm:$0xff] %v4450_v58 }
 0x366   : > { %1731 = vrot.lane.b32.xlu0 %v1665_v27, %s2646_s29 }
 0x367   : > { %v1570_v35 = vpop.permute.xlu1 %1569  ;;  %v1576_v57 = vpop.permute.xlu0 %1575 }
 0x368   : > { %v1664_v49 = vmul.f32 %v4101_v26, %v1570_v35  ;;  %v1667_v10 = vmul.f32 %v4106_v29, %v1576_v57 }
 0x36a   : > { %1729 = vrot.lane.b32.xlu1 %v1664_v49, %s2646_s29  ;;  %1735 = vrot.lane.b32.xlu0 %v1667_v10, %s2646_s29 }
 0x36b   : > { %v1574_v36 = vpop.permute.xlu1 %1573  ;;  %v1580_v25 = vpop.permute.xlu0 %1579 }
 0x36c   : > { %v1666_v53 = vmul.f32 %v4114_v55, %v1574_v36  ;;  %v1669_v31 = vmul.f32 %v4119_v9, %v1580_v25 }
 0x36e   : > { %1733 = vrot.lane.b32.xlu1 %v1666_v53, %s2646_s29  ;;  %1739 = vrot.lane.b32.xlu0 %v1669_v31, %s2646_s29 }
 0x36f   : > { %v1578_v51 = vpop.permute.xlu1 %1577  ;;  %v1584_v27 = vpop.permute.xlu0 %1583 }
 0x370   : > { %v1668_v35 = vmul.f32 %v4126_v39, %v1578_v51  ;;  %v1671_v57 = vmul.f32 %v4131_v54, %v1584_v27 }
 0x372   : > { %1737 = vrot.lane.b32.xlu1 %v1668_v35, %s2646_s29  ;;  %1743 = vrot.lane.b32.xlu0 %v1671_v57, %s2646_s29 }
 0x373   : > { %v1582_v49 = vpop.permute.xlu1 %1581  ;;  %v1588_v10 = vpop.permute.xlu0 %1587 }
 0x374   : > { %v1670_v36 = vmul.f32 %v4138_v18, %v1582_v49  ;;  %v1673_v25 = vmul.f32 %v4143_v43, %v1588_v10 }
 0x376   : > { %1741 = vrot.lane.b32.xlu1 %v1670_v36, %s2646_s29  ;;  %1747 = vrot.lane.b32.xlu0 %v1673_v25, %s2646_s29 }
 0x377   : > { %v1586_v53 = vpop.permute.xlu1 %1585  ;;  %v1592_v31 = vpop.permute.xlu0 %1591 }
 0x378   : > { %v1672_v51 = vmul.f32 %v4150_v52, %v1586_v53  ;;  %v1675_v27 = vmul.f32 %v4155_v61, %v1592_v31 }
 0x37a   : > { %1745 = vrot.lane.b32.xlu1 %v1672_v51, %s2646_s29  ;;  %1751 = vrot.lane.b32.xlu0 %v1675_v27, %s2646_s29 }
 0x37b   : > { %v1590_v35 = vpop.permute.xlu1 %1589  ;;  %v1596_v57 = vpop.permute.xlu0 %1595 }
 0x37c   : > { %v1674_v49 = vmul.f32 %v4162_v37, %v1590_v35  ;;  %v1677_v10 = vmul.f32 %v4167_v34, %v1596_v57 }
 0x37e   : > { %1749 = vrot.lane.b32.xlu1 %v1674_v49, %s2646_s29  ;;  %1755 = vrot.lane.b32.xlu0 %v1677_v10, %s2646_s29 }
 0x37f   : > { %v1594_v36 = vpop.permute.xlu1 %1593  ;;  %v1600_v25 = vpop.permute.xlu0 %1599 }
 0x380   : > { %v1676_v53 = vmul.f32 %v4174_v4, %v1594_v36  ;;  %v1679_v31 = vmul.f32 %v4179_v0, %v1600_v25 }
 0x382   : > { %1753 = vrot.lane.b32.xlu1 %v1676_v53, %s2646_s29  ;;  %1759 = vrot.lane.b32.xlu0 %v1679_v31, %s2646_s29 }
 0x383   : > { %v1598_v51 = vpop.permute.xlu1 %1597  ;;  %v1604_v27 = vpop.permute.xlu0 %1603 }
 0x384   : > { %v1678_v35 = vmul.f32 %v4186_v24, %v1598_v51  ;;  %v1681_v57 = vmul.f32 %v4191_v19, %v1604_v27  ;;  %v4423_v27 = vld [vmem:[%s3161_s18 + $0xb0] sm:$0xff] }
 0x386   : > { %1757 = vrot.lane.b32.xlu1 %v1678_v35, %s2646_s29  ;;  %1763 = vrot.lane.b32.xlu0 %v1681_v57, %s2646_s29 }
 0x387   : > { %v1602_v49 = vpop.permute.xlu1 %1601  ;;  %v1608_v10 = vpop.permute.xlu0 %1607 }
 0x388   : > { %v1680_v36 = vmul.f32 %v4198_v3, %v1602_v49  ;;  %v1683_v25 = vmul.f32 %v4203_v5, %v1608_v10 }
 0x38a   : > { %1761 = vrot.lane.b32.xlu1 %v1680_v36, %s2646_s29  ;;  %1767 = vrot.lane.b32.xlu0 %v1683_v25, %s2646_s29  ;;  %v4430_v36 = vld [vmem:[%s3161_s18 + $0xc0] sm:$0xff] }
 0x38b   : > { %v1606_v53 = vpop.permute.xlu1 %1605  ;;  %v1612_v31 = vpop.permute.xlu0 %1611 }
 0x38c   : > { %v1682_v51 = vmul.f32 %v4210_v38, %v1606_v53  ;;  %v1685_v35 = vmul.f32 %v4423_v27, %v1612_v31 }
 0x38e   : > { %1765 = vrot.lane.b32.xlu1 %v1682_v51, %s2646_s29  ;;  %1771 = vrot.lane.b32.xlu0 %v1685_v35, %s2646_s29  ;;  %v4440_v35 = vld [vmem:[%s3161_s18 + $0xd0] sm:$0xff] }
 0x38f   : > { %v1610_v57 = vpop.permute.xlu1 %1609  ;;  %v1616_v49 = vpop.permute.xlu0 %1615  ;;  %5120 = vst [vmem:[#allocation6_spill] sm:$0xff] %v4440_v35 }
 0x390   : > { %v1684_v10 = vmul.f32 %v4219_v32, %v1610_v57  ;;  %v1687_v25 = vmul.f32 %v4430_v36, %v1616_v49 }
 0x392   : > { %1769 = vrot.lane.b32.xlu1 %v1684_v10, %s2646_s29  ;;  %1775 = vrot.lane.b32.xlu0 %v1687_v25, %s2646_s29 }
 0x393   : > { %v1614_v53 = vpop.permute.xlu1 %1613  ;;  %v1620_v31 = vpop.permute.xlu0 %1619 }
 0x394   : > { %v1686_v51 = vmul.f32 %v4436_v40, %v1614_v53  ;;  %v1689_v57 = vmul.f32 %v4440_v35, %v1620_v31  ;;  %v4456_v35 = vld [vmem:[%s3161_s18 + $0xd8] sm:$0xff] }
 0x396   : > { %1773 = vrot.lane.b32.xlu1 %v1686_v51, %s2646_s29  ;;  %1779 = vrot.lane.b32.xlu0 %v1689_v57, %s2646_s29 }
 0x397   : > { %v1618_v49 = vpop.permute.xlu1 %1617  ;;  %v1624_v10 = vpop.permute.xlu0 %1623 }
 0x398   : > { %v1688_v25 = vmul.f32 %v4446_v13, %v1618_v49  ;;  %v1691_v53 = vmul.f32 %v4450_v58, %v1624_v10  ;;  %v1214_v10 = vmul.f32 %v4020_v2, %v4303_v50  ;;  %v1217_v58 = vmul.f32 %v4114_v55, %v4322_v45 }
 0x399   : > { %v1215_v50 = vmul.f32 %v4101_v26, %v4315_v28  ;;  %v1221_v45 = vmul.f32 %v4138_v18, %v4333_v21  ;;  %v1220_v28 = vmul.f32 %v4119_v9, %v4324_v8  ;;  %v1227_v21 = vmul.f32 %v4174_v4, %v4345_v20 }
 0x39a   : > { %1777 = vrot.lane.b32.xlu1 %v1688_v25, %s2646_s29  ;;  %1783 = vrot.lane.b32.xlu0 %v1691_v53, %s2646_s29  ;;  %v4468_v25 = vld [vmem:[%s3161_s18 + $0xe8] sm:$0xff]  ;;  %v1226_v8 = vmul.f32 %v4155_v61, %v4339_v23  ;;  %v1233_v20 = vmul.f32 %v4210_v38, %v4357_v42  ;;  %v1232_v23 = vmul.f32 %v4191_v19, %v4351_v14 }
 0x39b   : > { %v1622_v31 = vpop.permute.xlu1 %1621  ;;  %v1628_v51 = vpop.permute.xlu0 %1627  ;;  %v1239_v42 = vmul.f32 %v4446_v13, %v4369_v62  ;;  %v5123_v62 = vld [vmem:[#allocation2_spill] sm:$0xff] }
 0x39c   : > { %v1690_v57 = vmul.f32 %v4456_v35, %v1622_v31  ;;  %v1693_v1 = vmul.f32 %v4460_v41, %v1628_v51  ;;  %v4475_v51 = vld [vmem:[%s3161_s18 + $0xf8] sm:$0xff] }
 0x39e   : > { %1781 = vrot.lane.b32.xlu1 %v1690_v57, %s2646_s29  ;;  %1787 = vrot.lane.b32.xlu0 %v1693_v1, %s2646_s29  ;;  %v1219_v1 = vmul.f32 %v4126_v39, %v4328_v22  ;;  %v1225_v22 = vmul.f32 %v4162_v37, %v4341_v33  ;;  %v1231_v33 = vmul.f32 %v4198_v3, %v4353_v7 }
 0x39f   : > { %v1626_v49 = vpop.permute.xlu1 %1625  ;;  %v1237_v7 = vmul.f32 %v4436_v40, %v4365_v16  ;;  %v1238_v16 = vmul.f32 %v4430_v36, %v4363_v15 }
 0x3a0   : > { %v1692_v53 = vmul.f32 %v4468_v25, %v1626_v49  ;;  %v1216_v49 = vmul.f32 %v4093_v63, %v4309_v46  ;;  %v1222_v46 = vmul.f32 %v4131_v54, %v4330_v12  ;;  %v1228_v12 = vmul.f32 %v4167_v34, %v4343_v59 }
 0x3a1   : > { %v1234_v59 = vmul.f32 %v4203_v5, %v4355_v6 }
 0x3a2   : > { %1785 = vrot.lane.b32.xlu1 %v1692_v53, %s2646_s29  ;;  %1857 = vperm.xlu0 %2469, %v1214_v10   ;;  %v1218_v10 = vmul.f32 %v4106_v29, %v4317_v56  ;;  %v1224_v56 = vmul.f32 %v4143_v43, %v4335_v47  ;;  %v1230_v47 = vmul.f32 %v4179_v0, %v4347_v44  ;;  %v5122_v53 = vld [vmem:[#allocation4_spill] sm:$0xff] }
 0x3a3   : > { %v1630_v31 = vpop.permute.xlu1 %1629  ;;  %v1236_v44 = vmul.f32 %v4423_v27, %v4359_v17  ;;  %v1243_v6 = vmul.f32 %v4468_v25, %v5122_v53 }
 0x3a4   : > { %v1694_v57 = vmul.f32 %v4475_v51, %v1630_v31 }
 0x3a6   : > { %1789 = vrot.lane.b32.xlu1 %v1694_v57, %s2646_s29  ;;  %1872 = vperm.xlu0 %2469, %v1217_v58   ;;  %v1223_v58 = vmul.f32 %v4150_v52, %v4337_v11  ;;  %v1229_v11 = vmul.f32 %v4186_v24, %v4349_v60  ;;  %v1235_v60 = vmul.f32 %v4219_v32, %v4361_v48  ;;  %v5124_v57 = vld [vmem:[#allocation6_spill] sm:$0xff] }
 0x3a7   : > { %v1241_v48 = vmul.f32 %v4456_v35, %v4373_v30 }
 0x3aa   : > { %1862 = vperm.xlu1 %2470, %v1215_v50   ;;  %1882 = vperm.xlu0 %2469, %v1219_v1   ;;  %v1240_v50 = vmul.f32 %v5124_v57, %v5123_v62  ;;  %v5125_v1 = vld [vmem:[#allocation9_spill] sm:$0xff] }
 0x3ab   : > { %v1245_v17 = vmul.f32 %v4475_v51, %v5125_v1 }
 0x3ae   : > { %1867 = vperm.xlu1 %2470, %v1216_v49   ;;  %1892 = vperm.xlu0 %2469, %v1221_v45   ;;  %v5126_v45 = vld [vmem:[#allocation5_spill] sm:$0xff] }
 0x3b2   : > { %1877 = vperm.xlu1 %2470, %v1218_v10   ;;  %1902 = vperm.xlu0 %2469, %v1223_v58   ;;  %v5127_v10 = vld [vmem:[#allocation10_spill] sm:$0xff] }
 0x3b3   : > { %v1242_v58 = vmul.f32 %v5127_v10, %v5126_v45 }
 0x3b6   : > { %1887 = vperm.xlu1 %2470, %v1220_v28   ;;  %1912 = vperm.xlu0 %2469, %v1225_v22  }
 0x3ba   : > { %1897 = vperm.xlu1 %2470, %v1222_v46   ;;  %1922 = vperm.xlu0 %2469, %v1227_v21   ;;  %v2647_v46 = vmov 3   ;;  %v5128_v21 = vld [vmem:[#allocation7_spill] sm:$0xff] }
 0x3be   : > { %1907 = vperm.xlu1 %2470, %v1224_v56   ;;  %1932 = vperm.xlu0 %2469, %v1229_v11   ;;  %v1244_v56 = vmul.f32 %v4460_v41, %v5128_v21 }
 0x3c2   : > { %1917 = vperm.xlu1 %2470, %v1226_v8   ;;  %1942 = vperm.xlu0 %2469, %v1231_v33  }
 0x3c6   : > { %1927 = vperm.xlu1 %2470, %v1228_v12   ;;  %1952 = vperm.xlu0 %2469, %v1233_v20  }
 0x3ca   : > { %1937 = vperm.xlu1 %2470, %v1230_v47   ;;  %1962 = vperm.xlu0 %2469, %v1235_v60  }
 0x3ce   : > { %1947 = vperm.xlu1 %2470, %v1232_v23   ;;  %1972 = vperm.xlu0 %2469, %v1237_v7  }
 0x3d2   : > { %1957 = vperm.xlu1 %2470, %v1234_v59   ;;  %1982 = vperm.xlu0 %2469, %v1239_v42  }
 0x3d4   : > { %v1728_v14 = vpop.permute.xlu0 %1727 }
 0x3d5   : > { %v1823_v47 = vsub.f32 %v4020_v2, %v1728_v14 }
 0x3d6   : > { %1967 = vperm.xlu1 %2470, %v1236_v44   ;;  %1992 = vperm.xlu0 %2469, %v1241_v48  }
 0x3d8   : > { %v1732_v31 = vpop.permute.xlu0 %1731 }
 0x3d9   : > { %v1825_v7 = vsub.f32 %v4093_v63, %v1732_v31 }
 0x3da   : > { %1977 = vperm.xlu1 %2470, %v1238_v16   ;;  %2002 = vperm.xlu0 %2469, %v1243_v6  }
 0x3dc   : > { %v1730_v49 = vpop.permute.xlu1 %1729  ;;  %v1736_v30 = vpop.permute.xlu0 %1735 }
 0x3dd   : > { %v1824_v22 = vsub.f32 %v4101_v26, %v1730_v49  ;;  %v1827_v33 = vsub.f32 %v4106_v29, %v1736_v30 }
 0x3de   : > { %1987 = vperm.xlu1 %2470, %v1240_v50   ;;  %2012 = vperm.xlu0 %2469, %v1245_v17  }
 0x3e0   : > { %v1734_v15 = vpop.permute.xlu1 %1733  ;;  %v1740_v28 = vpop.permute.xlu0 %1739 }
 0x3e1   : > { %v1829_v60 = vsub.f32 %v4119_v9, %v1740_v28  ;;  %v1826_v44 = vsub.f32 %v4114_v55, %v1734_v15 }
 0x3e2   : > { %1997 = vperm.xlu1 %2470, %v1242_v58   ;;  %2472 = vset.pattern.permute.xlu0 %v2647_v46 }
 0x3e3   : > { %2086 = vperm.xlu0 %2472, %v1824_v22  }
 0x3e4   : > { %v1738_v11 = vpop.permute.xlu1 %1737  ;;  %v1744_v8 = vpop.permute.xlu0 %1743 }
 0x3e5   : > { %v1831_v59 = vsub.f32 %v4131_v54, %v1744_v8  ;;  %v1828_v14 = vsub.f32 %v4126_v39, %v1738_v11 }
 0x3e6   : > { %2007 = vperm.xlu1 %2470, %v1244_v56  }
 0x3e7   : > { %2101 = vperm.xlu0 %2472, %v1827_v33  }
 0x3e8   : > { %v1742_v12 = vpop.permute.xlu1 %1741  ;;  %v1748_v20 = vpop.permute.xlu0 %1747 }
 0x3e9   : > { %v1833_v48 = vsub.f32 %v4143_v43, %v1748_v20  ;;  %v1830_v53 = vsub.f32 %v4138_v18, %v1742_v12 }
 0x3ea   : > { %2471 = vset.pattern.permute.xlu1 %v2647_v46 }
 0x3eb   : > { %2081 = vperm.xlu1 %2471, %v1823_v47   ;;  %2111 = vperm.xlu0 %2472, %v1829_v60  }
 0x3ec   : > { %v1746_v26 = vpop.permute.xlu1 %1745  ;;  %v1752_v23 = vpop.permute.xlu0 %1751 }
 0x3ed   : > { %v1835_v16 = vsub.f32 %v4155_v61, %v1752_v23  ;;  %v1832_v31 = vsub.f32 %v4150_v52, %v1746_v26 }
 0x3ef   : > { %2091 = vperm.xlu1 %2471, %v1825_v7   ;;  %2121 = vperm.xlu0 %2472, %v1831_v59  }
 0x3f0   : > { %v1750_v29 = vpop.permute.xlu1 %1749  ;;  %v1756_v42 = vpop.permute.xlu0 %1755 }
 0x3f1   : > { %v1837_v6 = vsub.f32 %v4167_v34, %v1756_v42  ;;  %v1834_v50 = vsub.f32 %v4162_v37, %v1750_v29 }
 0x3f3   : > { %2096 = vperm.xlu1 %2471, %v1826_v44   ;;  %2131 = vperm.xlu0 %2472, %v1833_v48  }
 0x3f4   : > { %v1754_v2 = vpop.permute.xlu1 %1753  ;;  %v1760_v9 = vpop.permute.xlu0 %1759 }
 0x3f5   : > { %v1839_v62 = vsub.f32 %v4179_v0, %v1760_v9  ;;  %v1836_v17 = vsub.f32 %v4174_v4, %v1754_v2 }
 0x3f7   : > { %2106 = vperm.xlu1 %2471, %v1828_v14   ;;  %2141 = vperm.xlu0 %2472, %v1835_v16  }
 0x3f8   : > { %v1758_v63 = vpop.permute.xlu1 %1757  ;;  %v1764_v54 = vpop.permute.xlu0 %1763 }
 0x3f9   : > { %v1841_v1 = vsub.f32 %v4191_v19, %v1764_v54  ;;  %v1838_v52 = vsub.f32 %v4186_v24, %v1758_v63 }
 0x3fb   : > { %2116 = vperm.xlu1 %2471, %v1830_v53   ;;  %2151 = vperm.xlu0 %2472, %v1837_v6  }
 0x3fc   : > { %v1762_v55 = vpop.permute.xlu1 %1761  ;;  %v1768_v43 = vpop.permute.xlu0 %1767 }
 0x3fd   : > { %v1843_v49 = vsub.f32 %v4203_v5, %v1768_v43  ;;  %v1840_v37 = vsub.f32 %v4198_v3, %v1762_v55  ;;  %v2571_v55 = vld [vmem:[%s2679_s14 + $0x10] sm:$0xff] }
 0x3ff   : > { %2126 = vperm.xlu1 %2471, %v1832_v31   ;;  %2161 = vperm.xlu0 %2472, %v1839_v62   ;;  %v2572_v31 = vld [vmem:[%s2679_s14 + $0x18] sm:$0xff] }
 0x400   : > { %v1766_v39 = vpop.permute.xlu1 %1765  ;;  %v1772_v61 = vpop.permute.xlu0 %1771 }
 0x401   : > { %v1845_v0 = vsub.f32 %v4423_v27, %v1772_v61  ;;  %v1842_v5 = vsub.f32 %v4210_v38, %v1766_v39 }
 0x403   : > { %2136 = vperm.xlu1 %2471, %v1834_v50   ;;  %2171 = vperm.xlu0 %2472, %v1841_v1  }
 0x404   : > { %v1770_v18 = vpop.permute.xlu1 %1769  ;;  %v1776_v34 = vpop.permute.xlu0 %1775 }
 0x405   : > { %v1847_v19 = vsub.f32 %v4430_v36, %v1776_v34  ;;  %v1844_v24 = vsub.f32 %v4219_v32, %v1770_v18  ;;  %v2573_v18 = vld [vmem:[%s2679_s14 + $0x40] sm:$0xff] }
 0x407   : > { %2146 = vperm.xlu1 %2471, %v1836_v17   ;;  %2181 = vperm.xlu0 %2472, %v1843_v49   ;;  %v2574_v17 = vld [vmem:[%s2679_s14 + $0x48] sm:$0xff] }
 0x408   : > { %v1774_v30 = vpop.permute.xlu1 %1773  ;;  %v1780_v45 = vpop.permute.xlu0 %1779 }
 0x409   : > { %v1849_v15 = vsub.f32 %v5124_v57, %v1780_v45  ;;  %v1846_v3 = vsub.f32 %v4436_v40, %v1774_v30 }
 0x40b   : > { %2156 = vperm.xlu1 %2471, %v1838_v52   ;;  %2191 = vperm.xlu0 %2472, %v1845_v0  }
 0x40c   : > { %v1778_v58 = vpop.permute.xlu1 %1777  ;;  %v1784_v4 = vpop.permute.xlu0 %1783 }
 0x40d   : > { %v1851_v27 = vsub.f32 %v5127_v10, %v1784_v4  ;;  %v1848_v38 = vsub.f32 %v4446_v13, %v1778_v58  ;;  %v2576_v58 = vld [vmem:[%s2679_s14 + $0x8] sm:$0xff] }
 0x40f   : > { %2166 = vperm.xlu1 %2471, %v1840_v37   ;;  %2201 = vperm.xlu0 %2472, %v1847_v19   ;;  %v2575_v37 = vld [vmem:[%s2679_s14] sm:$0xff] }
 0x410   : > { %v1782_v28 = vpop.permute.xlu1 %1781  ;;  %v1788_v22 = vpop.permute.xlu0 %1787 }
 0x411   : > { %v1853_v36 = vsub.f32 %v4460_v41, %v1788_v22  ;;  %v1850_v21 = vsub.f32 %v4456_v35, %v1782_v28 }
 0x413   : > { %2176 = vperm.xlu1 %2471, %v1842_v5   ;;  %2211 = vperm.xlu0 %2472, %v1849_v15   ;;  %v2577_v5 = vld [vmem:[%s2679_s14 + $0x60] sm:$0xff] }
 0x414   : > { %v1786_v46 = vpop.permute.xlu1 %1785 }
 0x415   : > { %v1852_v10 = vsub.f32 %v4468_v25, %v1786_v46 }
 0x417   : > { %2186 = vperm.xlu1 %2471, %v1844_v24   ;;  %2221 = vperm.xlu0 %2472, %v1851_v27   ;;  %v2578_v24 = vld [vmem:[%s2679_s14 + $0x68] sm:$0xff] }
 0x418   : > { %v1790_v32 = vpop.permute.xlu1 %1789 }
 0x419   : > { %v1854_v41 = vsub.f32 %v4475_v51, %v1790_v32  ;;  %v2580_v32 = vld [vmem:[%s2679_s14 + $0x28] sm:$0xff] }
 0x41b   : > { %2196 = vperm.xlu1 %2471, %v1846_v3   ;;  %2231 = vperm.xlu0 %2472, %v1853_v36  }
 0x41d   : > { %v1858_v57 = vpop.permute.xlu0 %1857 }
 0x41e   : > { %v2015_v19 = vmul.f32 %v2575_v37, %v1858_v57  ;;  %v2016_v4 = vmul.f32 %v2576_v58, %v1858_v57 }
 0x41f   : > { %2206 = vperm.xlu1 %2471, %v1848_v38  }
 0x421   : > { %v4569_v56 = vpop.permute.xlu0 %1872 }
 0x423   : > { %2216 = vperm.xlu1 %2471, %v1850_v21   ;;  %v2579_v21 = vld [vmem:[%s2679_s14 + $0x20] sm:$0xff] }
 0x425   : > { %v1863_v11 = vpop.permute.xlu1 %1862  ;;  %v4572_v8 = vpop.permute.xlu0 %1882 }
 0x426   : > { %v2017_v43 = vmul.f32 %v2571_v55, %v1863_v11  ;;  %v2018_v62 = vmul.f32 %v2572_v31, %v1863_v11  ;;  %v2581_v11 = vld [vmem:[%s2679_s14 + $0x80] sm:$0xff] }
 0x427   : > { %2226 = vperm.xlu1 %2471, %v1852_v10  }
 0x429   : > { %v4575_v40 = vpop.permute.xlu1 %1867  ;;  %v4577_v33 = vpop.permute.xlu0 %1892 }
 0x42a   : > { %v2019_v57 = vmul.f32 %v2579_v21, %v4575_v40  ;;  %v2020_v10 = vmul.f32 %v2580_v32, %v4575_v40 }
 0x42b   : > { %2236 = vperm.xlu1 %2471, %v1854_v41  }
 0x42d   : > { %v1878_v13 = vpop.permute.xlu1 %1877  ;;  %v4579_v12 = vpop.permute.xlu0 %1902 }
 0x42e   : > { %v2023_v34 = vmul.f32 %v2573_v18, %v1878_v13  ;;  %v2024_v49 = vmul.f32 %v2574_v17, %v1878_v13  ;;  %v2582_v13 = vld [vmem:[%s2679_s14 + $0x88] sm:$0xff]  ;;  %v2584_v18 = vld [vmem:[%s2679_s14 + $0x38] sm:$0xff] }
 0x431   : > { %v1888_v35 = vpop.permute.xlu1 %1887  ;;  %v4581_v20 = vpop.permute.xlu0 %1912 }
 0x432   : > { %v2027_v15 = vmul.f32 %v2577_v5, %v1888_v35  ;;  %v2028_v27 = vmul.f32 %v2578_v24, %v1888_v35  ;;  %v2589_v24 = vld [vmem:[%s2679_s14 + $0xc0] sm:$0xff] }
 0x435   : > { %v1898_v47 = vpop.permute.xlu1 %1897  ;;  %v4583_v60 = vpop.permute.xlu0 %1922 }
 0x436   : > { %v2031_v41 = vmul.f32 %v2581_v11, %v1898_v47  ;;  %v2032_v35 = vmul.f32 %v2582_v13, %v1898_v47  ;;  %v2022_v47 = vmul.f32 %v2584_v18, %v4569_v56  ;;  %v2593_v11 = vld [vmem:[%s2679_s14 + $0xe0] sm:$0xff]  ;;  %v2594_v13 = vld [vmem:[%s2679_s14 + $0xe8] sm:$0xff] }
 0x437   : > { %v2597_v18 = vld [vmem:[%s2679_s14 + $0x100] sm:$0xff] }
 0x439   : > { %v4585_v25 = vpop.permute.xlu1 %1907  ;;  %v4587_v26 = vpop.permute.xlu0 %1932 }
 0x43d   : > { %v4589_v23 = vpop.permute.xlu1 %1917  ;;  %v4591_v51 = vpop.permute.xlu0 %1942 }
 0x441   : > { %v4593_v7 = vpop.permute.xlu1 %1927  ;;  %v4595_v59 = vpop.permute.xlu0 %1952 }
 0x445   : > { %v4597_v29 = vpop.permute.xlu1 %1937  ;;  %v4599_v42 = vpop.permute.xlu0 %1962 }
 0x449   : > { %v4601_v44 = vpop.permute.xlu1 %1947  ;;  %v4603_v48 = vpop.permute.xlu0 %1972 }
 0x44d   : > { %v4605_v2 = vpop.permute.xlu1 %1957  ;;  %v4607_v9 = vpop.permute.xlu0 %1982 }
 0x451   : > { %v4609_v14 = vpop.permute.xlu1 %1967  ;;  %v4611_v16 = vpop.permute.xlu0 %1992 }
 0x455   : > { %v4613_v63 = vpop.permute.xlu1 %1977  ;;  %v4615_v54 = vpop.permute.xlu0 %2002 }
 0x459   : > { %v4617_v53 = vpop.permute.xlu1 %1987  ;;  %v4619_v6 = vpop.permute.xlu0 %2012 }
 0x45d   : > { %v4623_v39 = vpop.permute.xlu1 %1997 }
 0x45e   : > { %v2087_v61 = vpop.permute.xlu0 %2086 }
 0x45f   : > { %v2241_v50 = vadd.f32 %v2087_v61, %v2017_v43  ;;  %v2242_v1 = vadd.f32 %v2087_v61, %v2018_v62 }
 0x461   : > { %2305 = vst [vmem:[%s4630_s4 + $0x10] sm:$0xff] %v2241_v50  ;;  %2306 = vst [vmem:[%s4630_s4 + $0x18] sm:$0xff] %v2242_v1  ;;  %v4636_v52 = vpop.permute.xlu1 %2007  ;;  %v2583_v50 = vld [vmem:[%s2679_s14 + $0x30] sm:$0xff] }
 0x462   : > { %v2102_v0 = vpop.permute.xlu0 %2101  ;;  %v2021_v1 = vmul.f32 %v2583_v50, %v4569_v56 }
 0x463   : > { %v2247_v30 = vadd.f32 %v2102_v0, %v2023_v34  ;;  %v2248_v45 = vadd.f32 %v2102_v0, %v2024_v49  ;;  %v2585_v34 = vld [vmem:[%s2679_s14 + $0xa0] sm:$0xff]  ;;  %v2586_v49 = vld [vmem:[%s2679_s14 + $0xa8] sm:$0xff] }
 0x464   : > { %v2035_v17 = vmul.f32 %v2585_v34, %v4585_v25  ;;  %v2036_v0 = vmul.f32 %v2586_v49, %v4585_v25  ;;  %v2598_v34 = vld [vmem:[%s2679_s14 + $0x108] sm:$0xff] }
 0x465   : > { %2311 = vst [vmem:[%s4630_s4 + $0x40] sm:$0xff] %v2247_v30  ;;  %2312 = vst [vmem:[%s4630_s4 + $0x48] sm:$0xff] %v2248_v45 }
 0x466   : > { %v2082_v28 = vpop.permute.xlu1 %2081  ;;  %v2112_v22 = vpop.permute.xlu0 %2111 }
 0x467   : > { %v2239_v3 = vadd.f32 %v2082_v28, %v2015_v19  ;;  %v2240_v36 = vadd.f32 %v2082_v28, %v2016_v4  ;;  %v2251_v46 = vadd.f32 %v2112_v22, %v2027_v15  ;;  %v2252_v38 = vadd.f32 %v2112_v22, %v2028_v27  ;;  %v2587_v4 = vld [vmem:[%s2679_s14 + $0x50] sm:$0xff]  ;;  %v2588_v15 = vld [vmem:[%s2679_s14 + $0x58] sm:$0xff]  ;;  %v2590_v28 = vld [vmem:[%s2679_s14 + $0xc8] sm:$0xff] }
 0x468   : > { %v2025_v5 = vmul.f32 %v2587_v4, %v4572_v8  ;;  %v2026_v25 = vmul.f32 %v2588_v15, %v4572_v8  ;;  %v2039_v27 = vmul.f32 %v2589_v24, %v4589_v23  ;;  %v2040_v22 = vmul.f32 %v2590_v28, %v4589_v23  ;;  %v2601_v4 = vld [vmem:[%s2679_s14 + $0x120] sm:$0xff]  ;;  %v2602_v15 = vld [vmem:[%s2679_s14 + $0x128] sm:$0xff] }
 0x469   : > { %2303 = vst [vmem:[%s4630_s4] sm:$0xff] %v2239_v3  ;;  %2304 = vst [vmem:[%s4630_s4 + $0x8] sm:$0xff] %v2240_v36 }
 0x46a   : > { %2315 = vst [vmem:[%s4630_s4 + $0x60] sm:$0xff] %v2251_v46  ;;  %2316 = vst [vmem:[%s4630_s4 + $0x68] sm:$0xff] %v2252_v38  ;;  %v2092_v55 = vpop.permute.xlu1 %2091  ;;  %v2122_v43 = vpop.permute.xlu0 %2121 }
 0x46b   : > { %v2243_v31 = vadd.f32 %v2092_v55, %v2019_v57  ;;  %v2244_v62 = vadd.f32 %v2092_v55, %v2020_v10  ;;  %v2255_v40 = vadd.f32 %v2122_v43, %v2031_v41  ;;  %v2256_v61 = vadd.f32 %v2122_v43, %v2032_v35  ;;  %v2591_v57 = vld [vmem:[%s2679_s14 + $0x70] sm:$0xff]  ;;  %v2592_v10 = vld [vmem:[%s2679_s14 + $0x78] sm:$0xff] }
 0x46c   : > { %v2029_v32 = vmul.f32 %v2591_v57, %v4577_v33  ;;  %v2030_v23 = vmul.f32 %v2592_v10, %v4577_v33  ;;  %v2043_v41 = vmul.f32 %v2593_v11, %v4593_v7  ;;  %v2044_v35 = vmul.f32 %v2594_v13, %v4593_v7  ;;  %v2606_v57 = vld [vmem:[%s2679_s14 + $0x148] sm:$0xff] }
 0x46d   : > { %2307 = vst [vmem:[%s4630_s4 + $0x20] sm:$0xff] %v2243_v31  ;;  %2308 = vst [vmem:[%s4630_s4 + $0x28] sm:$0xff] %v2244_v62 }
 0x46e   : > { %2319 = vst [vmem:[%s4630_s4 + $0x80] sm:$0xff] %v2255_v40  ;;  %2320 = vst [vmem:[%s4630_s4 + $0x88] sm:$0xff] %v2256_v61  ;;  %v2097_v30 = vpop.permute.xlu1 %2096  ;;  %v2132_v45 = vpop.permute.xlu0 %2131  ;;  %v2595_v61 = vld [vmem:[%s2679_s14 + $0x90] sm:$0xff] }
 0x46f   : > { %v2245_v56 = vadd.f32 %v2097_v30, %v2021_v1  ;;  %v2246_v37 = vadd.f32 %v2097_v30, %v2022_v47  ;;  %v2259_v19 = vadd.f32 %v2132_v45, %v2035_v17  ;;  %v2260_v58 = vadd.f32 %v2132_v45, %v2036_v0  ;;  %v2596_v1 = vld [vmem:[%s2679_s14 + $0x98] sm:$0xff] }
 0x470   : > { %v2033_v50 = vmul.f32 %v2595_v61, %v4579_v12  ;;  %v2034_v7 = vmul.f32 %v2596_v1, %v4579_v12  ;;  %v2047_v47 = vmul.f32 %v2597_v18, %v4597_v29  ;;  %v2048_v17 = vmul.f32 %v2598_v34, %v4597_v29 }
 0x471   : > { %2309 = vst [vmem:[%s4630_s4 + $0x30] sm:$0xff] %v2245_v56  ;;  %2310 = vst [vmem:[%s4630_s4 + $0x38] sm:$0xff] %v2246_v37  ;;  %v2599_v37 = vld [vmem:[%s2679_s14 + $0xb0] sm:$0xff] }
 0x472   : > { %2323 = vst [vmem:[%s4630_s4 + $0xa0] sm:$0xff] %v2259_v19  ;;  %2324 = vst [vmem:[%s4630_s4 + $0xa8] sm:$0xff] %v2260_v58  ;;  %v2107_v3 = vpop.permute.xlu1 %2106  ;;  %v2142_v36 = vpop.permute.xlu0 %2141  ;;  %v2037_v19 = vmul.f32 %v2599_v37, %v4581_v20  ;;  %v2600_v58 = vld [vmem:[%s2679_s14 + $0xb8] sm:$0xff] }
 0x473   : > { %v2249_v8 = vadd.f32 %v2107_v3, %v2025_v5  ;;  %v2250_v46 = vadd.f32 %v2107_v3, %v2026_v25  ;;  %v2263_v38 = vadd.f32 %v2142_v36, %v2039_v27  ;;  %v2264_v21 = vadd.f32 %v2142_v36, %v2040_v22  ;;  %v2603_v36 = vld [vmem:[%s2679_s14 + $0xd0] sm:$0xff] }
 0x474   : > { %v2038_v29 = vmul.f32 %v2600_v58, %v4581_v20  ;;  %v2051_v5 = vmul.f32 %v2601_v4, %v4601_v44  ;;  %v2052_v25 = vmul.f32 %v2602_v15, %v4601_v44  ;;  %v2617_v15 = vld [vmem:[%s2679_s14 + $0x1a0] sm:$0xff] }
 0x475   : > { %2313 = vst [vmem:[%s4630_s4 + $0x50] sm:$0xff] %v2249_v8  ;;  %2314 = vst [vmem:[%s4630_s4 + $0x58] sm:$0xff] %v2250_v46  ;;  %v2041_v8 = vmul.f32 %v2603_v36, %v4583_v60  ;;  %v2604_v46 = vld [vmem:[%s2679_s14 + $0xd8] sm:$0xff] }
 0x476   : > { %2327 = vst [vmem:[%s4630_s4 + $0xc0] sm:$0xff] %v2263_v38  ;;  %2328 = vst [vmem:[%s4630_s4 + $0xc8] sm:$0xff] %v2264_v21  ;;  %v2117_v55 = vpop.permute.xlu1 %2116  ;;  %v2152_v43 = vpop.permute.xlu0 %2151  ;;  %v2042_v44 = vmul.f32 %v2604_v46, %v4583_v60  ;;  %v2605_v38 = vld [vmem:[%s2679_s14 + $0x140] sm:$0xff] }
 0x477   : > { %v2253_v33 = vadd.f32 %v2117_v55, %v2029_v32  ;;  %v2254_v31 = vadd.f32 %v2117_v55, %v2030_v23  ;;  %v2267_v62 = vadd.f32 %v2152_v43, %v2043_v41  ;;  %v2268_v40 = vadd.f32 %v2152_v43, %v2044_v35  ;;  %v2607_v35 = vld [vmem:[%s2679_s14 + $0xf0] sm:$0xff]  ;;  %v2608_v43 = vld [vmem:[%s2679_s14 + $0xf8] sm:$0xff] }
 0x478   : > { %v2055_v21 = vmul.f32 %v2605_v38, %v4605_v2  ;;  %v2056_v32 = vmul.f32 %v2606_v57, %v4605_v2  ;;  %v2045_v55 = vmul.f32 %v2607_v35, %v4587_v26  ;;  %v2046_v2 = vmul.f32 %v2608_v43, %v4587_v26  ;;  %v2621_v38 = vld [vmem:[%s2679_s14 + $0x1c0] sm:$0xff]  ;;  %v2622_v57 = vld [vmem:[%s2679_s14 + $0x1c8] sm:$0xff] }
 0x479   : > { %2317 = vst [vmem:[%s4630_s4 + $0x70] sm:$0xff] %v2253_v33  ;;  %2318 = vst [vmem:[%s4630_s4 + $0x78] sm:$0xff] %v2254_v31  ;;  %v2609_v33 = vld [vmem:[%s2679_s14 + $0x160] sm:$0xff] }
 0x47a   : > { %2331 = vst [vmem:[%s4630_s4 + $0xe0] sm:$0xff] %v2267_v62  ;;  %2332 = vst [vmem:[%s4630_s4 + $0xe8] sm:$0xff] %v2268_v40  ;;  %v2127_v49 = vpop.permute.xlu1 %2126  ;;  %v2162_v0 = vpop.permute.xlu0 %2161  ;;  %v2059_v31 = vmul.f32 %v2609_v33, %v4609_v14  ;;  %v2610_v62 = vld [vmem:[%s2679_s14 + $0x168] sm:$0xff]  ;;  %v2625_v43 = vld [vmem:[%s2679_s14 + $0x1e0] sm:$0xff] }
 0x47b   : > { %v2257_v12 = vadd.f32 %v2127_v49, %v2033_v50  ;;  %v2258_v30 = vadd.f32 %v2127_v49, %v2034_v7  ;;  %v2271_v45 = vadd.f32 %v2162_v0, %v2047_v47  ;;  %v2272_v56 = vadd.f32 %v2162_v0, %v2048_v17  ;;  %v2611_v47 = vld [vmem:[%s2679_s14 + $0x110] sm:$0xff]  ;;  %v2612_v17 = vld [vmem:[%s2679_s14 + $0x118] sm:$0xff]  ;;  %v2613_v49 = vld [vmem:[%s2679_s14 + $0x180] sm:$0xff] }
 0x47c   : > { %v2060_v40 = vmul.f32 %v2610_v62, %v4609_v14  ;;  %v2049_v34 = vmul.f32 %v2611_v47, %v4591_v51  ;;  %v2050_v14 = vmul.f32 %v2612_v17, %v4591_v51  ;;  %v2063_v0 = vmul.f32 %v2613_v49, %v4613_v63  ;;  %v2626_v33 = vld [vmem:[%s2679_s14 + $0x1e8] sm:$0xff] }
 0x47d   : > { %2321 = vst [vmem:[%s4630_s4 + $0x90] sm:$0xff] %v2257_v12  ;;  %2322 = vst [vmem:[%s4630_s4 + $0x98] sm:$0xff] %v2258_v30  ;;  %v2614_v12 = vld [vmem:[%s2679_s14 + $0x188] sm:$0xff] }
 0x47e   : > { %2335 = vst [vmem:[%s4630_s4 + $0x100] sm:$0xff] %v2271_v45  ;;  %2336 = vst [vmem:[%s4630_s4 + $0x108] sm:$0xff] %v2272_v56  ;;  %v2137_v24 = vpop.permute.xlu1 %2136  ;;  %v2172_v27 = vpop.permute.xlu0 %2171  ;;  %v2064_v30 = vmul.f32 %v2614_v12, %v4613_v63 }
 0x47f   : > { %v2261_v20 = vadd.f32 %v2137_v24, %v2037_v19  ;;  %v2262_v28 = vadd.f32 %v2137_v24, %v2038_v29  ;;  %v2275_v22 = vadd.f32 %v2172_v27, %v2051_v5  ;;  %v2276_v3 = vadd.f32 %v2172_v27, %v2052_v25  ;;  %v2615_v29 = vld [vmem:[%s2679_s14 + $0x130] sm:$0xff]  ;;  %v2616_v5 = vld [vmem:[%s2679_s14 + $0x138] sm:$0xff]  ;;  %v2618_v24 = vld [vmem:[%s2679_s14 + $0x1a8] sm:$0xff] }
 0x480   : > { %v2053_v4 = vmul.f32 %v2615_v29, %v4595_v59  ;;  %v2054_v63 = vmul.f32 %v2616_v5, %v4595_v59  ;;  %v2067_v25 = vmul.f32 %v2617_v15, %v4617_v53  ;;  %v2068_v27 = vmul.f32 %v2618_v24, %v4617_v53 }
 0x481   : > { %2325 = vst [vmem:[%s4630_s4 + $0xb0] sm:$0xff] %v2261_v20  ;;  %2326 = vst [vmem:[%s4630_s4 + $0xb8] sm:$0xff] %v2262_v28 }
 0x482   : > { %2339 = vst [vmem:[%s4630_s4 + $0x120] sm:$0xff] %v2275_v22  ;;  %2340 = vst [vmem:[%s4630_s4 + $0x128] sm:$0xff] %v2276_v3  ;;  %v2147_v10 = vpop.permute.xlu1 %2146  ;;  %v2182_v23 = vpop.permute.xlu0 %2181 }
 0x483   : > { %v2265_v60 = vadd.f32 %v2147_v10, %v2041_v8  ;;  %v2266_v11 = vadd.f32 %v2147_v10, %v2042_v44  ;;  %v2279_v41 = vadd.f32 %v2182_v23, %v2055_v21  ;;  %v2280_v13 = vadd.f32 %v2182_v23, %v2056_v32  ;;  %v2619_v8 = vld [vmem:[%s2679_s14 + $0x150] sm:$0xff]  ;;  %v2620_v44 = vld [vmem:[%s2679_s14 + $0x158] sm:$0xff] }
 0x484   : > { %v2057_v46 = vmul.f32 %v2619_v8, %v4599_v42  ;;  %v2058_v53 = vmul.f32 %v2620_v44, %v4599_v42  ;;  %v2071_v21 = vmul.f32 %v2621_v38, %v4623_v39  ;;  %v2072_v32 = vmul.f32 %v2622_v57, %v4623_v39 }
 0x485   : > { %2329 = vst [vmem:[%s4630_s4 + $0xd0] sm:$0xff] %v2265_v60  ;;  %2330 = vst [vmem:[%s4630_s4 + $0xd8] sm:$0xff] %v2266_v11 }
 0x486   : > { %2343 = vst [vmem:[%s4630_s4 + $0x140] sm:$0xff] %v2279_v41  ;;  %2344 = vst [vmem:[%s4630_s4 + $0x148] sm:$0xff] %v2280_v13  ;;  %v2157_v61 = vpop.permute.xlu1 %2156  ;;  %v2192_v50 = vpop.permute.xlu0 %2191  ;;  %v2623_v13 = vld [vmem:[%s2679_s14 + $0x170] sm:$0xff] }
 0x487   : > { %v2269_v26 = vadd.f32 %v2157_v61, %v2045_v55  ;;  %v2270_v1 = vadd.f32 %v2157_v61, %v2046_v2  ;;  %v2283_v7 = vadd.f32 %v2192_v50, %v2059_v31  ;;  %v2284_v18 = vadd.f32 %v2192_v50, %v2060_v40  ;;  %v2624_v55 = vld [vmem:[%s2679_s14 + $0x178] sm:$0xff] }
 0x488   : > { %v2061_v35 = vmul.f32 %v2623_v13, %v4603_v48  ;;  %v2062_v39 = vmul.f32 %v2624_v55, %v4603_v48  ;;  %v2075_v2 = vmul.f32 %v2625_v43, %v4636_v52  ;;  %v2076_v31 = vmul.f32 %v2626_v33, %v4636_v52 }
 0x489   : > { %2333 = vst [vmem:[%s4630_s4 + $0xf0] sm:$0xff] %v2269_v26  ;;  %2334 = vst [vmem:[%s4630_s4 + $0xf8] sm:$0xff] %v2270_v1  ;;  %v2627_v1 = vld [vmem:[%s2679_s14 + $0x190] sm:$0xff] }
 0x48a   : > { %2347 = vst [vmem:[%s4630_s4 + $0x160] sm:$0xff] %v2283_v7  ;;  %2348 = vst [vmem:[%s4630_s4 + $0x168] sm:$0xff] %v2284_v18  ;;  %v2167_v45 = vpop.permute.xlu1 %2166  ;;  %v2202_v56 = vpop.permute.xlu0 %2201  ;;  %v2065_v52 = vmul.f32 %v2627_v1, %v4607_v9  ;;  %v2628_v7 = vld [vmem:[%s2679_s14 + $0x198] sm:$0xff] }
 0x48b   : > { %v2273_v51 = vadd.f32 %v2167_v45, %v2049_v34  ;;  %v2274_v37 = vadd.f32 %v2167_v45, %v2050_v14  ;;  %v2287_v19 = vadd.f32 %v2202_v56, %v2063_v0  ;;  %v2288_v58 = vadd.f32 %v2202_v56, %v2064_v30  ;;  %v2629_v14 = vld [vmem:[%s2679_s14 + $0x1b0] sm:$0xff]  ;;  %v2630_v0 = vld [vmem:[%s2679_s14 + $0x1b8] sm:$0xff] }
 0x48c   : > { %v2066_v18 = vmul.f32 %v2628_v7, %v4607_v9  ;;  %v2069_v49 = vmul.f32 %v2629_v14, %v4611_v16  ;;  %v2070_v12 = vmul.f32 %v2630_v0, %v4611_v16  ;;  %v2631_v56 = vld [vmem:[%s2679_s14 + $0x1d0] sm:$0xff] }
 0x48d   : > { %2337 = vst [vmem:[%s4630_s4 + $0x110] sm:$0xff] %v2273_v51  ;;  %2338 = vst [vmem:[%s4630_s4 + $0x118] sm:$0xff] %v2274_v37  ;;  %v2073_v51 = vmul.f32 %v2631_v56, %v4615_v54  ;;  %v2632_v37 = vld [vmem:[%s2679_s14 + $0x1d8] sm:$0xff] }
 0x48e   : > { %2351 = vst [vmem:[%s4630_s4 + $0x180] sm:$0xff] %v2287_v19  ;;  %2352 = vst [vmem:[%s4630_s4 + $0x188] sm:$0xff] %v2288_v58  ;;  %v2177_v20 = vpop.permute.xlu1 %2176  ;;  %v2212_v28 = vpop.permute.xlu0 %2211  ;;  %v2074_v19 = vmul.f32 %v2632_v37, %v4615_v54 }
 0x48f   : > { %v2277_v59 = vadd.f32 %v2177_v20, %v2053_v4  ;;  %v2278_v22 = vadd.f32 %v2177_v20, %v2054_v63  ;;  %v2291_v3 = vadd.f32 %v2212_v28, %v2067_v25  ;;  %v2292_v36 = vadd.f32 %v2212_v28, %v2068_v27  ;;  %v2633_v4 = vld [vmem:[%s2679_s14 + $0x1f0] sm:$0xff]  ;;  %v2634_v63 = vld [vmem:[%s2679_s14 + $0x1f8] sm:$0xff] }
 0x490   : > { %v2077_v5 = vmul.f32 %v2633_v4, %v4619_v6  ;;  %v2078_v15 = vmul.f32 %v2634_v63, %v4619_v6 }
 0x491   : > { %2341 = vst [vmem:[%s4630_s4 + $0x130] sm:$0xff] %v2277_v59  ;;  %2342 = vst [vmem:[%s4630_s4 + $0x138] sm:$0xff] %v2278_v22 }
 0x492   : > { %2355 = vst [vmem:[%s4630_s4 + $0x1a0] sm:$0xff] %v2291_v3  ;;  %2356 = vst [vmem:[%s4630_s4 + $0x1a8] sm:$0xff] %v2292_v36  ;;  %v2187_v10 = vpop.permute.xlu1 %2186  ;;  %v2222_v23 = vpop.permute.xlu0 %2221 }
 0x493   : > { %v2281_v42 = vadd.f32 %v2187_v10, %v2057_v46  ;;  %v2282_v60 = vadd.f32 %v2187_v10, %v2058_v53  ;;  %v2295_v11 = vadd.f32 %v2222_v23, %v2071_v21  ;;  %v2296_v41 = vadd.f32 %v2222_v23, %v2072_v32 }
 0x495   : > { %2345 = vst [vmem:[%s4630_s4 + $0x150] sm:$0xff] %v2281_v42  ;;  %2346 = vst [vmem:[%s4630_s4 + $0x158] sm:$0xff] %v2282_v60 }
 0x496   : > { %2359 = vst [vmem:[%s4630_s4 + $0x1c0] sm:$0xff] %v2295_v11  ;;  %2360 = vst [vmem:[%s4630_s4 + $0x1c8] sm:$0xff] %v2296_v41  ;;  %v2197_v62 = vpop.permute.xlu1 %2196  ;;  %v2232_v40 = vpop.permute.xlu0 %2231 }
 0x497   : > { %v2285_v61 = vadd.f32 %v2197_v62, %v2061_v35  ;;  %v2286_v48 = vadd.f32 %v2197_v62, %v2062_v39  ;;  %v2299_v50 = vadd.f32 %v2232_v40, %v2075_v2  ;;  %v2300_v26 = vadd.f32 %v2232_v40, %v2076_v31 }
 0x499   : > { %2349 = vst [vmem:[%s4630_s4 + $0x170] sm:$0xff] %v2285_v61  ;;  %2350 = vst [vmem:[%s4630_s4 + $0x178] sm:$0xff] %v2286_v48 }
 0x49a   : > { %2363 = vst [vmem:[%s4630_s4 + $0x1e0] sm:$0xff] %v2299_v50  ;;  %2364 = vst [vmem:[%s4630_s4 + $0x1e8] sm:$0xff] %v2300_v26  ;;  %v2207_v47 = vpop.permute.xlu1 %2206 }
 0x49b   : > { %v2289_v34 = vadd.f32 %v2207_v47, %v2065_v52  ;;  %v2290_v17 = vadd.f32 %v2207_v47, %v2066_v18 }
 0x49d   : > { %2353 = vst [vmem:[%s4630_s4 + $0x190] sm:$0xff] %v2289_v34  ;;  %2354 = vst [vmem:[%s4630_s4 + $0x198] sm:$0xff] %v2290_v17 }
 0x49e   : > { %v2217_v9 = vpop.permute.xlu1 %2216 }
 0x49f   : > { %v2293_v30 = vadd.f32 %v2217_v9, %v2069_v49  ;;  %v2294_v45 = vadd.f32 %v2217_v9, %v2070_v12 }
 0x4a1   : > { %2357 = vst [vmem:[%s4630_s4 + $0x1b0] sm:$0xff] %v2293_v30  ;;  %2358 = vst [vmem:[%s4630_s4 + $0x1b8] sm:$0xff] %v2294_v45 }
 0x4a2   : > { %v2227_v58 = vpop.permute.xlu1 %2226 }
 0x4a3   : > { %v2297_v16 = vadd.f32 %v2227_v58, %v2073_v51  ;;  %v2298_v29 = vadd.f32 %v2227_v58, %v2074_v19 }
 0x4a5   : > { %2361 = vst [vmem:[%s4630_s4 + $0x1d0] sm:$0xff] %v2297_v16  ;;  %2362 = vst [vmem:[%s4630_s4 + $0x1d8] sm:$0xff] %v2298_v29 }
 0x4a6   : > { %v2237_v25 = vpop.permute.xlu1 %2236 }
 0x4a7   : > { %v2301_v24 = vadd.f32 %v2237_v25, %v2077_v5  ;;  %v2302_v27 = vadd.f32 %v2237_v25, %v2078_v15 }
 0x4a9   : > { %2365 = vst [vmem:[%s4630_s4 + $0x1f0] sm:$0xff] %v2301_v24  ;;  %2366 = vst [vmem:[%s4630_s4 + $0x1f8] sm:$0xff] %v2302_v27 }
 0x4aa PF: > { %s12_s9 = sadd.s32 1, %s2641_s9  }
 0x4ab   : > { %p9_p4 = scmp.ge.s32.totalorder %s12_s9, 4  }
 0x4ad   :  { %11 = sbr.rel (!%p9_p4) target bundleno = 1 (0x1), region = 61 }

</bundles_post_ra>
